<compile_context>
chip_gen: v7x
topology: tpu7x:2x2x1
jax: 0.10.0
libtpu: 0.0.40
codegen_flags: <defaults>
</compile_context>

<pallas_src>
import jax
import jax.numpy as jnp
from jax import lax
from jax.experimental import pallas as pl
from jax.experimental.pallas import tpu as pltpu


# ----------------------------------------------------------------------------
# chip-aware limits
# ----------------------------------------------------------------------------
def _device_kind():
    try:
        return jax.devices()[0].device_kind.lower()
    except Exception:
        return ""


_KIND = _device_kind()
_IS_V7 = "v7" in _KIND
# v7x has 64 MiB VMEM per TensorCore -> keep the scoped limit <= ~48 MiB;
# v5e / v6e have 128 MiB physical so a larger scoped limit buys pipeline depth.
_VMEM_LIMIT = (48 if _IS_V7 else 96) * 1024 * 1024
_MAX_ROW_TILE = 512 if _IS_V7 else 1024


# ----------------------------------------------------------------------------
# tiling helpers
# ----------------------------------------------------------------------------
def _pick_row_tile(m, max_tile):
    """Row tile for `linear`: full M if small, else a divisor multiple of 8."""
    if m <= max_tile:
        return m
    for t in range(max_tile, 7, -1):
        if m % t == 0 and t % 8 == 0:
            return t
    return m


def _pick_batch_tile(b, per_row_bytes, budget_bytes):
    """Largest batch tile (divisor of B; multiple of 8 sublanes unless == B)
    whose double-buffered working set fits the VMEM budget."""
    tb = max(1, min(b, budget_bytes // max(2 * per_row_bytes, 1)))
    if tb >= b:
        return b
    tb = (tb // 8) * 8
    while tb >= 8:
        if b % tb == 0:
            return tb
        tb -= 8
    return b


def _pick_gru_time_tile(t, b, d_in, h, budget_bytes):
    """VMEM-aware time tile: double-buffered input/output blocks + gate scratch."""
    per_t = 4 * b * (2 * (d_in + 1 + h) + 3 * h)
    tt = max(1, min(t, 512, budget_bytes // max(per_t, 1)))
    for d in range(int(tt), 0, -1):
        if t % d == 0:
            return d
    return t


# ----------------------------------------------------------------------------
# tiled linear (matmul + bias), bf16 MXU operands / f32 accumulation
# ----------------------------------------------------------------------------
def _linear_kernel(x_ref, w_ref, b_ref, o_ref):
    o_ref[...] = (
        jnp.dot(x_ref[...].astype(jnp.bfloat16), w_ref[...],
                preferred_element_type=jnp.float32)
        + b_ref[...]
    )


def linear(x, w, b, *, max_row_tile=None):
    """x: (M, K) f32, w: (K, N) f32, b: (N,) f32 -> (M, N) f32."""
    if max_row_tile is None:
        max_row_tile = _MAX_ROW_TILE
    M, K = x.shape
    N = w.shape[1]
    TM = _pick_row_tile(M, max_row_tile)
    return pl.pallas_call(
        _linear_kernel,
        grid=(M // TM,),
        in_specs=[
            pl.BlockSpec((TM, K), lambda i: (i, 0)),
            pl.BlockSpec((K, N), lambda i: (0, 0)),
            pl.BlockSpec((1, N), lambda i: (0, 0)),
        ],
        out_specs=pl.BlockSpec((TM, N), lambda i: (i, 0)),
        out_shape=jax.ShapeDtypeStruct((M, N), jnp.float32),
        compiler_params=pltpu.CompilerParams(
            dimension_semantics=("parallel",),
            vmem_limit_bytes=_VMEM_LIMIT,
        ),
    )(x, w.astype(jnp.bfloat16), b.reshape(1, N))


# ----------------------------------------------------------------------------
# masked softmax (Localization.masked_softmax, memory_efficient=False)
# reciprocals on the EUP (free slot) instead of VALU divides.
# ----------------------------------------------------------------------------
def _masked_softmax(v, mask):
    z = v * mask
    m = jnp.max(z, axis=-1, keepdims=True)
    e = jnp.exp(z - m)
    p = e * pl.reciprocal(jnp.sum(e, axis=-1, keepdims=True), approx=True)
    p = p * mask
    p = p * pl.reciprocal(jnp.sum(p, axis=-1, keepdims=True) + 1e-13, approx=True)
    return p + 1e-13


# ----------------------------------------------------------------------------
# fused reduction-linear + attention kernel, batch-tiled ("parallel")
# ----------------------------------------------------------------------------
def _reduce_attend_kernel(vf_ref, wred_ref, bred_ref, f_ref, len_ref, mask_ref,
                          att_ref, vhat_ref):
    TB, T, Din = vf_ref.shape
    Dr = wred_ref.shape[1]
    # reduction linear fused in-kernel; bf16 operands, f32 accumulation
    vf = vf_ref[...].astype(jnp.bfloat16).reshape(TB * T, Din)
    v = (jnp.dot(vf, wred_ref[...], preferred_element_type=jnp.float32)
         + bred_ref[...]).reshape(TB, T, Dr)
    f = f_ref[...]                                   # (TB, Dr)
    att = jnp.sum(v * f[:, None, :], axis=-1)        # bmm(videoFeat, filter)
    lens = len_ref[...]                              # (TB, 1)
    inv_sqrt = jnp.where(lens > 0.0, lax.rsqrt(jnp.maximum(lens, 1.0)), 0.0)
    att = _masked_softmax(att * inv_sqrt, mask_ref[...])
    att_ref[...] = att
    vhat_ref[...] = att[:, :, None] * v              # attention-reweighted feats


def reduce_and_attend(videoFeat, w_red, b_red, filt, lengths, mask):
    B, T, Din = videoFeat.shape
    Dr = w_red.shape[1]
    TB = _pick_batch_tile(B, 4 * T * (Din + 2 * Dr + 4), _VMEM_LIMIT // 3)
    nB = B // TB
    return pl.pallas_call(
        _reduce_attend_kernel,
        grid=(nB,),
        in_specs=[
            pl.BlockSpec((TB, T, Din), lambda i: (i, 0, 0)),
            pl.BlockSpec((Din, Dr), lambda i: (0, 0)),
            pl.BlockSpec((1, Dr), lambda i: (0, 0)),
            pl.BlockSpec((TB, Dr), lambda i: (i, 0)),
            pl.BlockSpec((TB, 1), lambda i: (i, 0)),
            pl.BlockSpec((TB, T), lambda i: (i, 0)),
        ],
        out_specs=[
            pl.BlockSpec((TB, T), lambda i: (i, 0)),
            pl.BlockSpec((TB, T, Dr), lambda i: (i, 0, 0)),
        ],
        out_shape=(
            jax.ShapeDtypeStruct((B, T), jnp.float32),
            jax.ShapeDtypeStruct((B, T, Dr), jnp.float32),
        ),
        compiler_params=pltpu.CompilerParams(
            dimension_semantics=("parallel",),
            vmem_limit_bytes=_VMEM_LIMIT,
        ),
    )(videoFeat, w_red.astype(jnp.bfloat16), b_red.reshape(1, Dr),
      filt, lengths.astype(jnp.float32).reshape(B, 1), mask)


# ----------------------------------------------------------------------------
# bidirectional GRU (PyTorch gate order r, z, n)
#   grid = (2 directions ["parallel"], time blocks ["arbitrary"])
#   per-block prologue: fused input projection + gate pre-split into scratch
# ----------------------------------------------------------------------------
def _make_gru_kernel(tile_t, hidden):
    H = hidden

    def kernel(x_ref, mask_ref, wih_ref, bih_ref, whh_ref, bhh_ref, o_ref,
               gx_ref, h_ref):
        d = pl.program_id(0)                         # direction (0=fwd, 1=bwd)

        @pl.when(pl.program_id(1) == 0)
        def _():
            h_ref[...] = jnp.zeros_like(h_ref)       # fresh hidden per direction

        TT, B, Dr = x_ref.shape
        # ---- prologue: fused input projection for this time block (MXU) ----
        x2 = x_ref[...].astype(jnp.bfloat16).reshape(TT * B, Dr)
        gx = (jnp.dot(x2, wih_ref[0], preferred_element_type=jnp.float32)
              + bih_ref[0]).reshape(TT, B, 3 * H)
        # pre-split gates once per block; serial loop never lane-slices.
        gx_ref[0] = gx[:, :, 0:H]
        gx_ref[1] = gx[:, :, H:2 * H]
        gx_ref[2] = gx[:, :, 2 * H:3 * H]

        whh = whh_ref[0]                             # (3, H, H) bf16
        bhh = bhh_ref[0]                             # (3, 1, H) f32

        def step(s, carry):
            # backward direction reverses time inside the block
            t = s + d * (tile_t - 1 - 2 * s)
            h = h_ref[...]                           # (B, H) f32
            h_bf = h.astype(jnp.bfloat16)
            gh_r = jnp.dot(h_bf, whh[0], preferred_element_type=jnp.float32) + bhh[0]
            gh_z = jnp.dot(h_bf, whh[1], preferred_element_type=jnp.float32) + bhh[1]
            gh_n = jnp.dot(h_bf, whh[2], preferred_element_type=jnp.float32) + bhh[2]
            r = jax.nn.sigmoid(gx_ref[0, t] + gh_r)
            z = jax.nn.sigmoid(gx_ref[1, t] + gh_z)
            n = jnp.tanh(gx_ref[2, t] + r * gh_n)
            valid = mask_ref[t]                      # (B, 1)
            # pack_padded semantics: freeze h outside each length, emit zeros.
            h_new = jnp.where(valid > 0.0, (1.0 - z) * n + z * h, h)
            h_ref[...] = h_new
            o_ref[0, t] = h_new * valid
            return carry

        lax.fori_loop(0, tile_t, step, 0, unroll=min(8, tile_t))

    return kernel


def gru_bidirectional(vhat, mask, gru_params):
    """vhat: (B, T, Dr), mask: (B, T) -> (2, T, B, H) time-major outputs."""
    B, T, Dr = vhat.shape
    wih_f, bih_f, whh_f, bhh_f = gru_params["fwd"]   # (3H,Dr),(3H,),(3H,H),(3H,)
    wih_b, bih_b, whh_b, bhh_b = gru_params["bwd"]
    H = whh_f.shape[1]

    # time-major GRU inputs (attention/softmax are batch-major; only the small
    # Dr-wide vhat tensor pays the XLA transpose, the 3H gate slab never does).
    vhat_tm = jnp.transpose(vhat, (1, 0, 2))                 # (T, B, Dr)
    mask_tm = jnp.transpose(mask, (1, 0))[:, :, None]        # (T, B, 1)

    wih = jnp.stack([wih_f.T, wih_b.T]).astype(jnp.bfloat16)       # (2, Dr, 3H)
    bih = jnp.stack([bih_f, bih_b]).reshape(2, 1, 3 * H)
    whh = jnp.stack([jnp.transpose(whh_f.reshape(3, H, H), (0, 2, 1)),
                     jnp.transpose(whh_b.reshape(3, H, H), (0, 2, 1))]
                    ).astype(jnp.bfloat16)                          # (2, 3, H, H)
    bhh = jnp.stack([bhh_f, bhh_b]).reshape(2, 3, 1, H)

    TT = _pick_gru_time_tile(T, B, Dr, H, _VMEM_LIMIT // 6)
    nT = T // TT

    def t_idx(d, i):                                 # reversed blocks for bwd
        return i + d * (nT - 1 - 2 * i)

    return pl.pallas_call(
        _make_gru_kernel(TT, H),
        grid=(2, nT),
        in_specs=[
            pl.BlockSpec((TT, B, Dr), lambda d, i: (t_idx(d, i), 0, 0)),
            pl.BlockSpec((TT, B, 1), lambda d, i: (t_idx(d, i), 0, 0)),
            pl.BlockSpec((1, Dr, 3 * H), lambda d, i: (d, 0, 0)),
            pl.BlockSpec((1, 1, 3 * H), lambda d, i: (d, 0, 0)),
            pl.BlockSpec((1, 3, H, H), lambda d, i: (d, 0, 0, 0)),
            pl.BlockSpec((1, 3, 1, H), lambda d, i: (d, 0, 0, 0)),
        ],
        out_specs=pl.BlockSpec((1, TT, B, H), lambda d, i: (d, t_idx(d, i), 0, 0)),
        out_shape=jax.ShapeDtypeStruct((2, T, B, H), jnp.float32),
        scratch_shapes=[
            pltpu.VMEM((3, TT, B, H), jnp.float32),  # pre-split gate inputs
            pltpu.VMEM((B, H), jnp.float32),         # carried hidden state
        ],
        compiler_params=pltpu.CompilerParams(
            dimension_semantics=("parallel", "arbitrary"),
            vmem_limit_bytes=_VMEM_LIMIT,
        ),
    )(vhat_tm, mask_tm, wih, bih, whh, bhh)


# ----------------------------------------------------------------------------
# fused classification heads + masked softmax + KL / attention losses
# batch-tiled ("parallel"); per-sequence loss terms, batch means done in XLA.
# ----------------------------------------------------------------------------
def _heads_loss_kernel(x_ref, w_ref, b_ref, mask_ref, att_ref, sgt_ref, egt_ref,
                       loc_ref, ps_ref, pe_ref, indiv_ref, al_ref):
    TB, T, D2 = x_ref.shape
    # both head scores in one MXU matmul (kept f32: negligible work, no drift)
    x2 = x_ref[...].reshape(TB * T, D2)
    scores = (jnp.dot(x2, w_ref[...], preferred_element_type=jnp.float32)
              + b_ref[...]).reshape(TB, T, 2)
    mask = mask_ref[...]                             # (TB, T)
    ps = _masked_softmax(scores[:, :, 0], mask)
    pe = _masked_softmax(scores[:, :, 1], mask)
    ps_ref[...] = ps
    pe_ref[...] = pe

    def kl_per_seq(p, g):
        valid = (mask > 0.0) & (g > 0.0)             # guard 0 * log(p/0) -> NaN
        p_safe = jnp.where(valid, p, 1.0)
        g_safe = jnp.where(valid, g, 1.0)
        ret = jnp.where(valid, g * (jnp.log(p_safe) - jnp.log(g_safe)), 0.0)
        return -jnp.sum(ret, axis=-1, keepdims=True)                 # (TB, 1)

    isl = kl_per_seq(ps, sgt_ref[...])
    iel = kl_per_seq(pe, egt_ref[...])
    indiv_ref[...] = isl + iel
    al_ref[...] = jnp.sum(-((1.0 - loc_ref[...]) * jnp.log(1.0 - att_ref[...] + 1e-12)),
                          axis=-1, keepdims=True)                    # (TB, 1)


def heads_and_loss(output, w_start, b_start, w_end, b_end, mask, attention,
                   start, end, localiz):
    B, T, D2 = output.shape
    w_heads = jnp.stack([w_start, w_end], axis=1)            # (2H, 2)
    b_heads = jnp.stack([b_start, b_end]).reshape(1, 2)
    TB = _pick_batch_tile(B, 4 * T * (D2 + 8), _VMEM_LIMIT // 3)
    nB = B // TB
    return pl.pallas_call(
        _heads_loss_kernel,
        grid=(nB,),
        in_specs=[
            pl.BlockSpec((TB, T, D2), lambda i: (i, 0, 0)),
            pl.BlockSpec((D2, 2), lambda i: (0, 0)),
            pl.BlockSpec((1, 2), lambda i: (0, 0)),
            pl.BlockSpec((TB, T), lambda i: (i, 0)),
            pl.BlockSpec((TB, T), lambda i: (i, 0)),
            pl.BlockSpec((TB, T), lambda i: (i, 0)),
            pl.BlockSpec((TB, T), lambda i: (i, 0)),
            pl.BlockSpec((TB, T), lambda i: (i, 0)),
        ],
        out_specs=[
            pl.BlockSpec((TB, T), lambda i: (i, 0)),
            pl.BlockSpec((TB, T), lambda i: (i, 0)),
            pl.BlockSpec((TB, 1), lambda i: (i, 0)),
            pl.BlockSpec((TB, 1), lambda i: (i, 0)),
        ],
        out_shape=(
            jax.ShapeDtypeStruct((B, T), jnp.float32),
            jax.ShapeDtypeStruct((B, T), jnp.float32),
            jax.ShapeDtypeStruct((B, 1), jnp.float32),
            jax.ShapeDtypeStruct((B, 1), jnp.float32),
        ),
        compiler_params=pltpu.CompilerParams(
            dimension_semantics=("parallel",),
            vmem_limit_bytes=_VMEM_LIMIT,
        ),
    )(output, w_heads, b_heads, mask, attention, start, end, localiz)


# ----------------------------------------------------------------------------
# Full forward
# ----------------------------------------------------------------------------
def localization_forward(params, videoFeat, videoFeat_lengths, tokens,
                         tokens_lengths, start, end, localiz,
                         frame_start, frame_end):
    B, T, _ = videoFeat.shape

    # get_mask_from_sequence_lengths
    mask = (jnp.arange(T)[None, :] < videoFeat_lengths[:, None]).astype(jnp.float32)

    # ---- DynamicFilter ----
    # TODO(synk): DynamicFilter source not provided; deterministic stand-in =
    # masked mean-pool of tokens + Pallas linear projection to REDUCTION.OUTPUT_SIZE.
    L = tokens.shape[1]
    tok_mask = (jnp.arange(L)[None, :] < tokens_lengths[:, None]).astype(jnp.float32)
    tok_mean = jnp.sum(tokens * tok_mask[:, :, None], axis=1) / jnp.maximum(
        tokens_lengths[:, None].astype(jnp.float32), 1.0)
    filter_start = jnp.tanh(linear(tok_mean, params["w_df"], params["b_df"]))
    lengths = videoFeat_lengths                      # model_df returns these

    # ---- reduction linear + attention (bmm + rsqrt + masked softmax), fused,
    #      batch-tiled / double-buffered ----
    attention, videoFeat_hat = reduce_and_attend(
        videoFeat, params["w_red"], params["b_red"], filter_start, lengths, mask)

    # ---- bidirectional GRU (rnn_localization / feed_forward_rnn) ----
    out_tm = gru_bidirectional(videoFeat_hat, mask, params["gru"])   # (2,T,B,H)
    H = out_tm.shape[-1]
    output = jnp.transpose(out_tm, (2, 1, 0, 3)).reshape(B, T, 2 * H)

    # ---- starting / ending heads + masked softmax + losses, fused ----
    pred_start, pred_end, indiv, al = heads_and_loss(
        output, params["w_start"], params["b_start"], params["w_end"],
        params["b_end"], mask, attention, start, end, localiz)

    atten_loss = jnp.mean(al[:, 0])
    # total = mean(start KL) + mean(end KL) + atten = mean(indiv) + atten
    total_loss = jnp.mean(indiv[:, 0]) + atten_loss
    return (total_loss, indiv[:, 0], pred_start, pred_end, attention, atten_loss)


# ----------------------------------------------------------------------------
# Deterministic parameter init + example run
# ----------------------------------------------------------------------------
def init_params(key, d_tok, d_in, d_red, hidden):
    ks = jax.random.split(key, 16)
    s = 0.1

    def n(k, shape):
        return jax.random.normal(k, shape, jnp.float32) * s

    return {
        "w_df": n(ks[0], (d_tok, d_red)),
        "b_df": n(ks[1], (d_red,)),
        "w_red": n(ks[2], (d_in, d_red)),
        "b_red": n(ks[3], (d_red,)),
        "w_start": n(ks[4], (2 * hidden,)),
        "b_start": n(ks[5], ()),
        "w_end": n(ks[6], (2 * hidden,)),
        "b_end": n(ks[7], ()),
        "gru": {
            "fwd": (n(ks[8], (3 * hidden, d_red)), n(ks[9], (3 * hidden,)),
                    n(ks[10], (3 * hidden, hidden)), n(ks[11], (3 * hidden,))),
            "bwd": (n(ks[12], (3 * hidden, d_red)), n(ks[13], (3 * hidden,)),
                    n(ks[14], (3 * hidden, hidden)), n(ks[15], (3 * hidden,))),
        },
    }


if __name__ == "__main__":
    B, T = 2, 8
    D_IN, D_RED, HIDDEN = 32, 16, 16          # REDUCTION 32->16, GRU hidden 16 (bi)
    L_TOK, D_TOK = 6, 16

    key = jax.random.PRNGKey(0)
    k1, k2, k3, k4, k5, kp = jax.random.split(key, 6)

    videoFeat = jax.random.normal(k1, (B, T, D_IN), jnp.float32)
    videoFeat_lengths = jnp.array([8, 5], jnp.int32)
    tokens = jax.random.normal(k2, (B, L_TOK, D_TOK), jnp.float32)
    tokens_lengths = jnp.array([6, 4], jnp.int32)

    mask = (jnp.arange(T)[None, :] < videoFeat_lengths[:, None]).astype(jnp.float32)
    s_raw = (jax.random.uniform(k3, (B, T)) + 0.1) * mask
    start_gt = s_raw / jnp.sum(s_raw, axis=-1, keepdims=True)
    e_raw = (jax.random.uniform(k4, (B, T)) + 0.1) * mask
    end_gt = e_raw / jnp.sum(e_raw, axis=-1, keepdims=True)
    localiz = jax.random.uniform(k5, (B, T)) * 0.8
    frame_start = jnp.zeros((B,), jnp.int32)
    frame_end = videoFeat_lengths - 1

    params = init_params(kp, D_TOK, D_IN, D_RED, HIDDEN)

    fwd = jax.jit(localization_forward)
    out = fwd(params, videoFeat, videoFeat_lengths, tokens, tokens_lengths,
              start_gt, end_gt, localiz, frame_start, frame_end)
    jax.block_until_ready(out)
    print("KERNEL_OK")
</pallas_src>

<mosaic_0001>
module attributes {stable_mosaic.version = 11 : i64} {
  func.func @_linear_kernel(%arg0: i32, %arg1: memref<2x16xf32, #tpu.memory_space<vmem>>, %arg2: memref<16x16xbf16, #tpu.memory_space<vmem>>, %arg3: memref<1x16xf32, #tpu.memory_space<vmem>>, %arg4: memref<2x16xf32, #tpu.memory_space<vmem>>) attributes {dimension_semantics = [#tpu.dimension_semantics<parallel>], iteration_bounds = array<i64: 1>, scalar_prefetch = 0 : i64, scratch_operands = 0 : i64, tpu.core_type = #tpu.core_type<tc>, window_params = [{transform_indices = @transform_0, window_bounds = array<i64: 2, 16>}, {pipeline_mode = #tpu.pipeline_mode<synchronous>, transform_indices = @transform_1, window_bounds = array<i64: 16, 16>}, {pipeline_mode = #tpu.pipeline_mode<synchronous>, transform_indices = @transform_2, window_bounds = array<i64: 1, 16>}, {transform_indices = @transform_3, window_bounds = array<i64: 2, 16>}]} {
    %c0 = arith.constant 0 : index
    %c0_0 = arith.constant 0 : index
    %0 = vector.load %arg1[%c0, %c0_0] : memref<2x16xf32, #tpu.memory_space<vmem>>, vector<2x16xf32>
    %1 = arith.truncf %0 : vector<2x16xf32> to vector<2x16xbf16>
    %c0_1 = arith.constant 0 : index
    %c0_2 = arith.constant 0 : index
    %2 = vector.load %arg2[%c0_1, %c0_2] : memref<16x16xbf16, #tpu.memory_space<vmem>>, vector<16x16xbf16>
    %cst = arith.constant dense<0.000000e+00> : vector<2x16xf32>
    %3 = tpu.matmul %1, %2, %cst {dimension_numbers = #tpu.dot_dimension_numbers<[1], [0], [0], [1], [0, 0, 1, 1], [], []>} : vector<2x16xbf16>, vector<16x16xbf16>, vector<2x16xf32> -> vector<2x16xf32>
    %c0_3 = arith.constant 0 : index
    %c0_4 = arith.constant 0 : index
    %4 = vector.load %arg3[%c0_3, %c0_4] : memref<1x16xf32, #tpu.memory_space<vmem>>, vector<1x16xf32>
    %5 = vector.broadcast %4 : vector<1x16xf32> to vector<2x16xf32>
    %6 = arith.addf %3, %5 : vector<2x16xf32>
    %c0_5 = arith.constant 0 : index
    %c0_6 = arith.constant 0 : index
    %7 = vector.load %arg4[%c0_5, %c0_6] : memref<2x16xf32, #tpu.memory_space<vmem>>, vector<2x16xf32>
    tpu.vector_store %arg4[%c0_5, %c0_6], %6 {strides = array<i32>} : memref<2x16xf32, #tpu.memory_space<vmem>>, vector<2x16xf32>,
    return
  }
  func.func @transform_0(%arg0: i32) -> (i32, i32) {
    %c0_i32 = arith.constant 0 : i32
    %c0_i32_0 = arith.constant 0 : i32
    return %arg0, %c0_i32 : i32, i32
  }
  func.func @transform_1(%arg0: i32) -> (i32, i32) {
    %c0_i32 = arith.constant 0 : i32
    %c0_i32_0 = arith.constant 0 : i32
    %c0_i32_1 = arith.constant 0 : i32
    return %c0_i32, %c0_i32_0 : i32, i32
  }
  func.func @transform_2(%arg0: i32) -> (i32, i32) {
    %c0_i32 = arith.constant 0 : i32
    %c0_i32_0 = arith.constant 0 : i32
    %c0_i32_1 = arith.constant 0 : i32
    return %c0_i32, %c0_i32_0 : i32, i32
  }
  func.func @transform_3(%arg0: i32) -> (i32, i32) {
    %c0_i32 = arith.constant 0 : i32
    %c0_i32_0 = arith.constant 0 : i32
    return %arg0, %c0_i32 : i32, i32
  }
}

module attributes {stable_mosaic.version = 11 : i64} {
  func.func @_reduce_attend_kernel(%arg0: i32, %arg1: memref<2x8x32xf32, #tpu.memory_space<vmem>>, %arg2: memref<32x16xbf16, #tpu.memory_space<vmem>>, %arg3: memref<1x16xf32, #tpu.memory_space<vmem>>, %arg4: memref<2x16xf32, #tpu.memory_space<vmem>>, %arg5: memref<2x1xf32, #tpu.memory_space<vmem>>, %arg6: memref<2x8xf32, #tpu.memory_space<vmem>>, %arg7: memref<2x8xf32, #tpu.memory_space<vmem>>, %arg8: memref<2x8x16xf32, #tpu.memory_space<vmem>>) attributes {dimension_semantics = [#tpu.dimension_semantics<parallel>], iteration_bounds = array<i64: 1>, scalar_prefetch = 0 : i64, scratch_operands = 0 : i64, tpu.core_type = #tpu.core_type<tc>, window_params = [{transform_indices = @transform_0, window_bounds = array<i64: 2, 8, 32>}, {pipeline_mode = #tpu.pipeline_mode<synchronous>, transform_indices = @transform_1, window_bounds = array<i64: 32, 16>}, {pipeline_mode = #tpu.pipeline_mode<synchronous>, transform_indices = @transform_2, window_bounds = array<i64: 1, 16>}, {transform_indices = @transform_3, window_bounds = array<i64: 2, 16>}, {transform_indices = @transform_4, window_bounds = array<i64: 2, 1>}, {transform_indices = @transform_5, window_bounds = array<i64: 2, 8>}, {transform_indices = @transform_6, window_bounds = array<i64: 2, 8>}, {transform_indices = @transform_7, window_bounds = array<i64: 2, 8, 16>}]} {
    %c0 = arith.constant 0 : index
    %c0_0 = arith.constant 0 : index
    %c0_1 = arith.constant 0 : index
    %0 = vector.load %arg1[%c0, %c0_0, %c0_1] : memref<2x8x32xf32, #tpu.memory_space<vmem>>, vector<2x8x32xf32>
    %1 = arith.truncf %0 : vector<2x8x32xf32> to vector<2x8x32xbf16>
    %2 = vector.shape_cast %1 : vector<2x8x32xbf16> to vector<16x32xbf16>
    %c0_2 = arith.constant 0 : index
    %c0_3 = arith.constant 0 : index
    %3 = vector.load %arg2[%c0_2, %c0_3] : memref<32x16xbf16, #tpu.memory_space<vmem>>, vector<32x16xbf16>
    %cst = arith.constant dense<0.000000e+00> : vector<16x16xf32>
    %4 = tpu.matmul %2, %3, %cst {dimension_numbers = #tpu.dot_dimension_numbers<[1], [0], [0], [1], [0, 0, 1, 1], [], []>} : vector<16x32xbf16>, vector<32x16xbf16>, vector<16x16xf32> -> vector<16x16xf32>
    %c0_4 = arith.constant 0 : index
    %c0_5 = arith.constant 0 : index
    %5 = vector.load %arg3[%c0_4, %c0_5] : memref<1x16xf32, #tpu.memory_space<vmem>>, vector<1x16xf32>
    %6 = vector.broadcast %5 : vector<1x16xf32> to vector<16x16xf32>
    %7 = arith.addf %4, %6 : vector<16x16xf32>
    %8 = vector.shape_cast %7 : vector<16x16xf32> to vector<2x8x16xf32>
    %c0_6 = arith.constant 0 : index
    %c0_7 = arith.constant 0 : index
    %9 = vector.load %arg4[%c0_6, %c0_7] : memref<2x16xf32, #tpu.memory_space<vmem>>, vector<2x16xf32>
    %10 = vector.shape_cast %9 : vector<2x16xf32> to vector<2x1x16xf32>
    %11 = vector.broadcast %10 : vector<2x1x16xf32> to vector<2x8x16xf32>
    %12 = arith.mulf %8, %11 : vector<2x8x16xf32>
    %cst_8 = arith.constant dense<0.000000e+00> : vector<2x8xf32>
    %13 = vector.multi_reduction <add>, %12, %cst_8 [2] : vector<2x8x16xf32> to vector<2x8xf32>
    %c0_9 = arith.constant 0 : index
    %c0_10 = arith.constant 0 : index
    %14 = vector.load %arg5[%c0_9, %c0_10] : memref<2x1xf32, #tpu.memory_space<vmem>>, vector<2x1xf32>
    %cst_11 = arith.constant 0.000000e+00 : f32
    %15 = vector.broadcast %cst_11 : f32 to vector<2x1xf32>
    %16 = arith.cmpf ogt, %14, %15 : vector<2x1xf32>
    %cst_12 = arith.constant 1.000000e+00 : f32
    %17 = vector.broadcast %cst_12 : f32 to vector<2x1xf32>
    %18 = arith.maximumf %14, %17 : vector<2x1xf32>
    %19 = math.rsqrt %18 : vector<2x1xf32>
    %cst_13 = arith.constant 0.000000e+00 : f32
    %20 = vector.broadcast %cst_13 : f32 to vector<2x1xf32>
    %21 = arith.select %16, %19, %20 : vector<2x1xi1>, vector<2x1xf32>
    %22 = vector.broadcast %21 : vector<2x1xf32> to vector<2x8xf32>
    %23 = arith.mulf %13, %22 : vector<2x8xf32>
    %c0_14 = arith.constant 0 : index
    %c0_15 = arith.constant 0 : index
    %24 = vector.load %arg6[%c0_14, %c0_15] : memref<2x8xf32, #tpu.memory_space<vmem>>, vector<2x8xf32>
    %25 = arith.mulf %23, %24 : vector<2x8xf32>
    %cst_16 = arith.constant dense<0xFF800000> : vector<2xf32>
    %26 = vector.multi_reduction <maximumf>, %25, %cst_16 [1] : vector<2x8xf32> to vector<2xf32>
    %27 = vector.shape_cast %26 : vector<2xf32> to vector<2x1xf32>
    %28 = vector.broadcast %27 : vector<2x1xf32> to vector<2x8xf32>
    %29 = arith.subf %25, %28 : vector<2x8xf32>
    %30 = math.exp %29 : vector<2x8xf32>
    %cst_17 = arith.constant dense<0.000000e+00> : vector<2xf32>
    %31 = vector.multi_reduction <add>, %30, %cst_17 [1] : vector<2x8xf32> to vector<2xf32>
    %32 = vector.shape_cast %31 : vector<2xf32> to vector<2x1xf32>
    %33 = tpu.reciprocal %32 {approx = true} : vector<2x1xf32> -> vector<2x1xf32>
    %34 = vector.broadcast %33 : vector<2x1xf32> to vector<2x8xf32>
    %35 = arith.mulf %30, %34 : vector<2x8xf32>
    %36 = arith.mulf %35, %24 : vector<2x8xf32>
    %cst_18 = arith.constant dense<0.000000e+00> : vector<2xf32>
    %37 = vector.multi_reduction <add>, %36, %cst_18 [1] : vector<2x8xf32> to vector<2xf32>
    %38 = vector.shape_cast %37 : vector<2xf32> to vector<2x1xf32>
    %cst_19 = arith.constant 9.99999982E-14 : f32
    %39 = vector.broadcast %cst_19 : f32 to vector<2x1xf32>
    %40 = arith.addf %38, %39 : vector<2x1xf32>
    %41 = tpu.reciprocal %40 {approx = true} : vector<2x1xf32> -> vector<2x1xf32>
    %42 = vector.broadcast %41 : vector<2x1xf32> to vector<2x8xf32>
    %43 = arith.mulf %36, %42 : vector<2x8xf32>
    %cst_20 = arith.constant 9.99999982E-14 : f32
    %44 = vector.broadcast %cst_20 : f32 to vector<2x8xf32>
    %45 = arith.addf %43, %44 : vector<2x8xf32>
    %c0_21 = arith.constant 0 : index
    %c0_22 = arith.constant 0 : index
    %46 = vector.load %arg7[%c0_21, %c0_22] : memref<2x8xf32, #tpu.memory_space<vmem>>, vector<2x8xf32>
    tpu.vector_store %arg7[%c0_21, %c0_22], %45 {strides = array<i32>} : memref<2x8xf32, #tpu.memory_space<vmem>>, vector<2x8xf32>,
    %47 = vector.shape_cast %45 : vector<2x8xf32> to vector<2x8x1xf32>
    %48 = vector.broadcast %47 : vector<2x8x1xf32> to vector<2x8x16xf32>
    %49 = arith.mulf %48, %8 : vector<2x8x16xf32>
    %c0_23 = arith.constant 0 : index
    %c0_24 = arith.constant 0 : index
    %c0_25 = arith.constant 0 : index
    %50 = vector.load %arg8[%c0_23, %c0_24, %c0_25] : memref<2x8x16xf32, #tpu.memory_space<vmem>>, vector<2x8x16xf32>
    tpu.vector_store %arg8[%c0_23, %c0_24, %c0_25], %49 {strides = array<i32>} : memref<2x8x16xf32, #tpu.memory_space<vmem>>, vector<2x8x16xf32>,
    return
  }
  func.func @transform_0(%arg0: i32) -> (i32, i32, i32) {
    %c0_i32 = arith.constant 0 : i32
    %c0_i32_0 = arith.constant 0 : i32
    %c0_i32_1 = arith.constant 0 : i32
    return %arg0, %c0_i32, %c0_i32_0 : i32, i32, i32
  }
  func.func @transform_1(%arg0: i32) -> (i32, i32) {
    %c0_i32 = arith.constant 0 : i32
    %c0_i32_0 = arith.constant 0 : i32
    %c0_i32_1 = arith.constant 0 : i32
    return %c0_i32, %c0_i32_0 : i32, i32
  }
  func.func @transform_2(%arg0: i32) -> (i32, i32) {
    %c0_i32 = arith.constant 0 : i32
    %c0_i32_0 = arith.constant 0 : i32
    %c0_i32_1 = arith.constant 0 : i32
    return %c0_i32, %c0_i32_0 : i32, i32
  }
  func.func @transform_3(%arg0: i32) -> (i32, i32) {
    %c0_i32 = arith.constant 0 : i32
    %c0_i32_0 = arith.constant 0 : i32
    return %arg0, %c0_i32 : i32, i32
  }
  func.func @transform_4(%arg0: i32) -> (i32, i32) {
    %c0_i32 = arith.constant 0 : i32
    %c0_i32_0 = arith.constant 0 : i32
    return %arg0, %c0_i32 : i32, i32
  }
  func.func @transform_5(%arg0: i32) -> (i32, i32) {
    %c0_i32 = arith.constant 0 : i32
    %c0_i32_0 = arith.constant 0 : i32
    return %arg0, %c0_i32 : i32, i32
  }
  func.func @transform_6(%arg0: i32) -> (i32, i32) {
    %c0_i32 = arith.constant 0 : i32
    %c0_i32_0 = arith.constant 0 : i32
    return %arg0, %c0_i32 : i32, i32
  }
  func.func @transform_7(%arg0: i32) -> (i32, i32, i32) {
    %c0_i32 = arith.constant 0 : i32
    %c0_i32_0 = arith.constant 0 : i32
    %c0_i32_1 = arith.constant 0 : i32
    return %arg0, %c0_i32, %c0_i32_0 : i32, i32, i32
  }
}

module attributes {stable_mosaic.version = 11 : i64} {
  func.func @kernel(%arg0: i32, %arg1: i32, %arg2: memref<8x2x16xf32, #tpu.memory_space<vmem>>, %arg3: memref<8x2x1xf32, #tpu.memory_space<vmem>>, %arg4: memref<1x16x48xbf16, #tpu.memory_space<vmem>>, %arg5: memref<1x1x48xf32, #tpu.memory_space<vmem>>, %arg6: memref<1x3x16x16xbf16, #tpu.memory_space<vmem>>, %arg7: memref<1x3x1x16xf32, #tpu.memory_space<vmem>>, %arg8: memref<1x8x2x16xf32, #tpu.memory_space<vmem>>, %arg9: memref<3x8x2x16xf32, #tpu.memory_space<vmem>>, %arg10: memref<2x16xf32, #tpu.memory_space<vmem>>) attributes {dimension_semantics = [#tpu.dimension_semantics<parallel>, #tpu.dimension_semantics<arbitrary>], iteration_bounds = array<i64: 2, 1>, scalar_prefetch = 0 : i64, scratch_operands = 2 : i64, tpu.core_type = #tpu.core_type<tc>, window_params = [{transform_indices = @transform_0, window_bounds = array<i64: 8, 2, 16>}, {transform_indices = @transform_1, window_bounds = array<i64: 8, 2, 1>}, {transform_indices = @transform_2, window_bounds = array<i64: 1, 16, 48>}, {transform_indices = @transform_3, window_bounds = array<i64: 1, 1, 48>}, {transform_indices = @transform_4, window_bounds = array<i64: 1, 3, 16, 16>}, {transform_indices = @transform_5, window_bounds = array<i64: 1, 3, 1, 16>}, {transform_indices = @transform_6, window_bounds = array<i64: 1, 8, 2, 16>}]} {
    %c0_i32 = arith.constant 0 : i32
    %0 = arith.cmpi eq, %arg1, %c0_i32 : i32
    %1 = arith.extui %0 : i1 to i32
    %c0_i32_0 = arith.constant 0 : i32
    %2 = arith.cmpi ne, %1, %c0_i32_0 : i32
    scf.if %2 {
      %cst_244 = arith.constant 0.000000e+00 : f32
      %598 = vector.broadcast %cst_244 : f32 to vector<2x16xf32>
      %c0_245 = arith.constant 0 : index
      %c0_246 = arith.constant 0 : index
      %599 = vector.load %arg10[%c0_245, %c0_246] : memref<2x16xf32, #tpu.memory_space<vmem>>, vector<2x16xf32>
      tpu.vector_store %arg10[%c0_245, %c0_246], %598 {strides = array<i32>} : memref<2x16xf32, #tpu.memory_space<vmem>>, vector<2x16xf32>,
    } else {
    }
    %c0 = arith.constant 0 : index
    %c0_1 = arith.constant 0 : index
    %c0_2 = arith.constant 0 : index
    %3 = vector.load %arg2[%c0, %c0_1, %c0_2] : memref<8x2x16xf32, #tpu.memory_space<vmem>>, vector<8x2x16xf32>
    %4 = arith.truncf %3 : vector<8x2x16xf32> to vector<8x2x16xbf16>
    %5 = vector.shape_cast %4 : vector<8x2x16xbf16> to vector<16x16xbf16>
    %c0_3 = arith.constant 0 : index
    %c0_4 = arith.constant 0 : index
    %c0_5 = arith.constant 0 : index
    %6 = vector.load %arg4[%c0_3, %c0_4, %c0_5] : memref<1x16x48xbf16, #tpu.memory_space<vmem>>, vector<1x16x48xbf16>
    %7 = vector.shape_cast %6 : vector<1x16x48xbf16> to vector<16x48xbf16>
    %cst = arith.constant dense<0.000000e+00> : vector<16x48xf32>
    %8 = tpu.matmul %5, %7, %cst {dimension_numbers = #tpu.dot_dimension_numbers<[1], [0], [0], [1], [0, 0, 1, 1], [], []>} : vector<16x16xbf16>, vector<16x48xbf16>, vector<16x48xf32> -> vector<16x48xf32>
    %c0_6 = arith.constant 0 : index
    %c0_7 = arith.constant 0 : index
    %c0_8 = arith.constant 0 : index
    %9 = vector.load %arg5[%c0_6, %c0_7, %c0_8] : memref<1x1x48xf32, #tpu.memory_space<vmem>>, vector<1x1x48xf32>
    %10 = vector.shape_cast %9 : vector<1x1x48xf32> to vector<1x48xf32>
    %11 = vector.broadcast %10 : vector<1x48xf32> to vector<16x48xf32>
    %12 = arith.addf %8, %11 : vector<16x48xf32>
    %13 = vector.shape_cast %12 : vector<16x48xf32> to vector<8x2x48xf32>
    %14 = vector.extract_strided_slice %13 {offsets = [0, 0, 0], sizes = [8, 2, 16], strides = [1, 1, 1]} : vector<8x2x48xf32> to vector<8x2x16xf32>
    %c0_9 = arith.constant 0 : index
    %c0_10 = arith.constant 0 : index
    %c0_11 = arith.constant 0 : index
    %c0_12 = arith.constant 0 : index
    %15 = vector.load %arg9[%c0_9, %c0_10, %c0_11, %c0_12] : memref<3x8x2x16xf32, #tpu.memory_space<vmem>>, vector<1x8x2x16xf32>
    %16 = vector.shape_cast %15 : vector<1x8x2x16xf32> to vector<8x2x16xf32>
    %17 = vector.shape_cast %14 : vector<8x2x16xf32> to vector<1x8x2x16xf32>
    tpu.vector_store %arg9[%c0_9, %c0_10, %c0_11, %c0_12], %17 {strides = array<i32>} : memref<3x8x2x16xf32, #tpu.memory_space<vmem>>, vector<1x8x2x16xf32>,
    %18 = vector.extract_strided_slice %13 {offsets = [0, 0, 16], sizes = [8, 2, 16], strides = [1, 1, 1]} : vector<8x2x48xf32> to vector<8x2x16xf32>
    %c1 = arith.constant 1 : index
    %c0_13 = arith.constant 0 : index
    %c0_14 = arith.constant 0 : index
    %c0_15 = arith.constant 0 : index
    %19 = vector.load %arg9[%c1, %c0_13, %c0_14, %c0_15] : memref<3x8x2x16xf32, #tpu.memory_space<vmem>>, vector<1x8x2x16xf32>
    %20 = vector.shape_cast %19 : vector<1x8x2x16xf32> to vector<8x2x16xf32>
    %21 = vector.shape_cast %18 : vector<8x2x16xf32> to vector<1x8x2x16xf32>
    tpu.vector_store %arg9[%c1, %c0_13, %c0_14, %c0_15], %21 {strides = array<i32>} : memref<3x8x2x16xf32, #tpu.memory_space<vmem>>, vector<1x8x2x16xf32>,
    %22 = vector.extract_strided_slice %13 {offsets = [0, 0, 32], sizes = [8, 2, 16], strides = [1, 1, 1]} : vector<8x2x48xf32> to vector<8x2x16xf32>
    %c2 = arith.constant 2 : index
    %c0_16 = arith.constant 0 : index
    %c0_17 = arith.constant 0 : index
    %c0_18 = arith.constant 0 : index
    %23 = vector.load %arg9[%c2, %c0_16, %c0_17, %c0_18] : memref<3x8x2x16xf32, #tpu.memory_space<vmem>>, vector<1x8x2x16xf32>
    %24 = vector.shape_cast %23 : vector<1x8x2x16xf32> to vector<8x2x16xf32>
    %25 = vector.shape_cast %22 : vector<8x2x16xf32> to vector<1x8x2x16xf32>
    tpu.vector_store %arg9[%c2, %c0_16, %c0_17, %c0_18], %25 {strides = array<i32>} : memref<3x8x2x16xf32, #tpu.memory_space<vmem>>, vector<1x8x2x16xf32>,
    %c0_19 = arith.constant 0 : index
    %c0_20 = arith.constant 0 : index
    %c0_21 = arith.constant 0 : index
    %c0_22 = arith.constant 0 : index
    %26 = vector.load %arg6[%c0_19, %c0_20, %c0_21, %c0_22] : memref<1x3x16x16xbf16, #tpu.memory_space<vmem>>, vector<1x3x16x16xbf16>
    %27 = vector.shape_cast %26 : vector<1x3x16x16xbf16> to vector<3x16x16xbf16>
    %c0_23 = arith.constant 0 : index
    %c0_24 = arith.constant 0 : index
    %c0_25 = arith.constant 0 : index
    %c0_26 = arith.constant 0 : index
    %28 = vector.load %arg7[%c0_23, %c0_24, %c0_25, %c0_26] : memref<1x3x1x16xf32, #tpu.memory_space<vmem>>, vector<1x3x1x16xf32>
    %29 = vector.shape_cast %28 : vector<1x3x1x16xf32> to vector<3x1x16xf32>
    %c0_i32_27 = arith.constant 0 : i32
    %c2_i32 = arith.constant 2 : i32
    %30 = arith.muli %c2_i32, %c0_i32_27 : i32
    %c7_i32 = arith.constant 7 : i32
    %31 = arith.subi %c7_i32, %30 : i32
    %32 = arith.muli %arg0, %31 : i32
    %33 = arith.addi %c0_i32_27, %32 : i32
    %c0_28 = arith.constant 0 : index
    %c0_29 = arith.constant 0 : index
    %34 = vector.load %arg10[%c0_28, %c0_29] : memref<2x16xf32, #tpu.memory_space<vmem>>, vector<2x16xf32>
    %35 = arith.truncf %34 : vector<2x16xf32> to vector<2x16xbf16>
    %36 = vector.extract_strided_slice %27 {offsets = [0, 0, 0], sizes = [1, 16, 16], strides = [1, 1, 1]} : vector<3x16x16xbf16> to vector<1x16x16xbf16>
    %37 = vector.shape_cast %36 : vector<1x16x16xbf16> to vector<16x16xbf16>
    %cst_30 = arith.constant dense<0.000000e+00> : vector<2x16xf32>
    %38 = tpu.matmul %35, %37, %cst_30 {dimension_numbers = #tpu.dot_dimension_numbers<[1], [0], [0], [1], [0, 0, 1, 1], [], []>} : vector<2x16xbf16>, vector<16x16xbf16>, vector<2x16xf32> -> vector<2x16xf32>
    %39 = vector.extract_strided_slice %29 {offsets = [0, 0, 0], sizes = [1, 1, 16], strides = [1, 1, 1]} : vector<3x1x16xf32> to vector<1x1x16xf32>
    %40 = vector.shape_cast %39 : vector<1x1x16xf32> to vector<1x16xf32>
    %41 = vector.broadcast %40 : vector<1x16xf32> to vector<2x16xf32>
    %42 = arith.addf %38, %41 : vector<2x16xf32>
    %43 = vector.extract_strided_slice %27 {offsets = [1, 0, 0], sizes = [1, 16, 16], strides = [1, 1, 1]} : vector<3x16x16xbf16> to vector<1x16x16xbf16>
    %44 = vector.shape_cast %43 : vector<1x16x16xbf16> to vector<16x16xbf16>
    %cst_31 = arith.constant dense<0.000000e+00> : vector<2x16xf32>
    %45 = tpu.matmul %35, %44, %cst_31 {dimension_numbers = #tpu.dot_dimension_numbers<[1], [0], [0], [1], [0, 0, 1, 1], [], []>} : vector<2x16xbf16>, vector<16x16xbf16>, vector<2x16xf32> -> vector<2x16xf32>
    %46 = vector.extract_strided_slice %29 {offsets = [1, 0, 0], sizes = [1, 1, 16], strides = [1, 1, 1]} : vector<3x1x16xf32> to vector<1x1x16xf32>
    %47 = vector.shape_cast %46 : vector<1x1x16xf32> to vector<1x16xf32>
    %48 = vector.broadcast %47 : vector<1x16xf32> to vector<2x16xf32>
    %49 = arith.addf %45, %48 : vector<2x16xf32>
    %50 = vector.extract_strided_slice %27 {offsets = [2, 0, 0], sizes = [1, 16, 16], strides = [1, 1, 1]} : vector<3x16x16xbf16> to vector<1x16x16xbf16>
    %51 = vector.shape_cast %50 : vector<1x16x16xbf16> to vector<16x16xbf16>
    %cst_32 = arith.constant dense<0.000000e+00> : vector<2x16xf32>
    %52 = tpu.matmul %35, %51, %cst_32 {dimension_numbers = #tpu.dot_dimension_numbers<[1], [0], [0], [1], [0, 0, 1, 1], [], []>} : vector<2x16xbf16>, vector<16x16xbf16>, vector<2x16xf32> -> vector<2x16xf32>
    %53 = vector.extract_strided_slice %29 {offsets = [2, 0, 0], sizes = [1, 1, 16], strides = [1, 1, 1]} : vector<3x1x16xf32> to vector<1x1x16xf32>
    %54 = vector.shape_cast %53 : vector<1x1x16xf32> to vector<1x16xf32>
    %55 = vector.broadcast %54 : vector<1x16xf32> to vector<2x16xf32>
    %56 = arith.addf %52, %55 : vector<2x16xf32>
    %c0_33 = arith.constant 0 : index
    %57 = arith.index_cast %33 : i32 to index
    %c0_34 = arith.constant 0 : index
    %c0_35 = arith.constant 0 : index
    %58 = vector.load %arg9[%c0_33, %57, %c0_34, %c0_35] : memref<3x8x2x16xf32, #tpu.memory_space<vmem>>, vector<1x1x2x16xf32>
    %59 = vector.shape_cast %58 : vector<1x1x2x16xf32> to vector<2x16xf32>
    %60 = arith.addf %59, %42 : vector<2x16xf32>
    %61 = arith.negf %60 : vector<2x16xf32>
    %62 = math.exp %61 : vector<2x16xf32>
    %cst_36 = arith.constant 1.000000e+00 : f32
    %63 = vector.broadcast %cst_36 : f32 to vector<2x16xf32>
    %64 = arith.addf %63, %62 : vector<2x16xf32>
    %65 = arith.divf %63, %64 : vector<2x16xf32>
    %c1_37 = arith.constant 1 : index
    %66 = arith.index_cast %33 : i32 to index
    %c0_38 = arith.constant 0 : index
    %c0_39 = arith.constant 0 : index
    %67 = vector.load %arg9[%c1_37, %66, %c0_38, %c0_39] : memref<3x8x2x16xf32, #tpu.memory_space<vmem>>, vector<1x1x2x16xf32>
    %68 = vector.shape_cast %67 : vector<1x1x2x16xf32> to vector<2x16xf32>
    %69 = arith.addf %68, %49 : vector<2x16xf32>
    %70 = arith.negf %69 : vector<2x16xf32>
    %71 = math.exp %70 : vector<2x16xf32>
    %cst_40 = arith.constant 1.000000e+00 : f32
    %72 = vector.broadcast %cst_40 : f32 to vector<2x16xf32>
    %73 = arith.addf %72, %71 : vector<2x16xf32>
    %74 = arith.divf %72, %73 : vector<2x16xf32>
    %c2_41 = arith.constant 2 : index
    %75 = arith.index_cast %33 : i32 to index
    %c0_42 = arith.constant 0 : index
    %c0_43 = arith.constant 0 : index
    %76 = vector.load %arg9[%c2_41, %75, %c0_42, %c0_43] : memref<3x8x2x16xf32, #tpu.memory_space<vmem>>, vector<1x1x2x16xf32>
    %77 = vector.shape_cast %76 : vector<1x1x2x16xf32> to vector<2x16xf32>
    %78 = arith.mulf %65, %56 : vector<2x16xf32>
    %79 = arith.addf %77, %78 : vector<2x16xf32>
    %80 = math.tanh %79 : vector<2x16xf32>
    %81 = arith.index_cast %33 : i32 to index
    %c0_44 = arith.constant 0 : index
    %c0_45 = arith.constant 0 : index
    %82 = vector.load %arg3[%81, %c0_44, %c0_45] : memref<8x2x1xf32, #tpu.memory_space<vmem>>, vector<1x2x1xf32>
    %83 = vector.shape_cast %82 : vector<1x2x1xf32> to vector<2x1xf32>
    %cst_46 = arith.constant 0.000000e+00 : f32
    %84 = vector.broadcast %cst_46 : f32 to vector<2x1xf32>
    %85 = arith.cmpf ogt, %83, %84 : vector<2x1xf32>
    %cst_47 = arith.constant 1.000000e+00 : f32
    %86 = vector.broadcast %cst_47 : f32 to vector<2x16xf32>
    %87 = arith.subf %86, %74 : vector<2x16xf32>
    %88 = arith.mulf %87, %80 : vector<2x16xf32>
    %89 = arith.mulf %74, %34 : vector<2x16xf32>
    %90 = arith.addf %88, %89 : vector<2x16xf32>
    %91 = vector.shape_cast %85 : vector<2x1xi1> to vector<2x1xi1>
    %92 = vector.broadcast %91 : vector<2x1xi1> to vector<2x16xi1>
    %93 = arith.select %92, %90, %34 : vector<2x16xi1>, vector<2x16xf32>
    %c0_48 = arith.constant 0 : index
    %c0_49 = arith.constant 0 : index
    %94 = vector.load %arg10[%c0_48, %c0_49] : memref<2x16xf32, #tpu.memory_space<vmem>>, vector<2x16xf32>
    tpu.vector_store %arg10[%c0_48, %c0_49], %93 {strides = array<i32>} : memref<2x16xf32, #tpu.memory_space<vmem>>, vector<2x16xf32>,
    %95 = vector.broadcast %83 : vector<2x1xf32> to vector<2x16xf32>
    %96 = arith.mulf %93, %95 : vector<2x16xf32>
    %c0_50 = arith.constant 0 : index
    %97 = arith.index_cast %33 : i32 to index
    %c0_51 = arith.constant 0 : index
    %c0_52 = arith.constant 0 : index
    %98 = vector.load %arg8[%c0_50, %97, %c0_51, %c0_52] : memref<1x8x2x16xf32, #tpu.memory_space<vmem>>, vector<1x1x2x16xf32>
    %99 = vector.shape_cast %98 : vector<1x1x2x16xf32> to vector<2x16xf32>
    %100 = vector.shape_cast %96 : vector<2x16xf32> to vector<1x1x2x16xf32>
    tpu.vector_store %arg8[%c0_50, %97, %c0_51, %c0_52], %100 {strides = array<i32>} : memref<1x8x2x16xf32, #tpu.memory_space<vmem>>, vector<1x1x2x16xf32>,
    %c1_i32 = arith.constant 1 : i32
    %c2_i32_53 = arith.constant 2 : i32
    %101 = arith.muli %c2_i32_53, %c1_i32 : i32
    %c7_i32_54 = arith.constant 7 : i32
    %102 = arith.subi %c7_i32_54, %101 : i32
    %103 = arith.muli %arg0, %102 : i32
    %104 = arith.addi %c1_i32, %103 : i32
    %c0_55 = arith.constant 0 : index
    %c0_56 = arith.constant 0 : index
    %105 = vector.load %arg10[%c0_55, %c0_56] : memref<2x16xf32, #tpu.memory_space<vmem>>, vector<2x16xf32>
    %106 = arith.truncf %105 : vector<2x16xf32> to vector<2x16xbf16>
    %107 = vector.extract_strided_slice %27 {offsets = [0, 0, 0], sizes = [1, 16, 16], strides = [1, 1, 1]} : vector<3x16x16xbf16> to vector<1x16x16xbf16>
    %108 = vector.shape_cast %107 : vector<1x16x16xbf16> to vector<16x16xbf16>
    %cst_57 = arith.constant dense<0.000000e+00> : vector<2x16xf32>
    %109 = tpu.matmul %106, %108, %cst_57 {dimension_numbers = #tpu.dot_dimension_numbers<[1], [0], [0], [1], [0, 0, 1, 1], [], []>} : vector<2x16xbf16>, vector<16x16xbf16>, vector<2x16xf32> -> vector<2x16xf32>
    %110 = vector.extract_strided_slice %29 {offsets = [0, 0, 0], sizes = [1, 1, 16], strides = [1, 1, 1]} : vector<3x1x16xf32> to vector<1x1x16xf32>
    %111 = vector.shape_cast %110 : vector<1x1x16xf32> to vector<1x16xf32>
    %112 = vector.broadcast %111 : vector<1x16xf32> to vector<2x16xf32>
    %113 = arith.addf %109, %112 : vector<2x16xf32>
    %114 = vector.extract_strided_slice %27 {offsets = [1, 0, 0], sizes = [1, 16, 16], strides = [1, 1, 1]} : vector<3x16x16xbf16> to vector<1x16x16xbf16>
    %115 = vector.shape_cast %114 : vector<1x16x16xbf16> to vector<16x16xbf16>
    %cst_58 = arith.constant dense<0.000000e+00> : vector<2x16xf32>
    %116 = tpu.matmul %106, %115, %cst_58 {dimension_numbers = #tpu.dot_dimension_numbers<[1], [0], [0], [1], [0, 0, 1, 1], [], []>} : vector<2x16xbf16>, vector<16x16xbf16>, vector<2x16xf32> -> vector<2x16xf32>
    %117 = vector.extract_strided_slice %29 {offsets = [1, 0, 0], sizes = [1, 1, 16], strides = [1, 1, 1]} : vector<3x1x16xf32> to vector<1x1x16xf32>
    %118 = vector.shape_cast %117 : vector<1x1x16xf32> to vector<1x16xf32>
    %119 = vector.broadcast %118 : vector<1x16xf32> to vector<2x16xf32>
    %120 = arith.addf %116, %119 : vector<2x16xf32>
    %121 = vector.extract_strided_slice %27 {offsets = [2, 0, 0], sizes = [1, 16, 16], strides = [1, 1, 1]} : vector<3x16x16xbf16> to vector<1x16x16xbf16>
    %122 = vector.shape_cast %121 : vector<1x16x16xbf16> to vector<16x16xbf16>
    %cst_59 = arith.constant dense<0.000000e+00> : vector<2x16xf32>
    %123 = tpu.matmul %106, %122, %cst_59 {dimension_numbers = #tpu.dot_dimension_numbers<[1], [0], [0], [1], [0, 0, 1, 1], [], []>} : vector<2x16xbf16>, vector<16x16xbf16>, vector<2x16xf32> -> vector<2x16xf32>
    %124 = vector.extract_strided_slice %29 {offsets = [2, 0, 0], sizes = [1, 1, 16], strides = [1, 1, 1]} : vector<3x1x16xf32> to vector<1x1x16xf32>
    %125 = vector.shape_cast %124 : vector<1x1x16xf32> to vector<1x16xf32>
    %126 = vector.broadcast %125 : vector<1x16xf32> to vector<2x16xf32>
    %127 = arith.addf %123, %126 : vector<2x16xf32>
    %c0_60 = arith.constant 0 : index
    %128 = arith.index_cast %104 : i32 to index
    %c0_61 = arith.constant 0 : index
    %c0_62 = arith.constant 0 : index
    %129 = vector.load %arg9[%c0_60, %128, %c0_61, %c0_62] : memref<3x8x2x16xf32, #tpu.memory_space<vmem>>, vector<1x1x2x16xf32>
    %130 = vector.shape_cast %129 : vector<1x1x2x16xf32> to vector<2x16xf32>
    %131 = arith.addf %130, %113 : vector<2x16xf32>
    %132 = arith.negf %131 : vector<2x16xf32>
    %133 = math.exp %132 : vector<2x16xf32>
    %cst_63 = arith.constant 1.000000e+00 : f32
    %134 = vector.broadcast %cst_63 : f32 to vector<2x16xf32>
    %135 = arith.addf %134, %133 : vector<2x16xf32>
    %136 = arith.divf %134, %135 : vector<2x16xf32>
    %c1_64 = arith.constant 1 : index
    %137 = arith.index_cast %104 : i32 to index
    %c0_65 = arith.constant 0 : index
    %c0_66 = arith.constant 0 : index
    %138 = vector.load %arg9[%c1_64, %137, %c0_65, %c0_66] : memref<3x8x2x16xf32, #tpu.memory_space<vmem>>, vector<1x1x2x16xf32>
    %139 = vector.shape_cast %138 : vector<1x1x2x16xf32> to vector<2x16xf32>
    %140 = arith.addf %139, %120 : vector<2x16xf32>
    %141 = arith.negf %140 : vector<2x16xf32>
    %142 = math.exp %141 : vector<2x16xf32>
    %cst_67 = arith.constant 1.000000e+00 : f32
    %143 = vector.broadcast %cst_67 : f32 to vector<2x16xf32>
    %144 = arith.addf %143, %142 : vector<2x16xf32>
    %145 = arith.divf %143, %144 : vector<2x16xf32>
    %c2_68 = arith.constant 2 : index
    %146 = arith.index_cast %104 : i32 to index
    %c0_69 = arith.constant 0 : index
    %c0_70 = arith.constant 0 : index
    %147 = vector.load %arg9[%c2_68, %146, %c0_69, %c0_70] : memref<3x8x2x16xf32, #tpu.memory_space<vmem>>, vector<1x1x2x16xf32>
    %148 = vector.shape_cast %147 : vector<1x1x2x16xf32> to vector<2x16xf32>
    %149 = arith.mulf %136, %127 : vector<2x16xf32>
    %150 = arith.addf %148, %149 : vector<2x16xf32>
    %151 = math.tanh %150 : vector<2x16xf32>
    %152 = arith.index_cast %104 : i32 to index
    %c0_71 = arith.constant 0 : index
    %c0_72 = arith.constant 0 : index
    %153 = vector.load %arg3[%152, %c0_71, %c0_72] : memref<8x2x1xf32, #tpu.memory_space<vmem>>, vector<1x2x1xf32>
    %154 = vector.shape_cast %153 : vector<1x2x1xf32> to vector<2x1xf32>
    %cst_73 = arith.constant 0.000000e+00 : f32
    %155 = vector.broadcast %cst_73 : f32 to vector<2x1xf32>
    %156 = arith.cmpf ogt, %154, %155 : vector<2x1xf32>
    %cst_74 = arith.constant 1.000000e+00 : f32
    %157 = vector.broadcast %cst_74 : f32 to vector<2x16xf32>
    %158 = arith.subf %157, %145 : vector<2x16xf32>
    %159 = arith.mulf %158, %151 : vector<2x16xf32>
    %160 = arith.mulf %145, %105 : vector<2x16xf32>
    %161 = arith.addf %159, %160 : vector<2x16xf32>
    %162 = vector.shape_cast %156 : vector<2x1xi1> to vector<2x1xi1>
    %163 = vector.broadcast %162 : vector<2x1xi1> to vector<2x16xi1>
    %164 = arith.select %163, %161, %105 : vector<2x16xi1>, vector<2x16xf32>
    %c0_75 = arith.constant 0 : index
    %c0_76 = arith.constant 0 : index
    %165 = vector.load %arg10[%c0_75, %c0_76] : memref<2x16xf32, #tpu.memory_space<vmem>>, vector<2x16xf32>
    tpu.vector_store %arg10[%c0_75, %c0_76], %164 {strides = array<i32>} : memref<2x16xf32, #tpu.memory_space<vmem>>, vector<2x16xf32>,
    %166 = vector.broadcast %154 : vector<2x1xf32> to vector<2x16xf32>
    %167 = arith.mulf %164, %166 : vector<2x16xf32>
    %c0_77 = arith.constant 0 : index
    %168 = arith.index_cast %104 : i32 to index
    %c0_78 = arith.constant 0 : index
    %c0_79 = arith.constant 0 : index
    %169 = vector.load %arg8[%c0_77, %168, %c0_78, %c0_79] : memref<1x8x2x16xf32, #tpu.memory_space<vmem>>, vector<1x1x2x16xf32>
    %170 = vector.shape_cast %169 : vector<1x1x2x16xf32> to vector<2x16xf32>
    %171 = vector.shape_cast %167 : vector<2x16xf32> to vector<1x1x2x16xf32>
    tpu.vector_store %arg8[%c0_77, %168, %c0_78, %c0_79], %171 {strides = array<i32>} : memref<1x8x2x16xf32, #tpu.memory_space<vmem>>, vector<1x1x2x16xf32>,
    %c2_i32_80 = arith.constant 2 : i32
    %c2_i32_81 = arith.constant 2 : i32
    %172 = arith.muli %c2_i32_81, %c2_i32_80 : i32
    %c7_i32_82 = arith.constant 7 : i32
    %173 = arith.subi %c7_i32_82, %172 : i32
    %174 = arith.muli %arg0, %173 : i32
    %175 = arith.addi %c2_i32_80, %174 : i32
    %c0_83 = arith.constant 0 : index
    %c0_84 = arith.constant 0 : index
    %176 = vector.load %arg10[%c0_83, %c0_84] : memref<2x16xf32, #tpu.memory_space<vmem>>, vector<2x16xf32>
    %177 = arith.truncf %176 : vector<2x16xf32> to vector<2x16xbf16>
    %178 = vector.extract_strided_slice %27 {offsets = [0, 0, 0], sizes = [1, 16, 16], strides = [1, 1, 1]} : vector<3x16x16xbf16> to vector<1x16x16xbf16>
    %179 = vector.shape_cast %178 : vector<1x16x16xbf16> to vector<16x16xbf16>
    %cst_85 = arith.constant dense<0.000000e+00> : vector<2x16xf32>
    %180 = tpu.matmul %177, %179, %cst_85 {dimension_numbers = #tpu.dot_dimension_numbers<[1], [0], [0], [1], [0, 0, 1, 1], [], []>} : vector<2x16xbf16>, vector<16x16xbf16>, vector<2x16xf32> -> vector<2x16xf32>
    %181 = vector.extract_strided_slice %29 {offsets = [0, 0, 0], sizes = [1, 1, 16], strides = [1, 1, 1]} : vector<3x1x16xf32> to vector<1x1x16xf32>
    %182 = vector.shape_cast %181 : vector<1x1x16xf32> to vector<1x16xf32>
    %183 = vector.broadcast %182 : vector<1x16xf32> to vector<2x16xf32>
    %184 = arith.addf %180, %183 : vector<2x16xf32>
    %185 = vector.extract_strided_slice %27 {offsets = [1, 0, 0], sizes = [1, 16, 16], strides = [1, 1, 1]} : vector<3x16x16xbf16> to vector<1x16x16xbf16>
    %186 = vector.shape_cast %185 : vector<1x16x16xbf16> to vector<16x16xbf16>
    %cst_86 = arith.constant dense<0.000000e+00> : vector<2x16xf32>
    %187 = tpu.matmul %177, %186, %cst_86 {dimension_numbers = #tpu.dot_dimension_numbers<[1], [0], [0], [1], [0, 0, 1, 1], [], []>} : vector<2x16xbf16>, vector<16x16xbf16>, vector<2x16xf32> -> vector<2x16xf32>
    %188 = vector.extract_strided_slice %29 {offsets = [1, 0, 0], sizes = [1, 1, 16], strides = [1, 1, 1]} : vector<3x1x16xf32> to vector<1x1x16xf32>
    %189 = vector.shape_cast %188 : vector<1x1x16xf32> to vector<1x16xf32>
    %190 = vector.broadcast %189 : vector<1x16xf32> to vector<2x16xf32>
    %191 = arith.addf %187, %190 : vector<2x16xf32>
    %192 = vector.extract_strided_slice %27 {offsets = [2, 0, 0], sizes = [1, 16, 16], strides = [1, 1, 1]} : vector<3x16x16xbf16> to vector<1x16x16xbf16>
    %193 = vector.shape_cast %192 : vector<1x16x16xbf16> to vector<16x16xbf16>
    %cst_87 = arith.constant dense<0.000000e+00> : vector<2x16xf32>
    %194 = tpu.matmul %177, %193, %cst_87 {dimension_numbers = #tpu.dot_dimension_numbers<[1], [0], [0], [1], [0, 0, 1, 1], [], []>} : vector<2x16xbf16>, vector<16x16xbf16>, vector<2x16xf32> -> vector<2x16xf32>
    %195 = vector.extract_strided_slice %29 {offsets = [2, 0, 0], sizes = [1, 1, 16], strides = [1, 1, 1]} : vector<3x1x16xf32> to vector<1x1x16xf32>
    %196 = vector.shape_cast %195 : vector<1x1x16xf32> to vector<1x16xf32>
    %197 = vector.broadcast %196 : vector<1x16xf32> to vector<2x16xf32>
    %198 = arith.addf %194, %197 : vector<2x16xf32>
    %c0_88 = arith.constant 0 : index
    %199 = arith.index_cast %175 : i32 to index
    %c0_89 = arith.constant 0 : index
    %c0_90 = arith.constant 0 : index
    %200 = vector.load %arg9[%c0_88, %199, %c0_89, %c0_90] : memref<3x8x2x16xf32, #tpu.memory_space<vmem>>, vector<1x1x2x16xf32>
    %201 = vector.shape_cast %200 : vector<1x1x2x16xf32> to vector<2x16xf32>
    %202 = arith.addf %201, %184 : vector<2x16xf32>
    %203 = arith.negf %202 : vector<2x16xf32>
    %204 = math.exp %203 : vector<2x16xf32>
    %cst_91 = arith.constant 1.000000e+00 : f32
    %205 = vector.broadcast %cst_91 : f32 to vector<2x16xf32>
    %206 = arith.addf %205, %204 : vector<2x16xf32>
    %207 = arith.divf %205, %206 : vector<2x16xf32>
    %c1_92 = arith.constant 1 : index
    %208 = arith.index_cast %175 : i32 to index
    %c0_93 = arith.constant 0 : index
    %c0_94 = arith.constant 0 : index
    %209 = vector.load %arg9[%c1_92, %208, %c0_93, %c0_94] : memref<3x8x2x16xf32, #tpu.memory_space<vmem>>, vector<1x1x2x16xf32>
    %210 = vector.shape_cast %209 : vector<1x1x2x16xf32> to vector<2x16xf32>
    %211 = arith.addf %210, %191 : vector<2x16xf32>
    %212 = arith.negf %211 : vector<2x16xf32>
    %213 = math.exp %212 : vector<2x16xf32>
    %cst_95 = arith.constant 1.000000e+00 : f32
    %214 = vector.broadcast %cst_95 : f32 to vector<2x16xf32>
    %215 = arith.addf %214, %213 : vector<2x16xf32>
    %216 = arith.divf %214, %215 : vector<2x16xf32>
    %c2_96 = arith.constant 2 : index
    %217 = arith.index_cast %175 : i32 to index
    %c0_97 = arith.constant 0 : index
    %c0_98 = arith.constant 0 : index
    %218 = vector.load %arg9[%c2_96, %217, %c0_97, %c0_98] : memref<3x8x2x16xf32, #tpu.memory_space<vmem>>, vector<1x1x2x16xf32>
    %219 = vector.shape_cast %218 : vector<1x1x2x16xf32> to vector<2x16xf32>
    %220 = arith.mulf %207, %198 : vector<2x16xf32>
    %221 = arith.addf %219, %220 : vector<2x16xf32>
    %222 = math.tanh %221 : vector<2x16xf32>
    %223 = arith.index_cast %175 : i32 to index
    %c0_99 = arith.constant 0 : index
    %c0_100 = arith.constant 0 : index
    %224 = vector.load %arg3[%223, %c0_99, %c0_100] : memref<8x2x1xf32, #tpu.memory_space<vmem>>, vector<1x2x1xf32>
    %225 = vector.shape_cast %224 : vector<1x2x1xf32> to vector<2x1xf32>
    %cst_101 = arith.constant 0.000000e+00 : f32
    %226 = vector.broadcast %cst_101 : f32 to vector<2x1xf32>
    %227 = arith.cmpf ogt, %225, %226 : vector<2x1xf32>
    %cst_102 = arith.constant 1.000000e+00 : f32
    %228 = vector.broadcast %cst_102 : f32 to vector<2x16xf32>
    %229 = arith.subf %228, %216 : vector<2x16xf32>
    %230 = arith.mulf %229, %222 : vector<2x16xf32>
    %231 = arith.mulf %216, %176 : vector<2x16xf32>
    %232 = arith.addf %230, %231 : vector<2x16xf32>
    %233 = vector.shape_cast %227 : vector<2x1xi1> to vector<2x1xi1>
    %234 = vector.broadcast %233 : vector<2x1xi1> to vector<2x16xi1>
    %235 = arith.select %234, %232, %176 : vector<2x16xi1>, vector<2x16xf32>
    %c0_103 = arith.constant 0 : index
    %c0_104 = arith.constant 0 : index
    %236 = vector.load %arg10[%c0_103, %c0_104] : memref<2x16xf32, #tpu.memory_space<vmem>>, vector<2x16xf32>
    tpu.vector_store %arg10[%c0_103, %c0_104], %235 {strides = array<i32>} : memref<2x16xf32, #tpu.memory_space<vmem>>, vector<2x16xf32>,
    %237 = vector.broadcast %225 : vector<2x1xf32> to vector<2x16xf32>
    %238 = arith.mulf %235, %237 : vector<2x16xf32>
    %c0_105 = arith.constant 0 : index
    %239 = arith.index_cast %175 : i32 to index
    %c0_106 = arith.constant 0 : index
    %c0_107 = arith.constant 0 : index
    %240 = vector.load %arg8[%c0_105, %239, %c0_106, %c0_107] : memref<1x8x2x16xf32, #tpu.memory_space<vmem>>, vector<1x1x2x16xf32>
    %241 = vector.shape_cast %240 : vector<1x1x2x16xf32> to vector<2x16xf32>
    %242 = vector.shape_cast %238 : vector<2x16xf32> to vector<1x1x2x16xf32>
    tpu.vector_store %arg8[%c0_105, %239, %c0_106, %c0_107], %242 {strides = array<i32>} : memref<1x8x2x16xf32, #tpu.memory_space<vmem>>, vector<1x1x2x16xf32>,
    %c3_i32 = arith.constant 3 : i32
    %c2_i32_108 = arith.constant 2 : i32
    %243 = arith.muli %c2_i32_108, %c3_i32 : i32
    %c7_i32_109 = arith.constant 7 : i32
    %244 = arith.subi %c7_i32_109, %243 : i32
    %245 = arith.muli %arg0, %244 : i32
    %246 = arith.addi %c3_i32, %245 : i32
    %c0_110 = arith.constant 0 : index
    %c0_111 = arith.constant 0 : index
    %247 = vector.load %arg10[%c0_110, %c0_111] : memref<2x16xf32, #tpu.memory_space<vmem>>, vector<2x16xf32>
    %248 = arith.truncf %247 : vector<2x16xf32> to vector<2x16xbf16>
    %249 = vector.extract_strided_slice %27 {offsets = [0, 0, 0], sizes = [1, 16, 16], strides = [1, 1, 1]} : vector<3x16x16xbf16> to vector<1x16x16xbf16>
    %250 = vector.shape_cast %249 : vector<1x16x16xbf16> to vector<16x16xbf16>
    %cst_112 = arith.constant dense<0.000000e+00> : vector<2x16xf32>
    %251 = tpu.matmul %248, %250, %cst_112 {dimension_numbers = #tpu.dot_dimension_numbers<[1], [0], [0], [1], [0, 0, 1, 1], [], []>} : vector<2x16xbf16>, vector<16x16xbf16>, vector<2x16xf32> -> vector<2x16xf32>
    %252 = vector.extract_strided_slice %29 {offsets = [0, 0, 0], sizes = [1, 1, 16], strides = [1, 1, 1]} : vector<3x1x16xf32> to vector<1x1x16xf32>
    %253 = vector.shape_cast %252 : vector<1x1x16xf32> to vector<1x16xf32>
    %254 = vector.broadcast %253 : vector<1x16xf32> to vector<2x16xf32>
    %255 = arith.addf %251, %254 : vector<2x16xf32>
    %256 = vector.extract_strided_slice %27 {offsets = [1, 0, 0], sizes = [1, 16, 16], strides = [1, 1, 1]} : vector<3x16x16xbf16> to vector<1x16x16xbf16>
    %257 = vector.shape_cast %256 : vector<1x16x16xbf16> to vector<16x16xbf16>
    %cst_113 = arith.constant dense<0.000000e+00> : vector<2x16xf32>
    %258 = tpu.matmul %248, %257, %cst_113 {dimension_numbers = #tpu.dot_dimension_numbers<[1], [0], [0], [1], [0, 0, 1, 1], [], []>} : vector<2x16xbf16>, vector<16x16xbf16>, vector<2x16xf32> -> vector<2x16xf32>
    %259 = vector.extract_strided_slice %29 {offsets = [1, 0, 0], sizes = [1, 1, 16], strides = [1, 1, 1]} : vector<3x1x16xf32> to vector<1x1x16xf32>
    %260 = vector.shape_cast %259 : vector<1x1x16xf32> to vector<1x16xf32>
    %261 = vector.broadcast %260 : vector<1x16xf32> to vector<2x16xf32>
    %262 = arith.addf %258, %261 : vector<2x16xf32>
    %263 = vector.extract_strided_slice %27 {offsets = [2, 0, 0], sizes = [1, 16, 16], strides = [1, 1, 1]} : vector<3x16x16xbf16> to vector<1x16x16xbf16>
    %264 = vector.shape_cast %263 : vector<1x16x16xbf16> to vector<16x16xbf16>
    %cst_114 = arith.constant dense<0.000000e+00> : vector<2x16xf32>
    %265 = tpu.matmul %248, %264, %cst_114 {dimension_numbers = #tpu.dot_dimension_numbers<[1], [0], [0], [1], [0, 0, 1, 1], [], []>} : vector<2x16xbf16>, vector<16x16xbf16>, vector<2x16xf32> -> vector<2x16xf32>
    %266 = vector.extract_strided_slice %29 {offsets = [2, 0, 0], sizes = [1, 1, 16], strides = [1, 1, 1]} : vector<3x1x16xf32> to vector<1x1x16xf32>
    %267 = vector.shape_cast %266 : vector<1x1x16xf32> to vector<1x16xf32>
    %268 = vector.broadcast %267 : vector<1x16xf32> to vector<2x16xf32>
    %269 = arith.addf %265, %268 : vector<2x16xf32>
    %c0_115 = arith.constant 0 : index
    %270 = arith.index_cast %246 : i32 to index
    %c0_116 = arith.constant 0 : index
    %c0_117 = arith.constant 0 : index
    %271 = vector.load %arg9[%c0_115, %270, %c0_116, %c0_117] : memref<3x8x2x16xf32, #tpu.memory_space<vmem>>, vector<1x1x2x16xf32>
    %272 = vector.shape_cast %271 : vector<1x1x2x16xf32> to vector<2x16xf32>
    %273 = arith.addf %272, %255 : vector<2x16xf32>
    %274 = arith.negf %273 : vector<2x16xf32>
    %275 = math.exp %274 : vector<2x16xf32>
    %cst_118 = arith.constant 1.000000e+00 : f32
    %276 = vector.broadcast %cst_118 : f32 to vector<2x16xf32>
    %277 = arith.addf %276, %275 : vector<2x16xf32>
    %278 = arith.divf %276, %277 : vector<2x16xf32>
    %c1_119 = arith.constant 1 : index
    %279 = arith.index_cast %246 : i32 to index
    %c0_120 = arith.constant 0 : index
    %c0_121 = arith.constant 0 : index
    %280 = vector.load %arg9[%c1_119, %279, %c0_120, %c0_121] : memref<3x8x2x16xf32, #tpu.memory_space<vmem>>, vector<1x1x2x16xf32>
    %281 = vector.shape_cast %280 : vector<1x1x2x16xf32> to vector<2x16xf32>
    %282 = arith.addf %281, %262 : vector<2x16xf32>
    %283 = arith.negf %282 : vector<2x16xf32>
    %284 = math.exp %283 : vector<2x16xf32>
    %cst_122 = arith.constant 1.000000e+00 : f32
    %285 = vector.broadcast %cst_122 : f32 to vector<2x16xf32>
    %286 = arith.addf %285, %284 : vector<2x16xf32>
    %287 = arith.divf %285, %286 : vector<2x16xf32>
    %c2_123 = arith.constant 2 : index
    %288 = arith.index_cast %246 : i32 to index
    %c0_124 = arith.constant 0 : index
    %c0_125 = arith.constant 0 : index
    %289 = vector.load %arg9[%c2_123, %288, %c0_124, %c0_125] : memref<3x8x2x16xf32, #tpu.memory_space<vmem>>, vector<1x1x2x16xf32>
    %290 = vector.shape_cast %289 : vector<1x1x2x16xf32> to vector<2x16xf32>
    %291 = arith.mulf %278, %269 : vector<2x16xf32>
    %292 = arith.addf %290, %291 : vector<2x16xf32>
    %293 = math.tanh %292 : vector<2x16xf32>
    %294 = arith.index_cast %246 : i32 to index
    %c0_126 = arith.constant 0 : index
    %c0_127 = arith.constant 0 : index
    %295 = vector.load %arg3[%294, %c0_126, %c0_127] : memref<8x2x1xf32, #tpu.memory_space<vmem>>, vector<1x2x1xf32>
    %296 = vector.shape_cast %295 : vector<1x2x1xf32> to vector<2x1xf32>
    %cst_128 = arith.constant 0.000000e+00 : f32
    %297 = vector.broadcast %cst_128 : f32 to vector<2x1xf32>
    %298 = arith.cmpf ogt, %296, %297 : vector<2x1xf32>
    %cst_129 = arith.constant 1.000000e+00 : f32
    %299 = vector.broadcast %cst_129 : f32 to vector<2x16xf32>
    %300 = arith.subf %299, %287 : vector<2x16xf32>
    %301 = arith.mulf %300, %293 : vector<2x16xf32>
    %302 = arith.mulf %287, %247 : vector<2x16xf32>
    %303 = arith.addf %301, %302 : vector<2x16xf32>
    %304 = vector.shape_cast %298 : vector<2x1xi1> to vector<2x1xi1>
    %305 = vector.broadcast %304 : vector<2x1xi1> to vector<2x16xi1>
    %306 = arith.select %305, %303, %247 : vector<2x16xi1>, vector<2x16xf32>
    %c0_130 = arith.constant 0 : index
    %c0_131 = arith.constant 0 : index
    %307 = vector.load %arg10[%c0_130, %c0_131] : memref<2x16xf32, #tpu.memory_space<vmem>>, vector<2x16xf32>
    tpu.vector_store %arg10[%c0_130, %c0_131], %306 {strides = array<i32>} : memref<2x16xf32, #tpu.memory_space<vmem>>, vector<2x16xf32>,
    %308 = vector.broadcast %296 : vector<2x1xf32> to vector<2x16xf32>
    %309 = arith.mulf %306, %308 : vector<2x16xf32>
    %c0_132 = arith.constant 0 : index
    %310 = arith.index_cast %246 : i32 to index
    %c0_133 = arith.constant 0 : index
    %c0_134 = arith.constant 0 : index
    %311 = vector.load %arg8[%c0_132, %310, %c0_133, %c0_134] : memref<1x8x2x16xf32, #tpu.memory_space<vmem>>, vector<1x1x2x16xf32>
    %312 = vector.shape_cast %311 : vector<1x1x2x16xf32> to vector<2x16xf32>
    %313 = vector.shape_cast %309 : vector<2x16xf32> to vector<1x1x2x16xf32>
    tpu.vector_store %arg8[%c0_132, %310, %c0_133, %c0_134], %313 {strides = array<i32>} : memref<1x8x2x16xf32, #tpu.memory_space<vmem>>, vector<1x1x2x16xf32>,
    %c4_i32 = arith.constant 4 : i32
    %c2_i32_135 = arith.constant 2 : i32
    %314 = arith.muli %c2_i32_135, %c4_i32 : i32
    %c7_i32_136 = arith.constant 7 : i32
    %315 = arith.subi %c7_i32_136, %314 : i32
    %316 = arith.muli %arg0, %315 : i32
    %317 = arith.addi %c4_i32, %316 : i32
    %c0_137 = arith.constant 0 : index
    %c0_138 = arith.constant 0 : index
    %318 = vector.load %arg10[%c0_137, %c0_138] : memref<2x16xf32, #tpu.memory_space<vmem>>, vector<2x16xf32>
    %319 = arith.truncf %318 : vector<2x16xf32> to vector<2x16xbf16>
    %320 = vector.extract_strided_slice %27 {offsets = [0, 0, 0], sizes = [1, 16, 16], strides = [1, 1, 1]} : vector<3x16x16xbf16> to vector<1x16x16xbf16>
    %321 = vector.shape_cast %320 : vector<1x16x16xbf16> to vector<16x16xbf16>
    %cst_139 = arith.constant dense<0.000000e+00> : vector<2x16xf32>
    %322 = tpu.matmul %319, %321, %cst_139 {dimension_numbers = #tpu.dot_dimension_numbers<[1], [0], [0], [1], [0, 0, 1, 1], [], []>} : vector<2x16xbf16>, vector<16x16xbf16>, vector<2x16xf32> -> vector<2x16xf32>
    %323 = vector.extract_strided_slice %29 {offsets = [0, 0, 0], sizes = [1, 1, 16], strides = [1, 1, 1]} : vector<3x1x16xf32> to vector<1x1x16xf32>
    %324 = vector.shape_cast %323 : vector<1x1x16xf32> to vector<1x16xf32>
    %325 = vector.broadcast %324 : vector<1x16xf32> to vector<2x16xf32>
    %326 = arith.addf %322, %325 : vector<2x16xf32>
    %327 = vector.extract_strided_slice %27 {offsets = [1, 0, 0], sizes = [1, 16, 16], strides = [1, 1, 1]} : vector<3x16x16xbf16> to vector<1x16x16xbf16>
    %328 = vector.shape_cast %327 : vector<1x16x16xbf16> to vector<16x16xbf16>
    %cst_140 = arith.constant dense<0.000000e+00> : vector<2x16xf32>
    %329 = tpu.matmul %319, %328, %cst_140 {dimension_numbers = #tpu.dot_dimension_numbers<[1], [0], [0], [1], [0, 0, 1, 1], [], []>} : vector<2x16xbf16>, vector<16x16xbf16>, vector<2x16xf32> -> vector<2x16xf32>
    %330 = vector.extract_strided_slice %29 {offsets = [1, 0, 0], sizes = [1, 1, 16], strides = [1, 1, 1]} : vector<3x1x16xf32> to vector<1x1x16xf32>
    %331 = vector.shape_cast %330 : vector<1x1x16xf32> to vector<1x16xf32>
    %332 = vector.broadcast %331 : vector<1x16xf32> to vector<2x16xf32>
    %333 = arith.addf %329, %332 : vector<2x16xf32>
    %334 = vector.extract_strided_slice %27 {offsets = [2, 0, 0], sizes = [1, 16, 16], strides = [1, 1, 1]} : vector<3x16x16xbf16> to vector<1x16x16xbf16>
    %335 = vector.shape_cast %334 : vector<1x16x16xbf16> to vector<16x16xbf16>
    %cst_141 = arith.constant dense<0.000000e+00> : vector<2x16xf32>
    %336 = tpu.matmul %319, %335, %cst_141 {dimension_numbers = #tpu.dot_dimension_numbers<[1], [0], [0], [1], [0, 0, 1, 1], [], []>} : vector<2x16xbf16>, vector<16x16xbf16>, vector<2x16xf32> -> vector<2x16xf32>
    %337 = vector.extract_strided_slice %29 {offsets = [2, 0, 0], sizes = [1, 1, 16], strides = [1, 1, 1]} : vector<3x1x16xf32> to vector<1x1x16xf32>
    %338 = vector.shape_cast %337 : vector<1x1x16xf32> to vector<1x16xf32>
    %339 = vector.broadcast %338 : vector<1x16xf32> to vector<2x16xf32>
    %340 = arith.addf %336, %339 : vector<2x16xf32>
    %c0_142 = arith.constant 0 : index
    %341 = arith.index_cast %317 : i32 to index
    %c0_143 = arith.constant 0 : index
    %c0_144 = arith.constant 0 : index
    %342 = vector.load %arg9[%c0_142, %341, %c0_143, %c0_144] : memref<3x8x2x16xf32, #tpu.memory_space<vmem>>, vector<1x1x2x16xf32>
    %343 = vector.shape_cast %342 : vector<1x1x2x16xf32> to vector<2x16xf32>
    %344 = arith.addf %343, %326 : vector<2x16xf32>
    %345 = arith.negf %344 : vector<2x16xf32>
    %346 = math.exp %345 : vector<2x16xf32>
    %cst_145 = arith.constant 1.000000e+00 : f32
    %347 = vector.broadcast %cst_145 : f32 to vector<2x16xf32>
    %348 = arith.addf %347, %346 : vector<2x16xf32>
    %349 = arith.divf %347, %348 : vector<2x16xf32>
    %c1_146 = arith.constant 1 : index
    %350 = arith.index_cast %317 : i32 to index
    %c0_147 = arith.constant 0 : index
    %c0_148 = arith.constant 0 : index
    %351 = vector.load %arg9[%c1_146, %350, %c0_147, %c0_148] : memref<3x8x2x16xf32, #tpu.memory_space<vmem>>, vector<1x1x2x16xf32>
    %352 = vector.shape_cast %351 : vector<1x1x2x16xf32> to vector<2x16xf32>
    %353 = arith.addf %352, %333 : vector<2x16xf32>
    %354 = arith.negf %353 : vector<2x16xf32>
    %355 = math.exp %354 : vector<2x16xf32>
    %cst_149 = arith.constant 1.000000e+00 : f32
    %356 = vector.broadcast %cst_149 : f32 to vector<2x16xf32>
    %357 = arith.addf %356, %355 : vector<2x16xf32>
    %358 = arith.divf %356, %357 : vector<2x16xf32>
    %c2_150 = arith.constant 2 : index
    %359 = arith.index_cast %317 : i32 to index
    %c0_151 = arith.constant 0 : index
    %c0_152 = arith.constant 0 : index
    %360 = vector.load %arg9[%c2_150, %359, %c0_151, %c0_152] : memref<3x8x2x16xf32, #tpu.memory_space<vmem>>, vector<1x1x2x16xf32>
    %361 = vector.shape_cast %360 : vector<1x1x2x16xf32> to vector<2x16xf32>
    %362 = arith.mulf %349, %340 : vector<2x16xf32>
    %363 = arith.addf %361, %362 : vector<2x16xf32>
    %364 = math.tanh %363 : vector<2x16xf32>
    %365 = arith.index_cast %317 : i32 to index
    %c0_153 = arith.constant 0 : index
    %c0_154 = arith.constant 0 : index
    %366 = vector.load %arg3[%365, %c0_153, %c0_154] : memref<8x2x1xf32, #tpu.memory_space<vmem>>, vector<1x2x1xf32>
    %367 = vector.shape_cast %366 : vector<1x2x1xf32> to vector<2x1xf32>
    %cst_155 = arith.constant 0.000000e+00 : f32
    %368 = vector.broadcast %cst_155 : f32 to vector<2x1xf32>
    %369 = arith.cmpf ogt, %367, %368 : vector<2x1xf32>
    %cst_156 = arith.constant 1.000000e+00 : f32
    %370 = vector.broadcast %cst_156 : f32 to vector<2x16xf32>
    %371 = arith.subf %370, %358 : vector<2x16xf32>
    %372 = arith.mulf %371, %364 : vector<2x16xf32>
    %373 = arith.mulf %358, %318 : vector<2x16xf32>
    %374 = arith.addf %372, %373 : vector<2x16xf32>
    %375 = vector.shape_cast %369 : vector<2x1xi1> to vector<2x1xi1>
    %376 = vector.broadcast %375 : vector<2x1xi1> to vector<2x16xi1>
    %377 = arith.select %376, %374, %318 : vector<2x16xi1>, vector<2x16xf32>
    %c0_157 = arith.constant 0 : index
    %c0_158 = arith.constant 0 : index
    %378 = vector.load %arg10[%c0_157, %c0_158] : memref<2x16xf32, #tpu.memory_space<vmem>>, vector<2x16xf32>
    tpu.vector_store %arg10[%c0_157, %c0_158], %377 {strides = array<i32>} : memref<2x16xf32, #tpu.memory_space<vmem>>, vector<2x16xf32>,
    %379 = vector.broadcast %367 : vector<2x1xf32> to vector<2x16xf32>
    %380 = arith.mulf %377, %379 : vector<2x16xf32>
    %c0_159 = arith.constant 0 : index
    %381 = arith.index_cast %317 : i32 to index
    %c0_160 = arith.constant 0 : index
    %c0_161 = arith.constant 0 : index
    %382 = vector.load %arg8[%c0_159, %381, %c0_160, %c0_161] : memref<1x8x2x16xf32, #tpu.memory_space<vmem>>, vector<1x1x2x16xf32>
    %383 = vector.shape_cast %382 : vector<1x1x2x16xf32> to vector<2x16xf32>
    %384 = vector.shape_cast %380 : vector<2x16xf32> to vector<1x1x2x16xf32>
    tpu.vector_store %arg8[%c0_159, %381, %c0_160, %c0_161], %384 {strides = array<i32>} : memref<1x8x2x16xf32, #tpu.memory_space<vmem>>, vector<1x1x2x16xf32>,
    %c5_i32 = arith.constant 5 : i32
    %c2_i32_162 = arith.constant 2 : i32
    %385 = arith.muli %c2_i32_162, %c5_i32 : i32
    %c7_i32_163 = arith.constant 7 : i32
    %386 = arith.subi %c7_i32_163, %385 : i32
    %387 = arith.muli %arg0, %386 : i32
    %388 = arith.addi %c5_i32, %387 : i32
    %c0_164 = arith.constant 0 : index
    %c0_165 = arith.constant 0 : index
    %389 = vector.load %arg10[%c0_164, %c0_165] : memref<2x16xf32, #tpu.memory_space<vmem>>, vector<2x16xf32>
    %390 = arith.truncf %389 : vector<2x16xf32> to vector<2x16xbf16>
    %391 = vector.extract_strided_slice %27 {offsets = [0, 0, 0], sizes = [1, 16, 16], strides = [1, 1, 1]} : vector<3x16x16xbf16> to vector<1x16x16xbf16>
    %392 = vector.shape_cast %391 : vector<1x16x16xbf16> to vector<16x16xbf16>
    %cst_166 = arith.constant dense<0.000000e+00> : vector<2x16xf32>
    %393 = tpu.matmul %390, %392, %cst_166 {dimension_numbers = #tpu.dot_dimension_numbers<[1], [0], [0], [1], [0, 0, 1, 1], [], []>} : vector<2x16xbf16>, vector<16x16xbf16>, vector<2x16xf32> -> vector<2x16xf32>
    %394 = vector.extract_strided_slice %29 {offsets = [0, 0, 0], sizes = [1, 1, 16], strides = [1, 1, 1]} : vector<3x1x16xf32> to vector<1x1x16xf32>
    %395 = vector.shape_cast %394 : vector<1x1x16xf32> to vector<1x16xf32>
    %396 = vector.broadcast %395 : vector<1x16xf32> to vector<2x16xf32>
    %397 = arith.addf %393, %396 : vector<2x16xf32>
    %398 = vector.extract_strided_slice %27 {offsets = [1, 0, 0], sizes = [1, 16, 16], strides = [1, 1, 1]} : vector<3x16x16xbf16> to vector<1x16x16xbf16>
    %399 = vector.shape_cast %398 : vector<1x16x16xbf16> to vector<16x16xbf16>
    %cst_167 = arith.constant dense<0.000000e+00> : vector<2x16xf32>
    %400 = tpu.matmul %390, %399, %cst_167 {dimension_numbers = #tpu.dot_dimension_numbers<[1], [0], [0], [1], [0, 0, 1, 1], [], []>} : vector<2x16xbf16>, vector<16x16xbf16>, vector<2x16xf32> -> vector<2x16xf32>
    %401 = vector.extract_strided_slice %29 {offsets = [1, 0, 0], sizes = [1, 1, 16], strides = [1, 1, 1]} : vector<3x1x16xf32> to vector<1x1x16xf32>
    %402 = vector.shape_cast %401 : vector<1x1x16xf32> to vector<1x16xf32>
    %403 = vector.broadcast %402 : vector<1x16xf32> to vector<2x16xf32>
    %404 = arith.addf %400, %403 : vector<2x16xf32>
    %405 = vector.extract_strided_slice %27 {offsets = [2, 0, 0], sizes = [1, 16, 16], strides = [1, 1, 1]} : vector<3x16x16xbf16> to vector<1x16x16xbf16>
    %406 = vector.shape_cast %405 : vector<1x16x16xbf16> to vector<16x16xbf16>
    %cst_168 = arith.constant dense<0.000000e+00> : vector<2x16xf32>
    %407 = tpu.matmul %390, %406, %cst_168 {dimension_numbers = #tpu.dot_dimension_numbers<[1], [0], [0], [1], [0, 0, 1, 1], [], []>} : vector<2x16xbf16>, vector<16x16xbf16>, vector<2x16xf32> -> vector<2x16xf32>
    %408 = vector.extract_strided_slice %29 {offsets = [2, 0, 0], sizes = [1, 1, 16], strides = [1, 1, 1]} : vector<3x1x16xf32> to vector<1x1x16xf32>
    %409 = vector.shape_cast %408 : vector<1x1x16xf32> to vector<1x16xf32>
    %410 = vector.broadcast %409 : vector<1x16xf32> to vector<2x16xf32>
    %411 = arith.addf %407, %410 : vector<2x16xf32>
    %c0_169 = arith.constant 0 : index
    %412 = arith.index_cast %388 : i32 to index
    %c0_170 = arith.constant 0 : index
    %c0_171 = arith.constant 0 : index
    %413 = vector.load %arg9[%c0_169, %412, %c0_170, %c0_171] : memref<3x8x2x16xf32, #tpu.memory_space<vmem>>, vector<1x1x2x16xf32>
    %414 = vector.shape_cast %413 : vector<1x1x2x16xf32> to vector<2x16xf32>
    %415 = arith.addf %414, %397 : vector<2x16xf32>
    %416 = arith.negf %415 : vector<2x16xf32>
    %417 = math.exp %416 : vector<2x16xf32>
    %cst_172 = arith.constant 1.000000e+00 : f32
    %418 = vector.broadcast %cst_172 : f32 to vector<2x16xf32>
    %419 = arith.addf %418, %417 : vector<2x16xf32>
    %420 = arith.divf %418, %419 : vector<2x16xf32>
    %c1_173 = arith.constant 1 : index
    %421 = arith.index_cast %388 : i32 to index
    %c0_174 = arith.constant 0 : index
    %c0_175 = arith.constant 0 : index
    %422 = vector.load %arg9[%c1_173, %421, %c0_174, %c0_175] : memref<3x8x2x16xf32, #tpu.memory_space<vmem>>, vector<1x1x2x16xf32>
    %423 = vector.shape_cast %422 : vector<1x1x2x16xf32> to vector<2x16xf32>
    %424 = arith.addf %423, %404 : vector<2x16xf32>
    %425 = arith.negf %424 : vector<2x16xf32>
    %426 = math.exp %425 : vector<2x16xf32>
    %cst_176 = arith.constant 1.000000e+00 : f32
    %427 = vector.broadcast %cst_176 : f32 to vector<2x16xf32>
    %428 = arith.addf %427, %426 : vector<2x16xf32>
    %429 = arith.divf %427, %428 : vector<2x16xf32>
    %c2_177 = arith.constant 2 : index
    %430 = arith.index_cast %388 : i32 to index
    %c0_178 = arith.constant 0 : index
    %c0_179 = arith.constant 0 : index
    %431 = vector.load %arg9[%c2_177, %430, %c0_178, %c0_179] : memref<3x8x2x16xf32, #tpu.memory_space<vmem>>, vector<1x1x2x16xf32>
    %432 = vector.shape_cast %431 : vector<1x1x2x16xf32> to vector<2x16xf32>
    %433 = arith.mulf %420, %411 : vector<2x16xf32>
    %434 = arith.addf %432, %433 : vector<2x16xf32>
    %435 = math.tanh %434 : vector<2x16xf32>
    %436 = arith.index_cast %388 : i32 to index
    %c0_180 = arith.constant 0 : index
    %c0_181 = arith.constant 0 : index
    %437 = vector.load %arg3[%436, %c0_180, %c0_181] : memref<8x2x1xf32, #tpu.memory_space<vmem>>, vector<1x2x1xf32>
    %438 = vector.shape_cast %437 : vector<1x2x1xf32> to vector<2x1xf32>
    %cst_182 = arith.constant 0.000000e+00 : f32
    %439 = vector.broadcast %cst_182 : f32 to vector<2x1xf32>
    %440 = arith.cmpf ogt, %438, %439 : vector<2x1xf32>
    %cst_183 = arith.constant 1.000000e+00 : f32
    %441 = vector.broadcast %cst_183 : f32 to vector<2x16xf32>
    %442 = arith.subf %441, %429 : vector<2x16xf32>
    %443 = arith.mulf %442, %435 : vector<2x16xf32>
    %444 = arith.mulf %429, %389 : vector<2x16xf32>
    %445 = arith.addf %443, %444 : vector<2x16xf32>
    %446 = vector.shape_cast %440 : vector<2x1xi1> to vector<2x1xi1>
    %447 = vector.broadcast %446 : vector<2x1xi1> to vector<2x16xi1>
    %448 = arith.select %447, %445, %389 : vector<2x16xi1>, vector<2x16xf32>
    %c0_184 = arith.constant 0 : index
    %c0_185 = arith.constant 0 : index
    %449 = vector.load %arg10[%c0_184, %c0_185] : memref<2x16xf32, #tpu.memory_space<vmem>>, vector<2x16xf32>
    tpu.vector_store %arg10[%c0_184, %c0_185], %448 {strides = array<i32>} : memref<2x16xf32, #tpu.memory_space<vmem>>, vector<2x16xf32>,
    %450 = vector.broadcast %438 : vector<2x1xf32> to vector<2x16xf32>
    %451 = arith.mulf %448, %450 : vector<2x16xf32>
    %c0_186 = arith.constant 0 : index
    %452 = arith.index_cast %388 : i32 to index
    %c0_187 = arith.constant 0 : index
    %c0_188 = arith.constant 0 : index
    %453 = vector.load %arg8[%c0_186, %452, %c0_187, %c0_188] : memref<1x8x2x16xf32, #tpu.memory_space<vmem>>, vector<1x1x2x16xf32>
    %454 = vector.shape_cast %453 : vector<1x1x2x16xf32> to vector<2x16xf32>
    %455 = vector.shape_cast %451 : vector<2x16xf32> to vector<1x1x2x16xf32>
    tpu.vector_store %arg8[%c0_186, %452, %c0_187, %c0_188], %455 {strides = array<i32>} : memref<1x8x2x16xf32, #tpu.memory_space<vmem>>, vector<1x1x2x16xf32>,
    %c6_i32 = arith.constant 6 : i32
    %c2_i32_189 = arith.constant 2 : i32
    %456 = arith.muli %c2_i32_189, %c6_i32 : i32
    %c7_i32_190 = arith.constant 7 : i32
    %457 = arith.subi %c7_i32_190, %456 : i32
    %458 = arith.muli %arg0, %457 : i32
    %459 = arith.addi %c6_i32, %458 : i32
    %c0_191 = arith.constant 0 : index
    %c0_192 = arith.constant 0 : index
    %460 = vector.load %arg10[%c0_191, %c0_192] : memref<2x16xf32, #tpu.memory_space<vmem>>, vector<2x16xf32>
    %461 = arith.truncf %460 : vector<2x16xf32> to vector<2x16xbf16>
    %462 = vector.extract_strided_slice %27 {offsets = [0, 0, 0], sizes = [1, 16, 16], strides = [1, 1, 1]} : vector<3x16x16xbf16> to vector<1x16x16xbf16>
    %463 = vector.shape_cast %462 : vector<1x16x16xbf16> to vector<16x16xbf16>
    %cst_193 = arith.constant dense<0.000000e+00> : vector<2x16xf32>
    %464 = tpu.matmul %461, %463, %cst_193 {dimension_numbers = #tpu.dot_dimension_numbers<[1], [0], [0], [1], [0, 0, 1, 1], [], []>} : vector<2x16xbf16>, vector<16x16xbf16>, vector<2x16xf32> -> vector<2x16xf32>
    %465 = vector.extract_strided_slice %29 {offsets = [0, 0, 0], sizes = [1, 1, 16], strides = [1, 1, 1]} : vector<3x1x16xf32> to vector<1x1x16xf32>
    %466 = vector.shape_cast %465 : vector<1x1x16xf32> to vector<1x16xf32>
    %467 = vector.broadcast %466 : vector<1x16xf32> to vector<2x16xf32>
    %468 = arith.addf %464, %467 : vector<2x16xf32>
    %469 = vector.extract_strided_slice %27 {offsets = [1, 0, 0], sizes = [1, 16, 16], strides = [1, 1, 1]} : vector<3x16x16xbf16> to vector<1x16x16xbf16>
    %470 = vector.shape_cast %469 : vector<1x16x16xbf16> to vector<16x16xbf16>
    %cst_194 = arith.constant dense<0.000000e+00> : vector<2x16xf32>
    %471 = tpu.matmul %461, %470, %cst_194 {dimension_numbers = #tpu.dot_dimension_numbers<[1], [0], [0], [1], [0, 0, 1, 1], [], []>} : vector<2x16xbf16>, vector<16x16xbf16>, vector<2x16xf32> -> vector<2x16xf32>
    %472 = vector.extract_strided_slice %29 {offsets = [1, 0, 0], sizes = [1, 1, 16], strides = [1, 1, 1]} : vector<3x1x16xf32> to vector<1x1x16xf32>
    %473 = vector.shape_cast %472 : vector<1x1x16xf32> to vector<1x16xf32>
    %474 = vector.broadcast %473 : vector<1x16xf32> to vector<2x16xf32>
    %475 = arith.addf %471, %474 : vector<2x16xf32>
    %476 = vector.extract_strided_slice %27 {offsets = [2, 0, 0], sizes = [1, 16, 16], strides = [1, 1, 1]} : vector<3x16x16xbf16> to vector<1x16x16xbf16>
    %477 = vector.shape_cast %476 : vector<1x16x16xbf16> to vector<16x16xbf16>
    %cst_195 = arith.constant dense<0.000000e+00> : vector<2x16xf32>
    %478 = tpu.matmul %461, %477, %cst_195 {dimension_numbers = #tpu.dot_dimension_numbers<[1], [0], [0], [1], [0, 0, 1, 1], [], []>} : vector<2x16xbf16>, vector<16x16xbf16>, vector<2x16xf32> -> vector<2x16xf32>
    %479 = vector.extract_strided_slice %29 {offsets = [2, 0, 0], sizes = [1, 1, 16], strides = [1, 1, 1]} : vector<3x1x16xf32> to vector<1x1x16xf32>
    %480 = vector.shape_cast %479 : vector<1x1x16xf32> to vector<1x16xf32>
    %481 = vector.broadcast %480 : vector<1x16xf32> to vector<2x16xf32>
    %482 = arith.addf %478, %481 : vector<2x16xf32>
    %c0_196 = arith.constant 0 : index
    %483 = arith.index_cast %459 : i32 to index
    %c0_197 = arith.constant 0 : index
    %c0_198 = arith.constant 0 : index
    %484 = vector.load %arg9[%c0_196, %483, %c0_197, %c0_198] : memref<3x8x2x16xf32, #tpu.memory_space<vmem>>, vector<1x1x2x16xf32>
    %485 = vector.shape_cast %484 : vector<1x1x2x16xf32> to vector<2x16xf32>
    %486 = arith.addf %485, %468 : vector<2x16xf32>
    %487 = arith.negf %486 : vector<2x16xf32>
    %488 = math.exp %487 : vector<2x16xf32>
    %cst_199 = arith.constant 1.000000e+00 : f32
    %489 = vector.broadcast %cst_199 : f32 to vector<2x16xf32>
    %490 = arith.addf %489, %488 : vector<2x16xf32>
    %491 = arith.divf %489, %490 : vector<2x16xf32>
    %c1_200 = arith.constant 1 : index
    %492 = arith.index_cast %459 : i32 to index
    %c0_201 = arith.constant 0 : index
    %c0_202 = arith.constant 0 : index
    %493 = vector.load %arg9[%c1_200, %492, %c0_201, %c0_202] : memref<3x8x2x16xf32, #tpu.memory_space<vmem>>, vector<1x1x2x16xf32>
    %494 = vector.shape_cast %493 : vector<1x1x2x16xf32> to vector<2x16xf32>
    %495 = arith.addf %494, %475 : vector<2x16xf32>
    %496 = arith.negf %495 : vector<2x16xf32>
    %497 = math.exp %496 : vector<2x16xf32>
    %cst_203 = arith.constant 1.000000e+00 : f32
    %498 = vector.broadcast %cst_203 : f32 to vector<2x16xf32>
    %499 = arith.addf %498, %497 : vector<2x16xf32>
    %500 = arith.divf %498, %499 : vector<2x16xf32>
    %c2_204 = arith.constant 2 : index
    %501 = arith.index_cast %459 : i32 to index
    %c0_205 = arith.constant 0 : index
    %c0_206 = arith.constant 0 : index
    %502 = vector.load %arg9[%c2_204, %501, %c0_205, %c0_206] : memref<3x8x2x16xf32, #tpu.memory_space<vmem>>, vector<1x1x2x16xf32>
    %503 = vector.shape_cast %502 : vector<1x1x2x16xf32> to vector<2x16xf32>
    %504 = arith.mulf %491, %482 : vector<2x16xf32>
    %505 = arith.addf %503, %504 : vector<2x16xf32>
    %506 = math.tanh %505 : vector<2x16xf32>
    %507 = arith.index_cast %459 : i32 to index
    %c0_207 = arith.constant 0 : index
    %c0_208 = arith.constant 0 : index
    %508 = vector.load %arg3[%507, %c0_207, %c0_208] : memref<8x2x1xf32, #tpu.memory_space<vmem>>, vector<1x2x1xf32>
    %509 = vector.shape_cast %508 : vector<1x2x1xf32> to vector<2x1xf32>
    %cst_209 = arith.constant 0.000000e+00 : f32
    %510 = vector.broadcast %cst_209 : f32 to vector<2x1xf32>
    %511 = arith.cmpf ogt, %509, %510 : vector<2x1xf32>
    %cst_210 = arith.constant 1.000000e+00 : f32
    %512 = vector.broadcast %cst_210 : f32 to vector<2x16xf32>
    %513 = arith.subf %512, %500 : vector<2x16xf32>
    %514 = arith.mulf %513, %506 : vector<2x16xf32>
    %515 = arith.mulf %500, %460 : vector<2x16xf32>
    %516 = arith.addf %514, %515 : vector<2x16xf32>
    %517 = vector.shape_cast %511 : vector<2x1xi1> to vector<2x1xi1>
    %518 = vector.broadcast %517 : vector<2x1xi1> to vector<2x16xi1>
    %519 = arith.select %518, %516, %460 : vector<2x16xi1>, vector<2x16xf32>
    %c0_211 = arith.constant 0 : index
    %c0_212 = arith.constant 0 : index
    %520 = vector.load %arg10[%c0_211, %c0_212] : memref<2x16xf32, #tpu.memory_space<vmem>>, vector<2x16xf32>
    tpu.vector_store %arg10[%c0_211, %c0_212], %519 {strides = array<i32>} : memref<2x16xf32, #tpu.memory_space<vmem>>, vector<2x16xf32>,
    %521 = vector.broadcast %509 : vector<2x1xf32> to vector<2x16xf32>
    %522 = arith.mulf %519, %521 : vector<2x16xf32>
    %c0_213 = arith.constant 0 : index
    %523 = arith.index_cast %459 : i32 to index
    %c0_214 = arith.constant 0 : index
    %c0_215 = arith.constant 0 : index
    %524 = vector.load %arg8[%c0_213, %523, %c0_214, %c0_215] : memref<1x8x2x16xf32, #tpu.memory_space<vmem>>, vector<1x1x2x16xf32>
    %525 = vector.shape_cast %524 : vector<1x1x2x16xf32> to vector<2x16xf32>
    %526 = vector.shape_cast %522 : vector<2x16xf32> to vector<1x1x2x16xf32>
    tpu.vector_store %arg8[%c0_213, %523, %c0_214, %c0_215], %526 {strides = array<i32>} : memref<1x8x2x16xf32, #tpu.memory_space<vmem>>, vector<1x1x2x16xf32>,
    %c7_i32_216 = arith.constant 7 : i32
    %c2_i32_217 = arith.constant 2 : i32
    %527 = arith.muli %c2_i32_217, %c7_i32_216 : i32
    %c7_i32_218 = arith.constant 7 : i32
    %528 = arith.subi %c7_i32_218, %527 : i32
    %529 = arith.muli %arg0, %528 : i32
    %530 = arith.addi %c7_i32_216, %529 : i32
    %c0_219 = arith.constant 0 : index
    %c0_220 = arith.constant 0 : index
    %531 = vector.load %arg10[%c0_219, %c0_220] : memref<2x16xf32, #tpu.memory_space<vmem>>, vector<2x16xf32>
    %532 = arith.truncf %531 : vector<2x16xf32> to vector<2x16xbf16>
    %533 = vector.extract_strided_slice %27 {offsets = [0, 0, 0], sizes = [1, 16, 16], strides = [1, 1, 1]} : vector<3x16x16xbf16> to vector<1x16x16xbf16>
    %534 = vector.shape_cast %533 : vector<1x16x16xbf16> to vector<16x16xbf16>
    %cst_221 = arith.constant dense<0.000000e+00> : vector<2x16xf32>
    %535 = tpu.matmul %532, %534, %cst_221 {dimension_numbers = #tpu.dot_dimension_numbers<[1], [0], [0], [1], [0, 0, 1, 1], [], []>} : vector<2x16xbf16>, vector<16x16xbf16>, vector<2x16xf32> -> vector<2x16xf32>
    %536 = vector.extract_strided_slice %29 {offsets = [0, 0, 0], sizes = [1, 1, 16], strides = [1, 1, 1]} : vector<3x1x16xf32> to vector<1x1x16xf32>
    %537 = vector.shape_cast %536 : vector<1x1x16xf32> to vector<1x16xf32>
    %538 = vector.broadcast %537 : vector<1x16xf32> to vector<2x16xf32>
    %539 = arith.addf %535, %538 : vector<2x16xf32>
    %540 = vector.extract_strided_slice %27 {offsets = [1, 0, 0], sizes = [1, 16, 16], strides = [1, 1, 1]} : vector<3x16x16xbf16> to vector<1x16x16xbf16>
    %541 = vector.shape_cast %540 : vector<1x16x16xbf16> to vector<16x16xbf16>
    %cst_222 = arith.constant dense<0.000000e+00> : vector<2x16xf32>
    %542 = tpu.matmul %532, %541, %cst_222 {dimension_numbers = #tpu.dot_dimension_numbers<[1], [0], [0], [1], [0, 0, 1, 1], [], []>} : vector<2x16xbf16>, vector<16x16xbf16>, vector<2x16xf32> -> vector<2x16xf32>
    %543 = vector.extract_strided_slice %29 {offsets = [1, 0, 0], sizes = [1, 1, 16], strides = [1, 1, 1]} : vector<3x1x16xf32> to vector<1x1x16xf32>
    %544 = vector.shape_cast %543 : vector<1x1x16xf32> to vector<1x16xf32>
    %545 = vector.broadcast %544 : vector<1x16xf32> to vector<2x16xf32>
    %546 = arith.addf %542, %545 : vector<2x16xf32>
    %547 = vector.extract_strided_slice %27 {offsets = [2, 0, 0], sizes = [1, 16, 16], strides = [1, 1, 1]} : vector<3x16x16xbf16> to vector<1x16x16xbf16>
    %548 = vector.shape_cast %547 : vector<1x16x16xbf16> to vector<16x16xbf16>
    %cst_223 = arith.constant dense<0.000000e+00> : vector<2x16xf32>
    %549 = tpu.matmul %532, %548, %cst_223 {dimension_numbers = #tpu.dot_dimension_numbers<[1], [0], [0], [1], [0, 0, 1, 1], [], []>} : vector<2x16xbf16>, vector<16x16xbf16>, vector<2x16xf32> -> vector<2x16xf32>
    %550 = vector.extract_strided_slice %29 {offsets = [2, 0, 0], sizes = [1, 1, 16], strides = [1, 1, 1]} : vector<3x1x16xf32> to vector<1x1x16xf32>
    %551 = vector.shape_cast %550 : vector<1x1x16xf32> to vector<1x16xf32>
    %552 = vector.broadcast %551 : vector<1x16xf32> to vector<2x16xf32>
    %553 = arith.addf %549, %552 : vector<2x16xf32>
    %c0_224 = arith.constant 0 : index
    %554 = arith.index_cast %530 : i32 to index
    %c0_225 = arith.constant 0 : index
    %c0_226 = arith.constant 0 : index
    %555 = vector.load %arg9[%c0_224, %554, %c0_225, %c0_226] : memref<3x8x2x16xf32, #tpu.memory_space<vmem>>, vector<1x1x2x16xf32>
    %556 = vector.shape_cast %555 : vector<1x1x2x16xf32> to vector<2x16xf32>
    %557 = arith.addf %556, %539 : vector<2x16xf32>
    %558 = arith.negf %557 : vector<2x16xf32>
    %559 = math.exp %558 : vector<2x16xf32>
    %cst_227 = arith.constant 1.000000e+00 : f32
    %560 = vector.broadcast %cst_227 : f32 to vector<2x16xf32>
    %561 = arith.addf %560, %559 : vector<2x16xf32>
    %562 = arith.divf %560, %561 : vector<2x16xf32>
    %c1_228 = arith.constant 1 : index
    %563 = arith.index_cast %530 : i32 to index
    %c0_229 = arith.constant 0 : index
    %c0_230 = arith.constant 0 : index
    %564 = vector.load %arg9[%c1_228, %563, %c0_229, %c0_230] : memref<3x8x2x16xf32, #tpu.memory_space<vmem>>, vector<1x1x2x16xf32>
    %565 = vector.shape_cast %564 : vector<1x1x2x16xf32> to vector<2x16xf32>
    %566 = arith.addf %565, %546 : vector<2x16xf32>
    %567 = arith.negf %566 : vector<2x16xf32>
    %568 = math.exp %567 : vector<2x16xf32>
    %cst_231 = arith.constant 1.000000e+00 : f32
    %569 = vector.broadcast %cst_231 : f32 to vector<2x16xf32>
    %570 = arith.addf %569, %568 : vector<2x16xf32>
    %571 = arith.divf %569, %570 : vector<2x16xf32>
    %c2_232 = arith.constant 2 : index
    %572 = arith.index_cast %530 : i32 to index
    %c0_233 = arith.constant 0 : index
    %c0_234 = arith.constant 0 : index
    %573 = vector.load %arg9[%c2_232, %572, %c0_233, %c0_234] : memref<3x8x2x16xf32, #tpu.memory_space<vmem>>, vector<1x1x2x16xf32>
    %574 = vector.shape_cast %573 : vector<1x1x2x16xf32> to vector<2x16xf32>
    %575 = arith.mulf %562, %553 : vector<2x16xf32>
    %576 = arith.addf %574, %575 : vector<2x16xf32>
    %577 = math.tanh %576 : vector<2x16xf32>
    %578 = arith.index_cast %530 : i32 to index
    %c0_235 = arith.constant 0 : index
    %c0_236 = arith.constant 0 : index
    %579 = vector.load %arg3[%578, %c0_235, %c0_236] : memref<8x2x1xf32, #tpu.memory_space<vmem>>, vector<1x2x1xf32>
    %580 = vector.shape_cast %579 : vector<1x2x1xf32> to vector<2x1xf32>
    %cst_237 = arith.constant 0.000000e+00 : f32
    %581 = vector.broadcast %cst_237 : f32 to vector<2x1xf32>
    %582 = arith.cmpf ogt, %580, %581 : vector<2x1xf32>
    %cst_238 = arith.constant 1.000000e+00 : f32
    %583 = vector.broadcast %cst_238 : f32 to vector<2x16xf32>
    %584 = arith.subf %583, %571 : vector<2x16xf32>
    %585 = arith.mulf %584, %577 : vector<2x16xf32>
    %586 = arith.mulf %571, %531 : vector<2x16xf32>
    %587 = arith.addf %585, %586 : vector<2x16xf32>
    %588 = vector.shape_cast %582 : vector<2x1xi1> to vector<2x1xi1>
    %589 = vector.broadcast %588 : vector<2x1xi1> to vector<2x16xi1>
    %590 = arith.select %589, %587, %531 : vector<2x16xi1>, vector<2x16xf32>
    %c0_239 = arith.constant 0 : index
    %c0_240 = arith.constant 0 : index
    %591 = vector.load %arg10[%c0_239, %c0_240] : memref<2x16xf32, #tpu.memory_space<vmem>>, vector<2x16xf32>
    tpu.vector_store %arg10[%c0_239, %c0_240], %590 {strides = array<i32>} : memref<2x16xf32, #tpu.memory_space<vmem>>, vector<2x16xf32>,
    %592 = vector.broadcast %580 : vector<2x1xf32> to vector<2x16xf32>
    %593 = arith.mulf %590, %592 : vector<2x16xf32>
    %c0_241 = arith.constant 0 : index
    %594 = arith.index_cast %530 : i32 to index
    %c0_242 = arith.constant 0 : index
    %c0_243 = arith.constant 0 : index
    %595 = vector.load %arg8[%c0_241, %594, %c0_242, %c0_243] : memref<1x8x2x16xf32, #tpu.memory_space<vmem>>, vector<1x1x2x16xf32>
    %596 = vector.shape_cast %595 : vector<1x1x2x16xf32> to vector<2x16xf32>
    %597 = vector.shape_cast %593 : vector<2x16xf32> to vector<1x1x2x16xf32>
    tpu.vector_store %arg8[%c0_241, %594, %c0_242, %c0_243], %597 {strides = array<i32>} : memref<1x8x2x16xf32, #tpu.memory_space<vmem>>, vector<1x1x2x16xf32>,
    %c8_i32 = arith.constant 8 : i32
    return
  }
  func.func @transform_0(%arg0: i32, %arg1: i32) -> (i32, i32, i32) {
    %c2_i32 = arith.constant 2 : i32
    %0 = arith.muli %c2_i32, %arg1 : i32
    %c0_i32 = arith.constant 0 : i32
    %1 = arith.subi %c0_i32, %0 : i32
    %2 = arith.muli %arg0, %1 : i32
    %3 = arith.addi %arg1, %2 : i32
    %c0_i32_0 = arith.constant 0 : i32
    %c0_i32_1 = arith.constant 0 : i32
    %c0_i32_2 = arith.constant 0 : i32
    return %3, %c0_i32_0, %c0_i32_1 : i32, i32, i32
  }
  func.func @transform_1(%arg0: i32, %arg1: i32) -> (i32, i32, i32) {
    %c2_i32 = arith.constant 2 : i32
    %0 = arith.muli %c2_i32, %arg1 : i32
    %c0_i32 = arith.constant 0 : i32
    %1 = arith.subi %c0_i32, %0 : i32
    %2 = arith.muli %arg0, %1 : i32
    %3 = arith.addi %arg1, %2 : i32
    %c0_i32_0 = arith.constant 0 : i32
    %c0_i32_1 = arith.constant 0 : i32
    %c0_i32_2 = arith.constant 0 : i32
    return %3, %c0_i32_0, %c0_i32_1 : i32, i32, i32
  }
  func.func @transform_2(%arg0: i32, %arg1: i32) -> (i32, i32, i32) {
    %c0_i32 = arith.constant 0 : i32
    %c0_i32_0 = arith.constant 0 : i32
    %c0_i32_1 = arith.constant 0 : i32
    return %arg0, %c0_i32, %c0_i32_0 : i32, i32, i32
  }
  func.func @transform_3(%arg0: i32, %arg1: i32) -> (i32, i32, i32) {
    %c0_i32 = arith.constant 0 : i32
    %c0_i32_0 = arith.constant 0 : i32
    %c0_i32_1 = arith.constant 0 : i32
    return %arg0, %c0_i32, %c0_i32_0 : i32, i32, i32
  }
  func.func @transform_4(%arg0: i32, %arg1: i32) -> (i32, i32, i32, i32) {
    %c0_i32 = arith.constant 0 : i32
    %c0_i32_0 = arith.constant 0 : i32
    %c0_i32_1 = arith.constant 0 : i32
    %c0_i32_2 = arith.constant 0 : i32
    return %arg0, %c0_i32, %c0_i32_0, %c0_i32_1 : i32, i32, i32, i32
  }
  func.func @transform_5(%arg0: i32, %arg1: i32) -> (i32, i32, i32, i32) {
    %c0_i32 = arith.constant 0 : i32
    %c0_i32_0 = arith.constant 0 : i32
    %c0_i32_1 = arith.constant 0 : i32
    %c0_i32_2 = arith.constant 0 : i32
    return %arg0, %c0_i32, %c0_i32_0, %c0_i32_1 : i32, i32, i32, i32
  }
  func.func @transform_6(%arg0: i32, %arg1: i32) -> (i32, i32, i32, i32) {
    %c2_i32 = arith.constant 2 : i32
    %0 = arith.muli %c2_i32, %arg1 : i32
    %c0_i32 = arith.constant 0 : i32
    %1 = arith.subi %c0_i32, %0 : i32
    %2 = arith.muli %arg0, %1 : i32
    %3 = arith.addi %arg1, %2 : i32
    %c0_i32_0 = arith.constant 0 : i32
    %c0_i32_1 = arith.constant 0 : i32
    %c0_i32_2 = arith.constant 0 : i32
    return %arg0, %3, %c0_i32_0, %c0_i32_1 : i32, i32, i32, i32
  }
}

module attributes {stable_mosaic.version = 11 : i64} {
  func.func @_heads_loss_kernel(%arg0: i32, %arg1: memref<2x8x32xf32, #tpu.memory_space<vmem>>, %arg2: memref<32x2xf32, #tpu.memory_space<vmem>>, %arg3: memref<1x2xf32, #tpu.memory_space<vmem>>, %arg4: memref<2x8xf32, #tpu.memory_space<vmem>>, %arg5: memref<2x8xf32, #tpu.memory_space<vmem>>, %arg6: memref<2x8xf32, #tpu.memory_space<vmem>>, %arg7: memref<2x8xf32, #tpu.memory_space<vmem>>, %arg8: memref<2x8xf32, #tpu.memory_space<vmem>>, %arg9: memref<2x8xf32, #tpu.memory_space<vmem>>, %arg10: memref<2x8xf32, #tpu.memory_space<vmem>>, %arg11: memref<2x1xf32, #tpu.memory_space<vmem>>, %arg12: memref<2x1xf32, #tpu.memory_space<vmem>>) attributes {dimension_semantics = [#tpu.dimension_semantics<parallel>], iteration_bounds = array<i64: 1>, scalar_prefetch = 0 : i64, scratch_operands = 0 : i64, tpu.core_type = #tpu.core_type<tc>, window_params = [{transform_indices = @transform_0, window_bounds = array<i64: 2, 8, 32>}, {pipeline_mode = #tpu.pipeline_mode<synchronous>, transform_indices = @transform_1, window_bounds = array<i64: 32, 2>}, {pipeline_mode = #tpu.pipeline_mode<synchronous>, transform_indices = @transform_2, window_bounds = array<i64: 1, 2>}, {transform_indices = @transform_3, window_bounds = array<i64: 2, 8>}, {transform_indices = @transform_4, window_bounds = array<i64: 2, 8>}, {transform_indices = @transform_5, window_bounds = array<i64: 2, 8>}, {transform_indices = @transform_6, window_bounds = array<i64: 2, 8>}, {transform_indices = @transform_7, window_bounds = array<i64: 2, 8>}, {transform_indices = @transform_8, window_bounds = array<i64: 2, 8>}, {transform_indices = @transform_9, window_bounds = array<i64: 2, 8>}, {transform_indices = @transform_10, window_bounds = array<i64: 2, 1>}, {transform_indices = @transform_11, window_bounds = array<i64: 2, 1>}]} {
    %c0 = arith.constant 0 : index
    %c0_0 = arith.constant 0 : index
    %c0_1 = arith.constant 0 : index
    %0 = vector.load %arg1[%c0, %c0_0, %c0_1] : memref<2x8x32xf32, #tpu.memory_space<vmem>>, vector<2x8x32xf32>
    %1 = vector.shape_cast %0 : vector<2x8x32xf32> to vector<16x32xf32>
    %c0_2 = arith.constant 0 : index
    %c0_3 = arith.constant 0 : index
    %2 = vector.load %arg2[%c0_2, %c0_3] : memref<32x2xf32, #tpu.memory_space<vmem>>, vector<32x2xf32>
    %cst = arith.constant dense<0.000000e+00> : vector<16x2xf32>
    %3 = tpu.matmul %1, %2, %cst {dimension_numbers = #tpu.dot_dimension_numbers<[1], [0], [0], [1], [0, 0, 1, 1], [], []>} : vector<16x32xf32>, vector<32x2xf32>, vector<16x2xf32> -> vector<16x2xf32>
    %c0_4 = arith.constant 0 : index
    %c0_5 = arith.constant 0 : index
    %4 = vector.load %arg3[%c0_4, %c0_5] : memref<1x2xf32, #tpu.memory_space<vmem>>, vector<1x2xf32>
    %5 = vector.broadcast %4 : vector<1x2xf32> to vector<16x2xf32>
    %6 = arith.addf %3, %5 : vector<16x2xf32>
    %7 = vector.shape_cast %6 : vector<16x2xf32> to vector<2x8x2xf32>
    %c0_6 = arith.constant 0 : index
    %c0_7 = arith.constant 0 : index
    %8 = vector.load %arg4[%c0_6, %c0_7] : memref<2x8xf32, #tpu.memory_space<vmem>>, vector<2x8xf32>
    %9 = vector.extract_strided_slice %7 {offsets = [0, 0, 0], sizes = [2, 8, 1], strides = [1, 1, 1]} : vector<2x8x2xf32> to vector<2x8x1xf32>
    %10 = vector.shape_cast %9 : vector<2x8x1xf32> to vector<2x8xf32>
    %11 = arith.mulf %10, %8 : vector<2x8xf32>
    %cst_8 = arith.constant dense<0xFF800000> : vector<2xf32>
    %12 = vector.multi_reduction <maximumf>, %11, %cst_8 [1] : vector<2x8xf32> to vector<2xf32>
    %13 = vector.shape_cast %12 : vector<2xf32> to vector<2x1xf32>
    %14 = vector.broadcast %13 : vector<2x1xf32> to vector<2x8xf32>
    %15 = arith.subf %11, %14 : vector<2x8xf32>
    %16 = math.exp %15 : vector<2x8xf32>
    %cst_9 = arith.constant dense<0.000000e+00> : vector<2xf32>
    %17 = vector.multi_reduction <add>, %16, %cst_9 [1] : vector<2x8xf32> to vector<2xf32>
    %18 = vector.shape_cast %17 : vector<2xf32> to vector<2x1xf32>
    %19 = tpu.reciprocal %18 {approx = true} : vector<2x1xf32> -> vector<2x1xf32>
    %20 = vector.broadcast %19 : vector<2x1xf32> to vector<2x8xf32>
    %21 = arith.mulf %16, %20 : vector<2x8xf32>
    %22 = arith.mulf %21, %8 : vector<2x8xf32>
    %cst_10 = arith.constant dense<0.000000e+00> : vector<2xf32>
    %23 = vector.multi_reduction <add>, %22, %cst_10 [1] : vector<2x8xf32> to vector<2xf32>
    %24 = vector.shape_cast %23 : vector<2xf32> to vector<2x1xf32>
    %cst_11 = arith.constant 9.99999982E-14 : f32
    %25 = vector.broadcast %cst_11 : f32 to vector<2x1xf32>
    %26 = arith.addf %24, %25 : vector<2x1xf32>
    %27 = tpu.reciprocal %26 {approx = true} : vector<2x1xf32> -> vector<2x1xf32>
    %28 = vector.broadcast %27 : vector<2x1xf32> to vector<2x8xf32>
    %29 = arith.mulf %22, %28 : vector<2x8xf32>
    %cst_12 = arith.constant 9.99999982E-14 : f32
    %30 = vector.broadcast %cst_12 : f32 to vector<2x8xf32>
    %31 = arith.addf %29, %30 : vector<2x8xf32>
    %32 = vector.extract_strided_slice %7 {offsets = [0, 0, 1], sizes = [2, 8, 1], strides = [1, 1, 1]} : vector<2x8x2xf32> to vector<2x8x1xf32>
    %33 = vector.shape_cast %32 : vector<2x8x1xf32> to vector<2x8xf32>
    %34 = arith.mulf %33, %8 : vector<2x8xf32>
    %cst_13 = arith.constant dense<0xFF800000> : vector<2xf32>
    %35 = vector.multi_reduction <maximumf>, %34, %cst_13 [1] : vector<2x8xf32> to vector<2xf32>
    %36 = vector.shape_cast %35 : vector<2xf32> to vector<2x1xf32>
    %37 = vector.broadcast %36 : vector<2x1xf32> to vector<2x8xf32>
    %38 = arith.subf %34, %37 : vector<2x8xf32>
    %39 = math.exp %38 : vector<2x8xf32>
    %cst_14 = arith.constant dense<0.000000e+00> : vector<2xf32>
    %40 = vector.multi_reduction <add>, %39, %cst_14 [1] : vector<2x8xf32> to vector<2xf32>
    %41 = vector.shape_cast %40 : vector<2xf32> to vector<2x1xf32>
    %42 = tpu.reciprocal %41 {approx = true} : vector<2x1xf32> -> vector<2x1xf32>
    %43 = vector.broadcast %42 : vector<2x1xf32> to vector<2x8xf32>
    %44 = arith.mulf %39, %43 : vector<2x8xf32>
    %45 = arith.mulf %44, %8 : vector<2x8xf32>
    %cst_15 = arith.constant dense<0.000000e+00> : vector<2xf32>
    %46 = vector.multi_reduction <add>, %45, %cst_15 [1] : vector<2x8xf32> to vector<2xf32>
    %47 = vector.shape_cast %46 : vector<2xf32> to vector<2x1xf32>
    %cst_16 = arith.constant 9.99999982E-14 : f32
    %48 = vector.broadcast %cst_16 : f32 to vector<2x1xf32>
    %49 = arith.addf %47, %48 : vector<2x1xf32>
    %50 = tpu.reciprocal %49 {approx = true} : vector<2x1xf32> -> vector<2x1xf32>
    %51 = vector.broadcast %50 : vector<2x1xf32> to vector<2x8xf32>
    %52 = arith.mulf %45, %51 : vector<2x8xf32>
    %cst_17 = arith.constant 9.99999982E-14 : f32
    %53 = vector.broadcast %cst_17 : f32 to vector<2x8xf32>
    %54 = arith.addf %52, %53 : vector<2x8xf32>
    %c0_18 = arith.constant 0 : index
    %c0_19 = arith.constant 0 : index
    %55 = vector.load %arg9[%c0_18, %c0_19] : memref<2x8xf32, #tpu.memory_space<vmem>>, vector<2x8xf32>
    tpu.vector_store %arg9[%c0_18, %c0_19], %31 {strides = array<i32>} : memref<2x8xf32, #tpu.memory_space<vmem>>, vector<2x8xf32>,
    %c0_20 = arith.constant 0 : index
    %c0_21 = arith.constant 0 : index
    %56 = vector.load %arg10[%c0_20, %c0_21] : memref<2x8xf32, #tpu.memory_space<vmem>>, vector<2x8xf32>
    tpu.vector_store %arg10[%c0_20, %c0_21], %54 {strides = array<i32>} : memref<2x8xf32, #tpu.memory_space<vmem>>, vector<2x8xf32>,
    %c0_22 = arith.constant 0 : index
    %c0_23 = arith.constant 0 : index
    %57 = vector.load %arg6[%c0_22, %c0_23] : memref<2x8xf32, #tpu.memory_space<vmem>>, vector<2x8xf32>
    %cst_24 = arith.constant 0.000000e+00 : f32
    %58 = vector.broadcast %cst_24 : f32 to vector<2x8xf32>
    %59 = arith.cmpf ogt, %8, %58 : vector<2x8xf32>
    %cst_25 = arith.constant 0.000000e+00 : f32
    %60 = vector.broadcast %cst_25 : f32 to vector<2x8xf32>
    %61 = arith.cmpf ogt, %57, %60 : vector<2x8xf32>
    %62 = arith.andi %59, %61 : vector<2x8xi1>
    %cst_26 = arith.constant 1.000000e+00 : f32
    %63 = vector.broadcast %cst_26 : f32 to vector<2x8xf32>
    %64 = arith.select %62, %31, %63 : vector<2x8xi1>, vector<2x8xf32>
    %cst_27 = arith.constant 1.000000e+00 : f32
    %65 = vector.broadcast %cst_27 : f32 to vector<2x8xf32>
    %66 = arith.select %62, %57, %65 : vector<2x8xi1>, vector<2x8xf32>
    %67 = math.log %64 : vector<2x8xf32>
    %68 = math.log %66 : vector<2x8xf32>
    %69 = arith.subf %67, %68 : vector<2x8xf32>
    %70 = arith.mulf %57, %69 : vector<2x8xf32>
    %cst_28 = arith.constant 0.000000e+00 : f32
    %71 = vector.broadcast %cst_28 : f32 to vector<2x8xf32>
    %72 = arith.select %62, %70, %71 : vector<2x8xi1>, vector<2x8xf32>
    %cst_29 = arith.constant dense<0.000000e+00> : vector<2xf32>
    %73 = vector.multi_reduction <add>, %72, %cst_29 [1] : vector<2x8xf32> to vector<2xf32>
    %74 = vector.shape_cast %73 : vector<2xf32> to vector<2x1xf32>
    %cst_30 = arith.constant 0.000000e+00 : f32
    %75 = vector.broadcast %cst_30 : f32 to vector<2x1xf32>
    %76 = arith.subf %75, %74 : vector<2x1xf32>
    %c0_31 = arith.constant 0 : index
    %c0_32 = arith.constant 0 : index
    %77 = vector.load %arg7[%c0_31, %c0_32] : memref<2x8xf32, #tpu.memory_space<vmem>>, vector<2x8xf32>
    %cst_33 = arith.constant 0.000000e+00 : f32
    %78 = vector.broadcast %cst_33 : f32 to vector<2x8xf32>
    %79 = arith.cmpf ogt, %8, %78 : vector<2x8xf32>
    %cst_34 = arith.constant 0.000000e+00 : f32
    %80 = vector.broadcast %cst_34 : f32 to vector<2x8xf32>
    %81 = arith.cmpf ogt, %77, %80 : vector<2x8xf32>
    %82 = arith.andi %79, %81 : vector<2x8xi1>
    %cst_35 = arith.constant 1.000000e+00 : f32
    %83 = vector.broadcast %cst_35 : f32 to vector<2x8xf32>
    %84 = arith.select %82, %54, %83 : vector<2x8xi1>, vector<2x8xf32>
    %cst_36 = arith.constant 1.000000e+00 : f32
    %85 = vector.broadcast %cst_36 : f32 to vector<2x8xf32>
    %86 = arith.select %82, %77, %85 : vector<2x8xi1>, vector<2x8xf32>
    %87 = math.log %84 : vector<2x8xf32>
    %88 = math.log %86 : vector<2x8xf32>
    %89 = arith.subf %87, %88 : vector<2x8xf32>
    %90 = arith.mulf %77, %89 : vector<2x8xf32>
    %cst_37 = arith.constant 0.000000e+00 : f32
    %91 = vector.broadcast %cst_37 : f32 to vector<2x8xf32>
    %92 = arith.select %82, %90, %91 : vector<2x8xi1>, vector<2x8xf32>
    %cst_38 = arith.constant dense<0.000000e+00> : vector<2xf32>
    %93 = vector.multi_reduction <add>, %92, %cst_38 [1] : vector<2x8xf32> to vector<2xf32>
    %94 = vector.shape_cast %93 : vector<2xf32> to vector<2x1xf32>
    %cst_39 = arith.constant 0.000000e+00 : f32
    %95 = vector.broadcast %cst_39 : f32 to vector<2x1xf32>
    %96 = arith.subf %95, %94 : vector<2x1xf32>
    %97 = arith.addf %76, %96 : vector<2x1xf32>
    %c0_40 = arith.constant 0 : index
    %c0_41 = arith.constant 0 : index
    %98 = vector.load %arg11[%c0_40, %c0_41] : memref<2x1xf32, #tpu.memory_space<vmem>>, vector<2x1xf32>
    tpu.vector_store %arg11[%c0_40, %c0_41], %97 {strides = array<i32>} : memref<2x1xf32, #tpu.memory_space<vmem>>, vector<2x1xf32>,
    %c0_42 = arith.constant 0 : index
    %c0_43 = arith.constant 0 : index
    %99 = vector.load %arg8[%c0_42, %c0_43] : memref<2x8xf32, #tpu.memory_space<vmem>>, vector<2x8xf32>
    %cst_44 = arith.constant 1.000000e+00 : f32
    %100 = vector.broadcast %cst_44 : f32 to vector<2x8xf32>
    %101 = arith.subf %100, %99 : vector<2x8xf32>
    %c0_45 = arith.constant 0 : index
    %c0_46 = arith.constant 0 : index
    %102 = vector.load %arg5[%c0_45, %c0_46] : memref<2x8xf32, #tpu.memory_space<vmem>>, vector<2x8xf32>
    %cst_47 = arith.constant 1.000000e+00 : f32
    %103 = vector.broadcast %cst_47 : f32 to vector<2x8xf32>
    %104 = arith.subf %103, %102 : vector<2x8xf32>
    %cst_48 = arith.constant 9.99999996E-13 : f32
    %105 = vector.broadcast %cst_48 : f32 to vector<2x8xf32>
    %106 = arith.addf %104, %105 : vector<2x8xf32>
    %107 = math.log %106 : vector<2x8xf32>
    %108 = arith.mulf %101, %107 : vector<2x8xf32>
    %cst_49 = arith.constant 0.000000e+00 : f32
    %109 = vector.broadcast %cst_49 : f32 to vector<2x8xf32>
    %110 = arith.subf %109, %108 : vector<2x8xf32>
    %cst_50 = arith.constant dense<0.000000e+00> : vector<2xf32>
    %111 = vector.multi_reduction <add>, %110, %cst_50 [1] : vector<2x8xf32> to vector<2xf32>
    %112 = vector.shape_cast %111 : vector<2xf32> to vector<2x1xf32>
    %c0_51 = arith.constant 0 : index
    %c0_52 = arith.constant 0 : index
    %113 = vector.load %arg12[%c0_51, %c0_52] : memref<2x1xf32, #tpu.memory_space<vmem>>, vector<2x1xf32>
    tpu.vector_store %arg12[%c0_51, %c0_52], %112 {strides = array<i32>} : memref<2x1xf32, #tpu.memory_space<vmem>>, vector<2x1xf32>,
    return
  }
  func.func @transform_0(%arg0: i32) -> (i32, i32, i32) {
    %c0_i32 = arith.constant 0 : i32
    %c0_i32_0 = arith.constant 0 : i32
    %c0_i32_1 = arith.constant 0 : i32
    return %arg0, %c0_i32, %c0_i32_0 : i32, i32, i32
  }
  func.func @transform_1(%arg0: i32) -> (i32, i32) {
    %c0_i32 = arith.constant 0 : i32
    %c0_i32_0 = arith.constant 0 : i32
    %c0_i32_1 = arith.constant 0 : i32
    return %c0_i32, %c0_i32_0 : i32, i32
  }
  func.func @transform_2(%arg0: i32) -> (i32, i32) {
    %c0_i32 = arith.constant 0 : i32
    %c0_i32_0 = arith.constant 0 : i32
    %c0_i32_1 = arith.constant 0 : i32
    return %c0_i32, %c0_i32_0 : i32, i32
  }
  func.func @transform_3(%arg0: i32) -> (i32, i32) {
    %c0_i32 = arith.constant 0 : i32
    %c0_i32_0 = arith.constant 0 : i32
    return %arg0, %c0_i32 : i32, i32
  }
  func.func @transform_4(%arg0: i32) -> (i32, i32) {
    %c0_i32 = arith.constant 0 : i32
    %c0_i32_0 = arith.constant 0 : i32
    return %arg0, %c0_i32 : i32, i32
  }
  func.func @transform_5(%arg0: i32) -> (i32, i32) {
    %c0_i32 = arith.constant 0 : i32
    %c0_i32_0 = arith.constant 0 : i32
    return %arg0, %c0_i32 : i32, i32
  }
  func.func @transform_6(%arg0: i32) -> (i32, i32) {
    %c0_i32 = arith.constant 0 : i32
    %c0_i32_0 = arith.constant 0 : i32
    return %arg0, %c0_i32 : i32, i32
  }
  func.func @transform_7(%arg0: i32) -> (i32, i32) {
    %c0_i32 = arith.constant 0 : i32
    %c0_i32_0 = arith.constant 0 : i32
    return %arg0, %c0_i32 : i32, i32
  }
  func.func @transform_8(%arg0: i32) -> (i32, i32) {
    %c0_i32 = arith.constant 0 : i32
    %c0_i32_0 = arith.constant 0 : i32
    return %arg0, %c0_i32 : i32, i32
  }
  func.func @transform_9(%arg0: i32) -> (i32, i32) {
    %c0_i32 = arith.constant 0 : i32
    %c0_i32_0 = arith.constant 0 : i32
    return %arg0, %c0_i32 : i32, i32
  }
  func.func @transform_10(%arg0: i32) -> (i32, i32) {
    %c0_i32 = arith.constant 0 : i32
    %c0_i32_0 = arith.constant 0 : i32
    return %arg0, %c0_i32 : i32, i32
  }
  func.func @transform_11(%arg0: i32) -> (i32, i32) {
    %c0_i32 = arith.constant 0 : i32
    %c0_i32_0 = arith.constant 0 : i32
    return %arg0, %c0_i32 : i32, i32
  }
}

</mosaic_0001>

<bundles_post_ra>
// kernel: localization_forward.4
= control target key start
LH: loop header
LB: loop body
LE: loop exit
PB: predicated region body
PF: predicated region fallthrough
CT: control target
= control target key end

     0   :  { %8 = vsyncpa [#allocation3], 0  ;;  %s322_s0 = inlined_call_operand.hbm [shape: f32[2,16], index: 0, kind: input, shape index: {}]   ;;  %s323_s1 = inlined_call_operand.hbm [shape: bf16[16,16], index: 1, kind: input, shape index: {}]   ;;  %s324_s2 = inlined_call_operand.hbm [shape: f32[1,16], index: 2, kind: input, shape index: {}]   ;;  %s325_s3 = inlined_call_operand.hbm [shape: f32[2,16], index: 3, kind: output, shape index: {}]  }
   0x1   :  { %9 = vsyncpa [#allocation6], 0 }
   0x2   :  { %10 = vsyncpa [#allocation4], 0  ;;  %s246_s12 = smov [#allocation5]   ;;  %s152_s16 = scalar_lea.hbm %s323_s1, 128 }
   0x3   :  { %s26_s13 = sshll.u32 %s246_s12, 4  ;;  %p153_p0 = scmp.ne.s32.totalorder %s323_s1, %s152_s16  ;;  %s27_s13 = int_to_ptr.vmem [resolvable:$true] %s26_s13 }
   0x4   :  { %p156_p1 = scmp.lt.u32.totalorder %s152_s16, %s323_s1 }
   0x6   :  { %p158_p2 = pnand %p156_p1, %p153_p0 }
   0x8   :  { %161 = shalt.err (!%p158_p2)
}
   0x9   :  { %s162_s21 = scalar_lea.vmem %s27_s13, 128  ;;  %p167_p4 = scmp.lt.s32.totalorder %s27_s13, %s27_s13 }
   0xa   :  { %p163_p3 = scmp.ne.s32.totalorder %s27_s13, %s162_s21  ;;  %p168_p5 = scmp.lt.s32.totalorder %s162_s21, %s162_s21 }
   0xc   :  { %p169_p6 = por %p168_p5, %p167_p4 }
   0xe   :  { %p170_p7 = pnand %p169_p6, %p163_p3 }
  0x10   :  { %173 = shalt.err (!%p170_p7)
}
  0x11   :  { %s247_s22 = smov 64   ;;  %s248_s23 = smov 4  }
  0x12   :  { %32 = dma.hbm_to_vmem [thread:$0]  %s323_s1, 128, %s27_s13, [#allocation6], %s247_s22, %s247_s22, %s248_s23  }
  0x13   :  { %s249_s26 = smov [#allocation2]   ;;  %s250_s28 = smov [#allocation7]  }
  0x14   :  { %s17_s27 = sshll.u32 %s249_s26, 4  ;;  %s39_s29 = sshll.u32 %s250_s28, 4  ;;  %s18_s27 = int_to_ptr.vmem [resolvable:$true] %s17_s27  ;;  %s40_s29 = int_to_ptr.vmem [resolvable:$true] %s39_s29 }
  0x15   :  { %s174_s5 = scalar_lea.hbm %s322_s0, 32 }
  0x16   :  { %p175_p8 = scmp.ne.s32.totalorder %s322_s0, %s174_s5  ;;  %p178_p9 = scmp.lt.u32.totalorder %s174_s5, %s322_s0 }
  0x18   :  { %p180_p10 = pnand %p178_p9, %p175_p8 }
  0x1a   :  { %183 = shalt.err (!%p180_p10)
}
  0x1b   :  { %s184_s1 = scalar_lea.vmem %s18_s27, 32  ;;  %p189_p12 = scmp.lt.s32.totalorder %s18_s27, %s18_s27 }
  0x1c   :  { %p185_p11 = scmp.ne.s32.totalorder %s18_s27, %s184_s1  ;;  %p190_p13 = scmp.lt.s32.totalorder %s184_s1, %s184_s1 }
  0x1e   :  { %p191_p0 = por %p190_p13, %p189_p12 }
  0x20   :  { %p192_p1 = pnand %p191_p0, %p185_p11 }
  0x22   :  { %195 = shalt.err (!%p192_p1)
}
  0x23   :  { %20 = dma.hbm_to_vmem [thread:$0]  %s322_s0, 32, %s18_s27, [#allocation3]  }
  0x24   :  { %s196_s14 = scalar_lea.hbm %s324_s2, 16 }
  0x25   :  { %p197_p2 = scmp.ne.s32.totalorder %s324_s2, %s196_s14  ;;  %p200_p3 = scmp.lt.u32.totalorder %s196_s14, %s324_s2 }
  0x27   :  { %p202_p4 = pnand %p200_p3, %p197_p2 }
  0x29   :  { %205 = shalt.err (!%p202_p4)
}
  0x2a   :  { %s206_s19 = scalar_lea.vmem %s40_s29, 16  ;;  %s210_s20 = scalar_lea.vmem %s40_s29, 32 }
  0x2b   :  { %p207_p5 = scmp.ne.s32.totalorder %s40_s29, %s206_s19  ;;  %p211_p6 = scmp.lt.s32.totalorder %s40_s29, %s40_s29 }
  0x2c   :  { %p212_p7 = scmp.lt.s32.totalorder %s210_s20, %s206_s19 }
  0x2e   :  { %p213_p8 = por %p212_p7, %p211_p6 }
  0x30   :  { %p214_p9 = pnand %p213_p8, %p207_p5 }
  0x32   :  { %217 = shalt.err (!%p214_p9)
}
  0x33   :  { %42 = dma.hbm_to_vmem [thread:$0]  %s324_s2, 16, %s40_s29, [#allocation6]  }
  0x34   :  { %240 = dma.done.wait [#allocation3], 32  }
  0x35   :  { %241 = vsyncadd [#allocation3], 4294967264 }
  0x36   :  { %242 = dma.done.wait [#allocation6], 144  }
  0x37   :  { %243 = vsyncadd [#allocation6], 4294967152  ;;  %v251_v0 = vmov 0.0   ;;  %vm252_vm0 = vmmov 0   ;;  %v151_v1 = vld [vmem:[#allocation5] sm:$0xff]   ;;  %vm70_vm1 = vcmask 130048  }
  0x38   :  { %137 = vmatprep.subr.bf16.mxu0 %v251_v0  ;;  %139 = vmatprep.mubr.msk.bf16.mxu0 %vm252_vm0, %v251_v0  ;;  %v53_v2 = vld [vmem:[#allocation2] sm:$0x3]  ;;  %v132_v4 = vld [vmem:[#allocation7] ss:$0 sm:$0xff]  ;;  %s253_s22 = smov [#allocation8]   ;;  %vm114_vm2 = vcmask 123904  }
  0x39   :  { %138 = vmatpush3.bf16.msra.mxu0 %v151_v1  ;;  %v54_v3 = vpack.c.bf16 %v53_v2, %v53_v2  ;;  %s122_s23 = sshll.u32 %s253_s22, 4  ;;  %s123_s23 = int_to_ptr.vmem [resolvable:$true] %s122_s23 }
  0x3a   :  { %s218_s2 = scalar_lea.vmem %s123_s23, 32  ;;  %p223_p11 = scmp.lt.s32.totalorder %s123_s23, %s123_s23 }
  0x3b   :  { %p219_p10 = scmp.ne.s32.totalorder %s123_s23, %s218_s2  ;;  %p224_p12 = scmp.lt.s32.totalorder %s218_s2, %s218_s2 }
  0x3c   :  { %140 = vmatmul.mubr.msk.bf16.vlgmr.msra.gmra.mrb[0].mxu0 %vm70_vm1, %v54_v3 }
  0x3d   :  { %p225_p13 = por %p224_p12, %p223_p11 }
  0x3f   :  { %p226_p0 = pnand %p225_p13, %p219_p10 }
 0x10f   :  { %v108_v5 = vpop.f32.mrb[0].mxu0 }
 0x110   :  { %v109_v6 = vadd.f32 %v132_v4, %v108_v5  ;;  %v141_v7 = vpop.f32.mrb[1].mxu0 }
 0x111   :  { %v111_v8 = vpop.f32.mrb[2].mxu0 }
 0x112   :  { %v142_v9 = vpop.f32.mrb[3].mxu0  ;;  %115 = vst.msk [vmem:[#allocation8] sm:$0x3] %vm114_vm2, %v109_v6 }
 0x113   :  { %229 = shalt.err (!%p226_p0)
}
 0x114   :  { %s230_s26 = scalar_lea.hbm %s325_s3, 32 }
 0x115   :  { %p231_p1 = scmp.ne.s32.totalorder %s325_s3, %s230_s26  ;;  %p234_p2 = scmp.lt.u32.totalorder %s230_s26, %s325_s3 }
 0x117   :  { %p236_p3 = pnand %p234_p2, %p231_p1 }
 0x119   :  { %239 = shalt.err (!%p236_p3)
}
 0x11a   :  { %125 = dma.vmem_to_hbm [thread:$0]  %s123_s23, 32, %s325_s3, [#allocation4]  }
 0x11b   :  { %244 = dma.done.wait [#allocation4], 32  }
 0x11c   :  { %245 = vsyncadd [#allocation4], 4294967264 }
 0x11d   :  { %129 = vsyncpa [#allocation3], 1 }
 0x11e   :  { %130 = vsyncpa [#allocation6], 1 }
 0x11f   :  { %131 = vsyncpa [#allocation4], 1 }

// kernel: localization_forward.5
= control target key start
LH: loop header
LB: loop body
LE: loop exit
PB: predicated region body
PF: predicated region fallthrough
CT: control target
= control target key end

     0   :  { %13 = vsyncpa [#allocation3], 0  ;;  %s886_s0 = inlined_call_operand.hbm [shape: f32[2,8,32], index: 0, kind: input, shape index: {}]   ;;  %s887_s1 = inlined_call_operand.hbm [shape: bf16[32,16], index: 1, kind: input, shape index: {}]   ;;  %s888_s2 = inlined_call_operand.hbm [shape: f32[1,16], index: 2, kind: input, shape index: {}]   ;;  %s889_s3 = inlined_call_operand.hbm [shape: f32[2,16], index: 3, kind: input, shape index: {}]   ;;  %s890_s4 = inlined_call_operand.hbm [shape: f32[2,1], index: 4, kind: input, shape index: {}]   ;;  %s891_s5 = inlined_call_operand.hbm [shape: f32[2,8], index: 5, kind: input, shape index: {}]   ;;  %s892_s6 = inlined_call_operand.hbm [shape: f32[2,8], index: 6, kind: output, shape index: {0}]   ;;  %s893_s7 = inlined_call_operand.hbm [shape: f32[2,8,16], index: 7, kind: output, shape index: {1}]  }
   0x1   :  { %14 = vsyncpa [#allocation6], 0 }
   0x2   :  { %15 = vsyncpa [#allocation9], 0 }
   0x3   :  { %16 = vsyncpa [#allocation12], 0 }
   0x4   :  { %17 = vsyncpa [#allocation4], 0 }
   0x5   :  { %18 = vsyncpa [#allocation15], 0  ;;  %s675_s24 = smov [#allocation5]   ;;  %s487_s28 = scalar_lea.hbm %s887_s1, 256 }
   0x6   :  { %s36_s25 = sshll.u32 %s675_s24, 4  ;;  %p488_p0 = scmp.ne.s32.totalorder %s887_s1, %s487_s28  ;;  %s37_s25 = int_to_ptr.vmem [resolvable:$true] %s36_s25 }
   0x7   :  { %p491_p1 = scmp.lt.u32.totalorder %s487_s28, %s887_s1 }
   0x9   :  { %p493_p2 = pnand %p491_p1, %p488_p0 }
   0xb   :  { %496 = shalt.err (!%p493_p2)
}
   0xc   :  { %s497_s10 = scalar_lea.vmem %s37_s25, 256  ;;  %p502_p4 = scmp.lt.s32.totalorder %s37_s25, %s37_s25 }
   0xd   :  { %p498_p3 = scmp.ne.s32.totalorder %s37_s25, %s497_s10  ;;  %p503_p5 = scmp.lt.s32.totalorder %s497_s10, %s497_s10 }
   0xf   :  { %p504_p6 = por %p503_p5, %p502_p4 }
  0x11   :  { %p505_p7 = pnand %p504_p6, %p498_p3 }
  0x13   :  { %508 = shalt.err (!%p505_p7)
}
  0x14   :  { %s676_s11 = smov 64   ;;  %s677_s12 = smov 4  }
  0x15   :  { %42 = dma.hbm_to_vmem [thread:$0]  %s887_s1, 256, %s37_s25, [#allocation6], %s676_s11, %s676_s11, %s677_s12  }
  0x16   :  { %s678_s15 = smov [#allocation8]   ;;  %s679_s17 = smov [#allocation2]  }
  0x17   :  { %s59_s16 = sshll.u32 %s678_s15, 4  ;;  %s24_s18 = sshll.u32 %s679_s17, 4  ;;  %s60_s16 = int_to_ptr.vmem [resolvable:$true] %s59_s16  ;;  %s25_s18 = int_to_ptr.vmem [resolvable:$true] %s24_s18 }
  0x18   :  { %s509_s21 = scalar_lea.hbm %s889_s3, 32 }
  0x19   :  { %p510_p8 = scmp.ne.s32.totalorder %s889_s3, %s509_s21  ;;  %p513_p9 = scmp.lt.u32.totalorder %s509_s21, %s889_s3 }
  0x1b   :  { %p515_p10 = pnand %p513_p9, %p510_p8 }
  0x1d   :  { %518 = shalt.err (!%p515_p10)
}
  0x1e   :  { %s519_s1 = scalar_lea.vmem %s60_s16, 32  ;;  %p524_p12 = scmp.lt.s32.totalorder %s60_s16, %s60_s16 }
  0x1f   :  { %p520_p11 = scmp.ne.s32.totalorder %s60_s16, %s519_s1  ;;  %p525_p13 = scmp.lt.s32.totalorder %s519_s1, %s519_s1 }
  0x21   :  { %p526_p0 = por %p525_p13, %p524_p12 }
  0x23   :  { %p527_p1 = pnand %p526_p0, %p520_p11 }
  0x25   :  { %530 = shalt.err (!%p527_p1)
}
  0x26   :  { %62 = dma.hbm_to_vmem [thread:$0]  %s889_s3, 32, %s60_s16, [#allocation9]  }
  0x27   :  { %s531_s30 = scalar_lea.hbm %s886_s0, 256 }
  0x28   :  { %p532_p2 = scmp.ne.s32.totalorder %s886_s0, %s531_s30  ;;  %p535_p3 = scmp.lt.u32.totalorder %s531_s30, %s886_s0 }
  0x2a   :  { %p537_p4 = pnand %p535_p3, %p532_p2 }
  0x2c   :  { %540 = shalt.err (!%p537_p4)
}
  0x2d   :  { %s541_s12 = scalar_lea.vmem %s25_s18, 256  ;;  %p546_p6 = scmp.lt.s32.totalorder %s25_s18, %s25_s18 }
  0x2e   :  { %p542_p5 = scmp.ne.s32.totalorder %s25_s18, %s541_s12  ;;  %p547_p7 = scmp.lt.s32.totalorder %s541_s12, %s541_s12 }
  0x30   :  { %p548_p8 = por %p547_p7, %p546_p6 }
  0x32   :  { %p549_p9 = pnand %p548_p8, %p542_p5 }
  0x34   :  { %552 = shalt.err (!%p549_p9)
}
  0x35   :  { %s680_s3 = smov 128   ;;  %s681_s13 = smov 8  }
  0x36   :  { %30 = dma.hbm_to_vmem [thread:$0]  %s886_s0, 256, %s25_s18, [#allocation3], %s680_s3, %s680_s3, %s681_s13  }
  0x37   :  { %s682_s16 = smov [#allocation7]   ;;  %s683_s19 = smov [#allocation10]  }
  0x38   :  { %s49_s17 = sshll.u32 %s682_s16, 4  ;;  %s69_s20 = sshll.u32 %s683_s19, 4  ;;  %s50_s17 = int_to_ptr.vmem [resolvable:$true] %s49_s17  ;;  %s70_s20 = int_to_ptr.vmem [resolvable:$true] %s69_s20 }
  0x39   :  { %s553_s23 = scalar_lea.hbm %s888_s2, 16 }
  0x3a   :  { %p554_p10 = scmp.ne.s32.totalorder %s888_s2, %s553_s23  ;;  %p557_p11 = scmp.lt.u32.totalorder %s553_s23, %s888_s2 }
  0x3c   :  { %p559_p12 = pnand %p557_p11, %p554_p10 }
  0x3e   :  { %562 = shalt.err (!%p559_p12)
}
  0x3f   :  { %s563_s0 = scalar_lea.vmem %s50_s17, 16  ;;  %s567_s18 = scalar_lea.vmem %s50_s17, 32 }
  0x40   :  { %p564_p13 = scmp.ne.s32.totalorder %s50_s17, %s563_s0  ;;  %p568_p0 = scmp.lt.s32.totalorder %s50_s17, %s50_s17 }
  0x41   :  { %p569_p1 = scmp.lt.s32.totalorder %s567_s18, %s563_s0 }
  0x43   :  { %p570_p2 = por %p569_p1, %p568_p0 }
  0x45   :  { %p571_p3 = pnand %p570_p2, %p564_p13 }
  0x47   :  { %574 = shalt.err (!%p571_p3)
}
  0x48   :  { %52 = dma.hbm_to_vmem [thread:$0]  %s888_s2, 16, %s50_s17, [#allocation6]  }
  0x49   :  { %s575_s8 = scalar_lea.hbm %s890_s4, 32 }
  0x4a   :  { %p576_p4 = scmp.ne.s32.totalorder %s890_s4, %s575_s8  ;;  %p579_p5 = scmp.lt.u32.totalorder %s575_s8, %s890_s4 }
  0x4c   :  { %p581_p6 = pnand %p579_p5, %p576_p4 }
  0x4e   :  { %584 = shalt.err (!%p581_p6)
}
  0x4f   :  { %s585_s14 = scalar_lea.vmem %s70_s20, 32  ;;  %p590_p8 = scmp.lt.s32.totalorder %s70_s20, %s70_s20 }
  0x50   :  { %p586_p7 = scmp.ne.s32.totalorder %s70_s20, %s585_s14  ;;  %p591_p9 = scmp.lt.s32.totalorder %s585_s14, %s585_s14 }
  0x52   :  { %p592_p10 = por %p591_p9, %p590_p8 }
  0x54   :  { %p593_p11 = pnand %p592_p10, %p586_p7 }
  0x56   :  { %596 = shalt.err (!%p593_p11)
}
  0x57   :  { %72 = dma.hbm_to_vmem [thread:$0]  %s890_s4, 32, %s70_s20, [#allocation9]  }
  0x58   :  { %s684_s16 = smov [#allocation11]   ;;  %s597_s22 = scalar_lea.hbm %s891_s5, 32 }
  0x59   :  { %s79_s17 = sshll.u32 %s684_s16, 4  ;;  %p598_p12 = scmp.ne.s32.totalorder %s891_s5, %s597_s22  ;;  %s80_s17 = int_to_ptr.vmem [resolvable:$true] %s79_s17 }
  0x5a   :  { %p601_p13 = scmp.lt.u32.totalorder %s597_s22, %s891_s5 }
  0x5c   :  { %p603_p0 = pnand %p601_p13, %p598_p12 }
  0x5e   :  { %606 = shalt.err (!%p603_p0)
}
  0x5f   :  { %s607_s25 = scalar_lea.vmem %s80_s17, 32  ;;  %p612_p2 = scmp.lt.s32.totalorder %s80_s17, %s80_s17 }
  0x60   :  { %p608_p1 = scmp.ne.s32.totalorder %s80_s17, %s607_s25  ;;  %p613_p3 = scmp.lt.s32.totalorder %s607_s25, %s607_s25 }
  0x62   :  { %p614_p4 = por %p613_p3, %p612_p2 }
  0x64   :  { %p615_p5 = pnand %p614_p4, %p608_p1 }
  0x66   :  { %618 = shalt.err (!%p615_p5)
}
  0x67   :  { %82 = dma.hbm_to_vmem [thread:$0]  %s891_s5, 32, %s80_s17, [#allocation12]  }
  0x68   :  { %663 = dma.done.wait [#allocation3], 256  }
  0x69   :  { %664 = vsyncadd [#allocation3], 4294967040 }
  0x6a   :  { %665 = dma.done.wait [#allocation6], 272  }
  0x6b   :  { %666 = vsyncadd [#allocation6], 4294967024 }
  0x6c   :  { %667 = dma.done.wait [#allocation9], 64  }
  0x6d   :  { %668 = vsyncadd [#allocation9], 4294967232 }
  0x6e   :  { %669 = dma.done.wait [#allocation12], 32  }
  0x6f   :  { %670 = vsyncadd [#allocation12], 4294967264  ;;  %v685_v0 = vmov 0.0   ;;  %vm686_vm0 = vmmov 0   ;;  %v475_v1 = vld [vmem:[#allocation5] sm:$0xff]   ;;  %v476_v2 = vld [vmem:[#allocation5 + $0x8] sm:$0xff]   ;;  %v192_v6 = vlaneseq }
  0x70   :  { %449 = vmatprep.subr.bf16.mxu0 %v685_v0  ;;  %453 = vmatprep.mubr.msk.bf16.mxu0 %vm686_vm0, %v685_v0  ;;  %v102_v3 = vld [vmem:[#allocation2] sm:$0xff]  ;;  %v103_v4 = vld [vmem:[#allocation2 + $0x8] sm:$0xff]  ;;  %vm134_vm1 = vcmask 261120   ;;  %v687_v12 = vmov 0   ;;  %v688_v18 = vmov 1966171168  }
  0x71   :  { %450 = vmatpush3.bf16.msra.mxu0 %v475_v1  ;;  %v445_v5 = vpack.c.bf16 %v103_v4, %v102_v3  ;;  %v222_v7 = vld [vmem:[#allocation10] sm:$0x3]  ;;  %v193_v9 = vshrl.u32 %v192_v6, 7  ;;  %v272_v10 = vand.u32 127, %v192_v6  ;;  %473 = vset.pattern.permute.xlu1 %v687_v12  ;;  %v243_v13 = vld [vmem:[#allocation11] sm:$0x3]  ;;  %v190_v19 = vunpack.c.l.s4 %v688_v18 }
  0x72   :  { %451 = vmatprep.subr.bf16.mxu0 %v685_v0  ;;  %v224_v8 = vmax.f32 %v222_v7, 1.0  ;;  %474 = vset.pattern.permute.xlu0 %v687_v12  ;;  %vm223_vm2 = vcmp.gt.f32.partialorder %v222_v7, 0.0  ;;  %v444_v21 = vld.sshfl [vmem:[#allocation8] sm:$0x11 pattern:$0x75316420] }
  0x73   :  { %v806_v11 = vsub.s32 %v272_v10, %v193_v9  ;;  %v808_v15 = vsub.s32 0, %v193_v9  ;;  %v191_v20 = vunpack.c.0.s8 %v190_v19  ;;  %v188_v23 = vcombine.high %v444_v21, %v444_v21  ;;  %v439_v26 = vld [vmem:[#allocation7] ss:$0 sm:$0xff]  ;;  %s689_s5 = smov [#allocation14]   ;;  %s690_s18 = smov [#allocation13]  }
  0x74   :  { %477 = vrsqrt.f32 %v224_v8  ;;  %vm215_vm3 = vcmask 130048   ;;  %v821_v39 = vsub.s32 1, %v193_v9  ;;  %vm281_vm4 = vcmask 1041409   ;;  %s420_s0 = sshll.u32 %s689_s5, 4  ;;  %s411_s27 = sshll.u32 %s690_s18, 4  ;;  %s421_s0 = int_to_ptr.vmem [resolvable:$true] %s420_s0  ;;  %s848_s27 = int_to_ptr.vmem [resolvable:$true] %s411_s27 }
  0x75   :  { %452 = vmatpush3.bf16.msra.mxu0 %v476_v2  ;;  %v248_v17 = vrot.slane %v243_v13, %v808_v15  ;;  %v194_v22 = vsub.s32 %v191_v20, %v193_v9  ;;  %vm284_vm5 = vcmask 58368   ;;  %s619_s28 = scalar_lea.vmem %s421_s0, 256  ;;  %p624_p7 = scmp.lt.s32.totalorder %s421_s0, %s421_s0 }
  0x76   :  { %v255_v40 = vrot.slane %v243_v13, %v821_v39  ;;  %p620_p6 = scmp.ne.s32.totalorder %s421_s0, %s619_s28  ;;  %p625_p8 = scmp.lt.s32.totalorder %s619_s28, %s619_s28 }
  0x77   :  { %v195_v24 = vrot.slane %v444_v21, %v194_v22  ;;  %v202_v25 = vrot.slane %v188_v23, %v194_v22 }
  0x78   :  { %454 = vmatmul.mubr.msk.bf16.vlgmr.msra.gmra.mrb[0].mxu0 %vm134_vm1, %v445_v5  ;;  %p626_p9 = por %p625_p8, %p624_p7 }
  0x79   :  { %v206_v27 = vrot.slane %v195_v24, %v808_v15  ;;  %v210_v31 = vrot.slane %v202_v25, %v808_v15 }
  0x7a   :  { %p627_p10 = pnand %p626_p9, %p620_p6 }
  0x7e   :  { %v478_v14 = vpop.eup %477 }
  0x7f   :  { %v226_v16 = vsel %vm223_vm2, %v478_v14, 0.0 }
  0x80   :  { %229 = vperm.xlu1 %473, %v226_v16  }
  0x84   :  { %250 = vbcast.lane.b32.xlu1 %v248_v17, 256 }
  0xff   :  { %v230_v41 = vpop.permute.xlu1 %229 }
 0x100   :  { %v234_v42 = vrot.slane %v230_v41, %v808_v15  ;;  %v238_v48 = vrot.slane %v230_v41, %v821_v39 }
 0x103   :  { %v251_v44 = vpop.permute.xlu1 %250 }
 0x14b   :  { %v172_v28 = vpop.f32.mrb[0].mxu0 }
 0x14c   :  { %v812_v29 = vadd.f32 %v439_v26, %v172_v28  ;;  %v455_v30 = vpop.f32.mrb[1].mxu0 }
 0x14d   :  { %v175_v32 = vpop.f32.mrb[2].mxu0 }
 0x14e   :  { %v815_v33 = vadd.f32 %v439_v26, %v175_v32  ;;  %v456_v34 = vpop.f32.mrb[3].mxu0  ;;  %v213_v35 = vmul.f32 %v206_v27, %v812_v29 }
 0x150   :  { %v216_v36 = vsel %vm215_vm3, %v213_v35, 0.0  ;;  %v214_v37 = vmul.f32 %v210_v31, %v815_v33 }
 0x151   :  { %217 = vadd.xlane.f32.xlu0 %v216_v36 }
 0x152   :  { %v219_v38 = vsel %vm215_vm3, %v214_v37, 0.0 }
 0x155   :  { %220 = vadd.xlane.f32.xlu0 %v219_v38 }
 0x16b   :  { %257 = vbcast.lane.b32.xlu0 %v255_v40, 256 }
 0x1de   :  { %v218_v43 = vpop.xlane.xlu0 %217 }
 0x1df   :  { %v241_v45 = vmul.f32 %v234_v42, %v218_v43 }
 0x1e1   :  { %v261_v46 = vmul.f32 %v251_v44, %v241_v45 }
 0x1e2   :  { %v221_v47 = vpop.xlane.xlu0 %220 }
 0x1e3   :  { %266 = vperm.xlu1 %473, %v261_v46   ;;  %v242_v49 = vmul.f32 %v238_v48, %v221_v47 }
 0x1e6   :  { %v258_v50 = vpop.permute.xlu0 %257 }
 0x1e7   :  { %v262_v51 = vmul.f32 %v258_v50, %v242_v49 }
 0x1e9   :  { %269 = vperm.xlu1 %473, %v262_v51  }
 0x262   :  { %v267_v52 = vpop.permute.xlu1 %266 }
 0x263   :  { %v276_v54 = vrot.slane %v267_v52, %v806_v11 }
 0x268   :  { %v270_v53 = vpop.permute.xlu1 %269 }
 0x269   :  { %v280_v55 = vrot.slane %v270_v53, %v806_v11 }
 0x26b   :  { %v282_v56 = vsel %vm281_vm4, %v280_v55, %v276_v54 }
 0x26c   :  { %v285_v57 = vsel %vm284_vm5, %v282_v56, -inf }
 0x26d   :  { %286 = vmax.xlane.f32.xlu1 %v285_v57 }
 0x2fa   :  { %v287_v58 = vpop.xlane.xlu1 %286 }
 0x2fb   :  { %v292_v59 = vrot.slane %v287_v58, %v808_v15  ;;  %v296_v60 = vrot.slane %v287_v58, %v821_v39 }
 0x2fd   :  { %v299_v61 = vsub.f32 %v261_v46, %v292_v59  ;;  %v300_v62 = vsub.f32 %v262_v51, %v296_v60 }
 0x2ff   :  { %v301_v63 = vmul.f32 1.442695, %v299_v61  ;;  %v303_v0 = vmul.f32 1.442695, %v300_v62 }
 0x301   :  { %479 = vpow2.f32 %v301_v63 }
 0x302   :  { %481 = vpow2.f32 %v303_v0 }
 0x30b   :  { %v480_v1 = vpop.eup %479 }
 0x30c   :  { %308 = vperm.xlu0 %474, %v480_v1   ;;  %v482_v2 = vpop.eup %481 }
 0x310   :  { %311 = vperm.xlu0 %474, %v482_v2  }
 0x38b   :  { %v309_v3 = vpop.permute.xlu0 %308 }
 0x38c   :  { %v316_v5 = vrot.slane %v309_v3, %v806_v11 }
 0x38f   :  { %v312_v4 = vpop.permute.xlu0 %311 }
 0x390   :  { %v320_v6 = vrot.slane %v312_v4, %v806_v11 }
 0x392   :  { %v321_v7 = vsel %vm281_vm4, %v320_v6, %v316_v5 }
 0x393   :  { %v323_v8 = vsel %vm284_vm5, %v321_v7, 0.0 }
 0x394   :  { %324 = vadd.xlane.f32.xlu0 %v323_v8 }
 0x421   :  { %v325_v9 = vpop.xlane.xlu0 %324 }
 0x422   :  { %483 = vrcp.f32 %v325_v9 }
 0x42c   :  { %v484_v10 = vpop.eup %483 }
 0x42d   :  { %v331_v12 = vrot.slane %v484_v10, %v808_v15  ;;  %v335_v13 = vrot.slane %v484_v10, %v821_v39 }
 0x42f   :  { %v338_v14 = vmul.f32 %v480_v1, %v331_v12  ;;  %v339_v17 = vmul.f32 %v482_v2, %v335_v13 }
 0x431   :  { %v340_v16 = vmul.f32 %v338_v14, %v251_v44  ;;  %v341_v18 = vmul.f32 %v339_v17, %v258_v50 }
 0x433   :  { %345 = vperm.xlu1 %473, %v340_v16  }
 0x437   :  { %348 = vperm.xlu1 %473, %v341_v18  }
 0x4b2   :  { %v346_v19 = vpop.permute.xlu1 %345 }
 0x4b3   :  { %v353_v21 = vrot.slane %v346_v19, %v806_v11 }
 0x4b6   :  { %v349_v20 = vpop.permute.xlu1 %348 }
 0x4b7   :  { %v357_v22 = vrot.slane %v349_v20, %v806_v11 }
 0x4b9   :  { %v358_v23 = vsel %vm281_vm4, %v357_v22, %v353_v21 }
 0x4ba   :  { %v360_v24 = vsel %vm284_vm5, %v358_v23, 0.0 }
 0x4bb   :  { %361 = vadd.xlane.f32.xlu0 %v360_v24 }
 0x548   :  { %v362_v25 = vpop.xlane.xlu0 %361 }
 0x549   :  { %v363_v26 = vadd.f32 1e-13, %v362_v25 }
 0x54b   :  { %485 = vrcp.f32 %v363_v26 }
 0x555   :  { %v486_v27 = vpop.eup %485 }
 0x556   :  { %v373_v28 = vrot.slane %v486_v27, %v821_v39  ;;  %v369_v30 = vrot.slane %v486_v27, %v808_v15 }
 0x558   :  { %v377_v31 = vmul.f32 %v373_v28, %v341_v18  ;;  %v376_v32 = vmul.f32 %v369_v30, %v340_v16 }
 0x55a   :  { %v379_v34 = vadd.f32 1e-13, %v377_v31  ;;  %v378_v35 = vadd.f32 1e-13, %v376_v32 }
 0x55c   :  { %386 = vperm.xlu0 %474, %v379_v34   ;;  %383 = vperm.xlu1 %473, %v378_v35  }
 0x5db   :  { %v387_v36 = vpop.permute.xlu0 %386  ;;  %v384_v37 = vpop.permute.xlu1 %383 }
 0x5dc   :  { %v395_v38 = vrot.slane %v387_v36, %v806_v11  ;;  %v402_v40 = vmul.f32 %v387_v36, %v815_v33  ;;  %v391_v39 = vrot.slane %v384_v37, %v806_v11  ;;  %v401_v15 = vmul.f32 %v384_v37, %v812_v29 }
 0x5de   :  { %404 = vst.msk [vmem:[#allocation14 + $0x8] sm:$0xff] %vm215_vm3, %v402_v40  ;;  %403 = vst.msk [vmem:[#allocation14] sm:$0xff] %vm215_vm3, %v401_v15  ;;  %v396_v41 = vsel %vm281_vm4, %v395_v38, %v391_v39 }
 0x5df   :  { %398 = vst.msk [vmem:[#allocation13] sm:$0x3] %vm284_vm5, %v396_v41 }
 0x5e0   :  { %630 = shalt.err (!%p627_p10)
}
 0x5e1   :  { %s631_s8 = scalar_lea.hbm %s893_s7, 256 }
 0x5e2   :  { %p632_p11 = scmp.ne.s32.totalorder %s893_s7, %s631_s8  ;;  %p635_p12 = scmp.lt.u32.totalorder %s631_s8, %s893_s7 }
 0x5e4   :  { %p637_p13 = pnand %p635_p12, %p632_p11 }
 0x5e6   :  { %640 = shalt.err (!%p637_p13)
}
 0x5e7   :  { %426 = dma.vmem_to_hbm [thread:$0]  %s421_s0, 256, %s893_s7, [#allocation15], %s680_s3, %s680_s3, %s681_s13  }
 0x5e8   :  { %s641_s15 = scalar_lea.vmem %s848_s27, 32  ;;  %p646_p1 = scmp.lt.s32.totalorder %s848_s27, %s848_s27 }
 0x5e9   :  { %p642_p0 = scmp.ne.s32.totalorder %s848_s27, %s641_s15  ;;  %p647_p2 = scmp.lt.s32.totalorder %s641_s15, %s641_s15 }
 0x5eb   :  { %p648_p3 = por %p647_p2, %p646_p1 }
 0x5ed   :  { %p649_p4 = pnand %p648_p3, %p642_p0 }
 0x5ef   :  { %652 = shalt.err (!%p649_p4)
}
 0x5f0   :  { %s653_s19 = scalar_lea.hbm %s892_s6, 32 }
 0x5f1   :  { %p654_p5 = scmp.ne.s32.totalorder %s892_s6, %s653_s19  ;;  %p657_p6 = scmp.lt.u32.totalorder %s653_s19, %s892_s6 }
 0x5f3   :  { %p659_p7 = pnand %p657_p6, %p654_p5 }
 0x5f5   :  { %662 = shalt.err (!%p659_p7)
}
 0x5f6   :  { %414 = dma.vmem_to_hbm [thread:$0]  %s848_s27, 32, %s892_s6, [#allocation4]  }
 0x5f7   :  { %671 = dma.done.wait [#allocation4], 32  }
 0x5f8   :  { %672 = vsyncadd [#allocation4], 4294967264 }
 0x5f9   :  { %673 = dma.done.wait [#allocation15], 256  }
 0x5fa   :  { %674 = vsyncadd [#allocation15], 4294967040 }
 0x5fb   :  { %433 = vsyncpa [#allocation3], 1 }
 0x5fc   :  { %434 = vsyncpa [#allocation6], 1 }
 0x5fd   :  { %435 = vsyncpa [#allocation9], 1 }
 0x5fe   :  { %436 = vsyncpa [#allocation12], 1 }
 0x5ff   :  { %437 = vsyncpa [#allocation4], 1 }
 0x600   :  { %438 = vsyncpa [#allocation15], 1 }

// kernel: localization_forward.7
= control target key start
LH: loop header
LB: loop body
LE: loop exit
PB: predicated region body
PF: predicated region fallthrough
CT: control target
= control target key end

     0   :  { %17 = vsyncpa [#allocation3], 0  ;;  %s1324_s0 = inlined_call_operand.hbm [shape: f32[2,8,32], index: 0, kind: input, shape index: {}]   ;;  %s1325_s1 = inlined_call_operand.hbm [shape: f32[32,2], index: 1, kind: input, shape index: {}]   ;;  %s1326_s2 = inlined_call_operand.hbm [shape: f32[1,2], index: 2, kind: input, shape index: {}]   ;;  %s1327_s3 = inlined_call_operand.hbm [shape: f32[2,8], index: 3, kind: input, shape index: {}]   ;;  %s1328_s4 = inlined_call_operand.hbm [shape: f32[2,8], index: 4, kind: input, shape index: {}]   ;;  %s1329_s5 = inlined_call_operand.hbm [shape: f32[2,8], index: 5, kind: input, shape index: {}]   ;;  %s1330_s6 = inlined_call_operand.hbm [shape: f32[2,8], index: 6, kind: input, shape index: {}]   ;;  %s1331_s7 = inlined_call_operand.hbm [shape: f32[2,8], index: 7, kind: input, shape index: {}]   ;;  %s1332_s8 = inlined_call_operand.hbm [shape: f32[2,8], index: 8, kind: output, shape index: {0}]   ;;  %s1333_s9 = inlined_call_operand.hbm [shape: f32[2,8], index: 9, kind: output, shape index: {1}]   ;;  %s1334_s10 = inlined_call_operand.hbm [shape: f32[2,1], index: 10, kind: output, shape index: {2}]   ;;  %s1335_s11 = inlined_call_operand.hbm [shape: f32[2,1], index: 11, kind: output, shape index: {3}]  }
   0x1   :  { %18 = vsyncpa [#allocation6], 0 }
   0x2   :  { %19 = vsyncpa [#allocation9], 0 }
   0x3   :  { %20 = vsyncpa [#allocation12], 0 }
   0x4   :  { %21 = vsyncpa [#allocation15], 0 }
   0x5   :  { %22 = vsyncpa [#allocation4], 0 }
   0x6   :  { %23 = vsyncpa [#allocation18], 0 }
   0x7   :  { %24 = vsyncpa [#allocation21], 0  ;;  %s984_s17 = smov [#allocation5]   ;;  %s985_s19 = smov [#allocation8]  }
   0x8   :  { %s42_s18 = sshll.u32 %s984_s17, 4  ;;  %s65_s20 = sshll.u32 %s985_s19, 4  ;;  %s43_s18 = int_to_ptr.vmem [resolvable:$true] %s42_s18  ;;  %s66_s20 = int_to_ptr.vmem [resolvable:$true] %s65_s20 }
   0x9   :  { %s704_s23 = scalar_lea.hbm %s1325_s1, 512 }
   0xa   :  { %p705_p0 = scmp.ne.s32.totalorder %s1325_s1, %s704_s23  ;;  %p708_p1 = scmp.lt.u32.totalorder %s704_s23, %s1325_s1 }
   0xc   :  { %p710_p2 = pnand %p708_p1, %p705_p0 }
   0xe   :  { %713 = shalt.err (!%p710_p2)
}
   0xf   :  { %s714_s28 = scalar_lea.vmem %s43_s18, 512  ;;  %p719_p4 = scmp.lt.s32.totalorder %s43_s18, %s43_s18 }
  0x10   :  { %p715_p3 = scmp.ne.s32.totalorder %s43_s18, %s714_s28  ;;  %p720_p5 = scmp.lt.s32.totalorder %s714_s28, %s714_s28 }
  0x12   :  { %p721_p6 = por %p720_p5, %p719_p4 }
  0x14   :  { %p722_p7 = pnand %p721_p6, %p715_p3 }
  0x16   :  { %725 = shalt.err (!%p722_p7)
}
  0x17   :  { %s986_s29 = smov 128   ;;  %s987_s30 = smov 8  }
  0x18   :  { %48 = dma.hbm_to_vmem [thread:$0]  %s1325_s1, 512, %s43_s18, [#allocation6], %s986_s29, %s986_s29, %s987_s30  }
  0x19   :  { %s726_s16 = scalar_lea.hbm %s1327_s3, 32 }
  0x1a   :  { %p727_p8 = scmp.ne.s32.totalorder %s1327_s3, %s726_s16  ;;  %p730_p9 = scmp.lt.u32.totalorder %s726_s16, %s1327_s3 }
  0x1c   :  { %p732_p10 = pnand %p730_p9, %p727_p8 }
  0x1e   :  { %735 = shalt.err (!%p732_p10)
}
  0x1f   :  { %s736_s23 = scalar_lea.vmem %s66_s20, 32  ;;  %p741_p12 = scmp.lt.s32.totalorder %s66_s20, %s66_s20 }
  0x20   :  { %p737_p11 = scmp.ne.s32.totalorder %s66_s20, %s736_s23  ;;  %p742_p13 = scmp.lt.s32.totalorder %s736_s23, %s736_s23 }
  0x22   :  { %p743_p0 = por %p742_p13, %p741_p12 }
  0x24   :  { %p744_p1 = pnand %p743_p0, %p737_p11 }
  0x26   :  { %747 = shalt.err (!%p744_p1)
}
  0x27   :  { %68 = dma.hbm_to_vmem [thread:$0]  %s1327_s3, 32, %s66_s20, [#allocation9]  }
  0x28   :  { %s988_s24 = smov [#allocation11]   ;;  %s989_s26 = smov [#allocation2]  }
  0x29   :  { %s85_s25 = sshll.u32 %s988_s24, 4  ;;  %s30_s27 = sshll.u32 %s989_s26, 4  ;;  %s86_s25 = int_to_ptr.vmem [resolvable:$true] %s85_s25  ;;  %s1087_s27 = int_to_ptr.vmem [resolvable:$true] %s30_s27 }
  0x2a   :  { %s748_s13 = scalar_lea.hbm %s1329_s5, 32 }
  0x2b   :  { %p749_p2 = scmp.ne.s32.totalorder %s1329_s5, %s748_s13  ;;  %p752_p3 = scmp.lt.u32.totalorder %s748_s13, %s1329_s5 }
  0x2d   :  { %p754_p4 = pnand %p752_p3, %p749_p2 }
  0x2f   :  { %757 = shalt.err (!%p754_p4)
}
  0x30   :  { %s758_s3 = scalar_lea.vmem %s86_s25, 32  ;;  %p763_p6 = scmp.lt.s32.totalorder %s86_s25, %s86_s25 }
  0x31   :  { %p759_p5 = scmp.ne.s32.totalorder %s86_s25, %s758_s3  ;;  %p764_p7 = scmp.lt.s32.totalorder %s758_s3, %s758_s3 }
  0x33   :  { %p765_p8 = por %p764_p7, %p763_p6 }
  0x35   :  { %p766_p9 = pnand %p765_p8, %p759_p5 }
  0x37   :  { %769 = shalt.err (!%p766_p9)
}
  0x38   :  { %88 = dma.hbm_to_vmem [thread:$0]  %s1329_s5, 32, %s86_s25, [#allocation12]  }
  0x39   :  { %s770_s23 = scalar_lea.hbm %s1324_s0, 256 }
  0x3a   :  { %p771_p10 = scmp.ne.s32.totalorder %s1324_s0, %s770_s23  ;;  %p774_p11 = scmp.lt.u32.totalorder %s770_s23, %s1324_s0 }
  0x3c   :  { %p776_p12 = pnand %p774_p11, %p771_p10 }
  0x3e   :  { %779 = shalt.err (!%p776_p12)
}
  0x3f   :  { %s780_s28 = scalar_lea.vmem %s1087_s27, 256  ;;  %p785_p0 = scmp.lt.s32.totalorder %s1087_s27, %s1087_s27 }
  0x40   :  { %p781_p13 = scmp.ne.s32.totalorder %s1087_s27, %s780_s28  ;;  %p786_p1 = scmp.lt.s32.totalorder %s780_s28, %s780_s28 }
  0x42   :  { %p787_p2 = por %p786_p1, %p785_p0 }
  0x44   :  { %p788_p3 = pnand %p787_p2, %p781_p13 }
  0x46   :  { %791 = shalt.err (!%p788_p3)
}
  0x47   :  { %36 = dma.hbm_to_vmem [thread:$0]  %s1324_s0, 256, %s1087_s27, [#allocation3], %s986_s29, %s986_s29, %s987_s30  }
  0x48   :  { %s990_s12 = smov [#allocation7]   ;;  %s991_s14 = smov [#allocation10]  }
  0x49   :  { %s55_s13 = sshll.u32 %s990_s12, 4  ;;  %s75_s15 = sshll.u32 %s991_s14, 4  ;;  %s56_s13 = int_to_ptr.vmem [resolvable:$true] %s55_s13  ;;  %s76_s15 = int_to_ptr.vmem [resolvable:$true] %s75_s15 }
  0x4a   :  { %s792_s3 = scalar_lea.hbm %s1326_s2, 16 }
  0x4b   :  { %p793_p4 = scmp.ne.s32.totalorder %s1326_s2, %s792_s3  ;;  %p796_p5 = scmp.lt.u32.totalorder %s792_s3, %s1326_s2 }
  0x4d   :  { %p798_p6 = pnand %p796_p5, %p793_p4 }
  0x4f   :  { %801 = shalt.err (!%p798_p6)
}
  0x50   :  { %s802_s0 = scalar_lea.vmem %s56_s13, 16  ;;  %s806_s29 = scalar_lea.vmem %s56_s13, 32 }
  0x51   :  { %p803_p7 = scmp.ne.s32.totalorder %s56_s13, %s802_s0  ;;  %p807_p8 = scmp.lt.s32.totalorder %s56_s13, %s56_s13 }
  0x52   :  { %p808_p9 = scmp.lt.s32.totalorder %s806_s29, %s802_s0 }
  0x54   :  { %p809_p10 = por %p808_p9, %p807_p8 }
  0x56   :  { %p810_p11 = pnand %p809_p10, %p803_p7 }
  0x58   :  { %813 = shalt.err (!%p810_p11)
}
  0x59   :  { %58 = dma.hbm_to_vmem [thread:$0]  %s1326_s2, 16, %s56_s13, [#allocation6]  }
  0x5a   :  { %s814_s18 = scalar_lea.hbm %s1328_s4, 32 }
  0x5b   :  { %p815_p12 = scmp.ne.s32.totalorder %s1328_s4, %s814_s18  ;;  %p818_p13 = scmp.lt.u32.totalorder %s814_s18, %s1328_s4 }
  0x5d   :  { %p820_p0 = pnand %p818_p13, %p815_p12 }
  0x5f   :  { %823 = shalt.err (!%p820_p0)
}
  0x60   :  { %s824_s25 = scalar_lea.vmem %s76_s15, 32  ;;  %p829_p2 = scmp.lt.s32.totalorder %s76_s15, %s76_s15 }
  0x61   :  { %p825_p1 = scmp.ne.s32.totalorder %s76_s15, %s824_s25  ;;  %p830_p3 = scmp.lt.s32.totalorder %s824_s25, %s824_s25 }
  0x63   :  { %p831_p4 = por %p830_p3, %p829_p2 }
  0x65   :  { %p832_p5 = pnand %p831_p4, %p825_p1 }
  0x67   :  { %835 = shalt.err (!%p832_p5)
}
  0x68   :  { %78 = dma.hbm_to_vmem [thread:$0]  %s1328_s4, 32, %s76_s15, [#allocation9]  }
  0x69   :  { %s992_s13 = smov [#allocation13]   ;;  %s993_s16 = smov [#allocation14]  }
  0x6a   :  { %s95_s14 = sshll.u32 %s992_s13, 4  ;;  %s105_s17 = sshll.u32 %s993_s16, 4  ;;  %s96_s14 = int_to_ptr.vmem [resolvable:$true] %s95_s14  ;;  %s106_s17 = int_to_ptr.vmem [resolvable:$true] %s105_s17 }
  0x6b   :  { %s836_s19 = scalar_lea.hbm %s1330_s6, 32 }
  0x6c   :  { %p837_p6 = scmp.ne.s32.totalorder %s1330_s6, %s836_s19  ;;  %p840_p7 = scmp.lt.u32.totalorder %s836_s19, %s1330_s6 }
  0x6e   :  { %p842_p8 = pnand %p840_p7, %p837_p6 }
  0x70   :  { %845 = shalt.err (!%p842_p8)
}
  0x71   :  { %s846_s4 = scalar_lea.vmem %s96_s14, 32  ;;  %p851_p10 = scmp.lt.s32.totalorder %s96_s14, %s96_s14 }
  0x72   :  { %p847_p9 = scmp.ne.s32.totalorder %s96_s14, %s846_s4  ;;  %p852_p11 = scmp.lt.s32.totalorder %s846_s4, %s846_s4 }
  0x74   :  { %p853_p12 = por %p852_p11, %p851_p10 }
  0x76   :  { %p854_p13 = pnand %p853_p12, %p847_p9 }
  0x78   :  { %857 = shalt.err (!%p854_p13)
}
  0x79   :  { %98 = dma.hbm_to_vmem [thread:$0]  %s1330_s6, 32, %s96_s14, [#allocation12]  }
  0x7a   :  { %s858_s1 = scalar_lea.hbm %s1331_s7, 32 }
  0x7b   :  { %p859_p0 = scmp.ne.s32.totalorder %s1331_s7, %s858_s1  ;;  %p862_p1 = scmp.lt.u32.totalorder %s858_s1, %s1331_s7 }
  0x7d   :  { %p864_p2 = pnand %p862_p1, %p859_p0 }
  0x7f   :  { %867 = shalt.err (!%p864_p2)
}
  0x80   :  { %s868_s5 = scalar_lea.vmem %s106_s17, 32  ;;  %p873_p4 = scmp.lt.s32.totalorder %s106_s17, %s106_s17 }
  0x81   :  { %p869_p3 = scmp.ne.s32.totalorder %s106_s17, %s868_s5  ;;  %p874_p5 = scmp.lt.s32.totalorder %s868_s5, %s868_s5 }
  0x83   :  { %p875_p6 = por %p874_p5, %p873_p4 }
  0x85   :  { %p876_p7 = pnand %p875_p6, %p869_p3 }
  0x87   :  { %879 = shalt.err (!%p876_p7)
}
  0x88   :  { %108 = dma.hbm_to_vmem [thread:$0]  %s1331_s7, 32, %s106_s17, [#allocation15]  }
  0x89   :  { %968 = dma.done.wait [#allocation3], 256  }
  0x8a   :  { %969 = vsyncadd [#allocation3], 4294967040 }
  0x8b   :  { %970 = dma.done.wait [#allocation6], 528  }
  0x8c   :  { %971 = vsyncadd [#allocation6], 4294966768 }
  0x8d   :  { %972 = dma.done.wait [#allocation9], 64  }
  0x8e   :  { %973 = vsyncadd [#allocation9], 4294967232 }
  0x8f   :  { %974 = dma.done.wait [#allocation12], 64  }
  0x90   :  { %975 = vsyncadd [#allocation12], 4294967232 }
  0x91   :  { %976 = dma.done.wait [#allocation15], 32  }
  0x92   :  { %977 = vsyncadd [#allocation15], 4294967264  ;;  %v230_v0 = vlaneseq  ;;  %vm146_vm0 = vcmask 261120   ;;  %v135_v5 = vld [vmem:[#allocation5] sm:$0xff]  ;;  %v136_v6 = vld [vmem:[#allocation5 + $0x8] sm:$0xff]  ;;  %v994_v17 = vmov 0  }
  0x93   :  { %v137_v7 = vld [vmem:[#allocation5 + $0x10] sm:$0xff]  ;;  %v643_v8 = vpack.c.bf16 %v136_v6, %v135_v5  ;;  %v138_v9 = vld [vmem:[#allocation5 + $0x18] sm:$0xff]  ;;  %v1176_v13 = vld [vmem:[#allocation8] sm:$0x3]  ;;  %667 = vset.pattern.permute.xlu1 %v994_v17  ;;  %v995_v18 = vmov 1   ;;  %vm266_vm1 = vcmask 1041409  }
  0x94   :  { %v231_v1 = vshrl.u32 %v230_v0, 7  ;;  %v257_v2 = vand.u32 127, %v230_v0  ;;  %v133_v10 = vld [vmem:[#allocation2] sm:$0xff]  ;;  %v647_v12 = vpack.c.bf16 %v138_v9, %v137_v7  ;;  %v134_v16 = vld [vmem:[#allocation2 + $0x8] sm:$0xff]  ;;  %668 = vset.pattern.permute.xlu0 %v995_v18  ;;  %v623_v20 = vld [vmem:[#allocation7] ss:$0 sm:$0xff] }
  0x95   :  { %640 = vmatprep.mubr.msk.f32.mxu0 %vm146_vm0, %v133_v10  ;;  %644 = vmatprep.subr.bf16.mxu0 %v643_v8  ;;  %vm269_vm2 = vcmask 58368   ;;  %vm515_vm3 = vcmp.gt.f32.partialorder %v1176_v13, 0.0  ;;  %s996_s7 = smov [#allocation17]   ;;  %s997_s12 = smov [#allocation16]  }
  0x96   :  { %v1169_v3 = vsub.s32 %v257_v2, %v231_v1  ;;  %v1171_v4 = vsub.s32 0, %v231_v1  ;;  %v1173_v11 = vsub.s32 1, %v231_v1  ;;  %646 = vmatpush3.bf16.msra.mxu0 %v643_v8  ;;  %s579_s2 = sshll.u32 %s996_s7, 4  ;;  %s569_s13 = sshll.u32 %s997_s12, 4  ;;  %s580_s2 = int_to_ptr.vmem [resolvable:$true] %s579_s2  ;;  %s570_s13 = int_to_ptr.vmem [resolvable:$true] %s569_s13 }
  0x97   :  { %648 = vmatprep.subr.bf16.mxu0 %v647_v12  ;;  %s880_s14 = scalar_lea.vmem %s580_s2, 32  ;;  %p885_p9 = scmp.lt.s32.totalorder %s580_s2, %s580_s2 }
  0x98   :  { %v233_v14 = vrot.slane %v1176_v13, %v1171_v4  ;;  %v240_v15 = vrot.slane %v1176_v13, %v1173_v11  ;;  %p881_p8 = scmp.ne.s32.totalorder %s580_s2, %s880_s14  ;;  %p886_p10 = scmp.lt.s32.totalorder %s880_s14, %s880_s14 }
  0x9a   :  { %235 = vbcast.lane.b32.xlu0 %v233_v14, 256  ;;  %650 = vmatpush3.bf16.msra.mxu0 %v647_v12  ;;  %p887_p11 = por %p886_p10, %p885_p9 }
  0x9c   :  { %p888_p12 = pnand %p887_p11, %p881_p8 }
  0x9d   :  { %641 = vmatmul.mubr.msk.f32.vlgmr.msra.gmra.mrb[0].mxu0 %vm146_vm0, %v134_v16 }
  0x9e   :  { %242 = vbcast.lane.b32.xlu0 %v240_v15, 256 }
 0x10c   :  { %v1185_v19 = vpop.permute.xlu0 %235 }
 0x110   :  { %v1187_v22 = vpop.permute.xlu0 %242 }
 0x170   :  { %v642_v21 = vpop.f32.mrb[0].mxu0 }
 0x171   :  { %v225_v23 = vadd.f32 %v642_v21, %v623_v20  ;;  %v219_v24 = vpop.f32.mrb[1].mxu0 }
 0x172   :  { %v220_v25 = vadd.f32 %v623_v20, %v219_v24 }
 0x173   :  { %v247_v26 = vmul.f32 %v1187_v22, %v225_v23 }
 0x174   :  { %v246_v27 = vmul.f32 %v1185_v19, %v220_v25 }
 0x175   :  { %254 = vperm.xlu1 %667, %v247_v26  }
 0x176   :  { %366 = vperm.xlu0 %668, %v246_v27  }
 0x179   :  { %251 = vperm.xlu1 %667, %v246_v27  }
 0x17a   :  { %670 = vset.pattern.permute.xlu0 %v994_v17 }
 0x17d   :  { %669 = vset.pattern.permute.xlu1 %v995_v18 }
 0x17e   :  { %369 = vperm.xlu1 %669, %v247_v26  }
 0x182   :  { %671 = vset.pattern.permute.xlu1 %v994_v17 }
 0x1f4   :  { %v255_v28 = vpop.permute.xlu1 %254 }
 0x1f5   :  { %v265_v30 = vrot.slane %v255_v28, %v1169_v3  ;;  %v367_v32 = vpop.permute.xlu0 %366 }
 0x1f6   :  { %v374_v36 = vrot.slane %v367_v32, %v1169_v3 }
 0x1f8   :  { %v252_v29 = vpop.permute.xlu1 %251 }
 0x1f9   :  { %v261_v31 = vrot.slane %v252_v29, %v1169_v3 }
 0x1fb   :  { %v267_v33 = vsel %vm266_vm1, %v265_v30, %v261_v31 }
 0x1fc   :  { %v270_v34 = vsel %vm269_vm2, %v267_v33, -inf }
 0x1fd   :  { %271 = vmax.xlane.f32.xlu1 %v270_v34  ;;  %v370_v35 = vpop.permute.xlu1 %369 }
 0x1fe   :  { %v378_v37 = vrot.slane %v370_v35, %v1169_v3 }
 0x200   :  { %v379_v38 = vsel %vm266_vm1, %v378_v37, %v374_v36 }
 0x201   :  { %v381_v39 = vsel %vm269_vm2, %v379_v38, -inf }
 0x202   :  { %382 = vmax.xlane.f32.xlu0 %v381_v39 }
 0x28a   :  { %v272_v40 = vpop.xlane.xlu1 %271 }
 0x28b   :  { %v277_v41 = vrot.slane %v272_v40, %v1171_v4  ;;  %v281_v42 = vrot.slane %v272_v40, %v1173_v11 }
 0x28d   :  { %v284_v43 = vsub.f32 %v246_v27, %v277_v41  ;;  %v285_v44 = vsub.f32 %v247_v26, %v281_v42 }
 0x28f   :  { %v286_v45 = vmul.f32 1.442695, %v284_v43  ;;  %v288_v46 = vmul.f32 1.442695, %v285_v44  ;;  %v383_v47 = vpop.xlane.xlu0 %382 }
 0x290   :  { %v388_v48 = vrot.slane %v383_v47, %v1171_v4  ;;  %v392_v49 = vrot.slane %v383_v47, %v1173_v11 }
 0x291   :  { %678 = vpow2.f32 %v286_v45 }
 0x292   :  { %680 = vpow2.f32 %v288_v46  ;;  %v395_v50 = vsub.f32 %v246_v27, %v388_v48  ;;  %v396_v51 = vsub.f32 %v247_v26, %v392_v49 }
 0x294   :  { %v397_v52 = vmul.f32 1.442695, %v395_v50  ;;  %v399_v53 = vmul.f32 1.442695, %v396_v51 }
 0x296   :  { %682 = vpow2.f32 %v397_v52 }
 0x297   :  { %684 = vpow2.f32 %v399_v53 }
 0x29b   :  { %v679_v54 = vpop.eup %678 }
 0x29c   :  { %v681_v55 = vpop.eup %680  ;;  %293 = vperm.xlu0 %670, %v679_v54  }
 0x29d   :  { %296 = vperm.xlu1 %671, %v681_v55  }
 0x2a0   :  { %v683_v56 = vpop.eup %682 }
 0x2a1   :  { %672 = vset.pattern.permute.xlu1 %v995_v18  ;;  %v685_v57 = vpop.eup %684 }
 0x2a2   :  { %404 = vperm.xlu1 %672, %v683_v56  }
 0x2a6   :  { %407 = vperm.xlu1 %672, %v685_v57  }
 0x2aa   :  { %673 = vset.pattern.permute.xlu1 %v994_v17 }
 0x31b   :  { %v294_v58 = vpop.permute.xlu0 %293 }
 0x31c   :  { %v297_v59 = vpop.permute.xlu1 %296  ;;  %v301_v60 = vrot.slane %v294_v58, %v1169_v3 }
 0x31d   :  { %v305_v61 = vrot.slane %v297_v59, %v1169_v3 }
 0x31f   :  { %v306_v62 = vsel %vm266_vm1, %v305_v61, %v301_v60 }
 0x320   :  { %v308_v63 = vsel %vm269_vm2, %v306_v62, 0.0 }
 0x321   :  { %v405_v0 = vpop.permute.xlu1 %404  ;;  %309 = vadd.xlane.f32.xlu1 %v308_v63  ;;  %v531_v63 = vld [vmem:[#allocation13] sm:$0x3] }
 0x322   :  { %v412_v2 = vrot.slane %v405_v0, %v1169_v3  ;;  %v552_v0 = vld [vmem:[#allocation10] sm:$0x3]  ;;  %vm532_vm6 = vcmp.gt.f32.partialorder %v531_v63, 0.0 }
 0x323   :  { %vm1257_vm7 = vmand %vm515_vm3, %vm532_vm6 }
 0x325   :  { %v408_v1 = vpop.permute.xlu1 %407 }
 0x326   :  { %v416_v5 = vrot.slane %v408_v1, %v1169_v3  ;;  %v553_v1 = vsub.f32 1.0, %v552_v0 }
 0x328   :  { %v417_v6 = vsel %vm266_vm1, %v416_v5, %v412_v2 }
 0x329   :  { %v419_v7 = vsel %vm269_vm2, %v417_v6, 0.0 }
 0x32a   :  { %420 = vadd.xlane.f32.xlu0 %v419_v7  ;;  %v554_v7 = vadd.f32 1e-12, %v553_v1 }
 0x3ae   :  { %v310_v8 = vpop.xlane.xlu1 %309 }
 0x3af   :  { %686 = vrcp.f32 %v310_v8 }
 0x3b7   :  { %v421_v9 = vpop.xlane.xlu0 %420 }
 0x3b8   :  { %688 = vrcp.f32 %v421_v9 }
 0x3b9   :  { %v687_v10 = vpop.eup %686 }
 0x3ba   :  { %v320_v12 = vrot.slane %v687_v10, %v1173_v11  ;;  %v316_v14 = vrot.slane %v687_v10, %v1171_v4  ;;  %v535_v10 = vsel %vm1257_vm7, %v531_v63, 1.0 }
 0x3bc   :  { %v324_v15 = vmul.f32 %v681_v55, %v320_v12  ;;  %v323_v16 = vmul.f32 %v679_v54, %v316_v14 }
 0x3be   :  { %v326_v20 = vmul.f32 %v324_v15, %v1187_v22  ;;  %v325_v21 = vmul.f32 %v323_v16, %v1185_v19 }
 0x3c0   :  { %333 = vperm.xlu0 %670, %v326_v20   ;;  %330 = vperm.xlu1 %673, %v325_v21  }
 0x3c2   :  { %v689_v23 = vpop.eup %688 }
 0x3c3   :  { %v427_v24 = vrot.slane %v689_v23, %v1171_v4  ;;  %v431_v25 = vrot.slane %v689_v23, %v1173_v11 }
 0x3c4   :  { %674 = vset.pattern.permute.xlu1 %v995_v18 }
 0x3c5   :  { %v434_v26 = vmul.f32 %v683_v56, %v427_v24  ;;  %v435_v28 = vmul.f32 %v685_v57, %v431_v25  ;;  %v514_v57 = vld [vmem:[#allocation11] sm:$0x3] }
 0x3c6   :  { %vm516_vm4 = vcmp.gt.f32.partialorder %v514_v57, 0.0 }
 0x3c7   :  { %v436_v27 = vmul.f32 %v434_v26, %v1185_v19  ;;  %v437_v29 = vmul.f32 %v435_v28, %v1187_v22  ;;  %vm1243_vm5 = vmand %vm515_vm3, %vm516_vm4 }
 0x3c9   :  { %441 = vperm.xlu1 %674, %v436_v27  }
 0x3cd   :  { %444 = vperm.xlu1 %674, %v437_v29  }
 0x3d1   :  { %675 = vset.pattern.permute.xlu1 %v994_v17 }
 0x43f   :  { %v331_v30 = vpop.permute.xlu1 %330  ;;  %v334_v31 = vpop.permute.xlu0 %333 }
 0x440   :  { %v338_v32 = vrot.slane %v331_v30, %v1169_v3  ;;  %v342_v33 = vrot.slane %v334_v31, %v1169_v3 }
 0x442   :  { %v343_v34 = vsel %vm266_vm1, %v342_v33, %v338_v32 }
 0x443   :  { %v345_v35 = vsel %vm269_vm2, %v343_v34, 0.0 }
 0x444   :  { %346 = vadd.xlane.f32.xlu1 %v345_v35 }
 0x448   :  { %v442_v36 = vpop.permute.xlu1 %441 }
 0x449   :  { %v449_v37 = vrot.slane %v442_v36, %v1169_v3 }
 0x44c   :  { %v445_v19 = vpop.permute.xlu1 %444 }
 0x44d   :  { %v453_v22 = vrot.slane %v445_v19, %v1169_v3 }
 0x44f   :  { %v454_v38 = vsel %vm266_vm1, %v453_v22, %v449_v37 }
 0x450   :  { %v456_v17 = vsel %vm269_vm2, %v454_v38, 0.0 }
 0x451   :  { %457 = vadd.xlane.f32.xlu0 %v456_v17 }
 0x4d1   :  { %v347_v39 = vpop.xlane.xlu1 %346 }
 0x4d2   :  { %v348_v40 = vadd.f32 1e-13, %v347_v39 }
 0x4d4   :  { %690 = vrcp.f32 %v348_v40 }
 0x4de   :  { %v691_v41 = vpop.eup %690  ;;  %v458_v42 = vpop.xlane.xlu0 %457 }
 0x4df   :  { %v459_v43 = vadd.f32 1e-13, %v458_v42  ;;  %v358_v44 = vrot.slane %v691_v41, %v1173_v11  ;;  %v354_v45 = vrot.slane %v691_v41, %v1171_v4 }
 0x4e1   :  { %692 = vrcp.f32 %v459_v43  ;;  %v362_v46 = vmul.f32 %v358_v44, %v326_v20  ;;  %v361_v47 = vmul.f32 %v354_v45, %v325_v21 }
 0x4e3   :  { %v364_v48 = vadd.f32 1e-13, %v362_v46  ;;  %v363_v49 = vadd.f32 1e-13, %v361_v47 }
 0x4e5   :  { %482 = vperm.xlu0 %670, %v364_v48   ;;  %479 = vperm.xlu1 %675, %v363_v49  }
 0x4e9   :  { %676 = vset.pattern.permute.xlu1 %v995_v18  ;;  %677 = vset.pattern.permute.xlu0 %v995_v18 }
 0x4eb   :  { %v693_v50 = vpop.eup %692 }
 0x4ec   :  { %v465_v51 = vrot.slane %v693_v50, %v1171_v4  ;;  %v469_v52 = vrot.slane %v693_v50, %v1173_v11  ;;  %v519_v4 = vsel %vm1243_vm5, %v514_v57, 1.0 }
 0x4ed   :  { %694 = vlog2.f32 %v519_v4 }
 0x4ee   :  { %v472_v53 = vmul.f32 %v465_v51, %v436_v27  ;;  %v473_v55 = vmul.f32 %v469_v52, %v437_v29  ;;  %v550_v27 = vld [vmem:[#allocation14] sm:$0x3] }
 0x4ef   :  { %v551_v28 = vsub.f32 1.0, %v550_v27 }
 0x4f0   :  { %v474_v54 = vadd.f32 1e-13, %v472_v53  ;;  %v475_v56 = vadd.f32 1e-13, %v473_v55 }
 0x4f2   :  { %498 = vperm.xlu1 %676, %v474_v54  }
 0x4f6   :  { %501 = vperm.xlu1 %676, %v475_v56  }
 0x4f7   :  { %v695_v2 = vpop.eup %694 }
 0x4f8   :  { %v523_v8 = vmul.f32 0.6931472, %v695_v2 }
 0x564   :  { %v480_v11 = vpop.permute.xlu1 %479  ;;  %v483_v18 = vpop.permute.xlu0 %482 }
 0x565   :  { %v487_v59 = vrot.slane %v480_v11, %v1169_v3  ;;  %v491_v60 = vrot.slane %v483_v18, %v1169_v3 }
 0x567   :  { %v492_v61 = vsel %vm266_vm1, %v491_v60, %v487_v59 }
 0x568   :  { %494 = vst.msk [vmem:[#allocation16] sm:$0x3] %vm269_vm2, %v492_v61  ;;  %v518_v62 = vsel %vm1243_vm5, %v492_v61, 1.0 }
 0x569   :  { %696 = vlog2.f32 %v518_v62 }
 0x56a   :  { %698 = vlog2.f32 %v554_v7 }
 0x56b   :  { %700 = vlog2.f32 %v535_v10 }
 0x571   :  { %v499_v6 = vpop.permute.xlu1 %498 }
 0x572   :  { %v506_v15 = vrot.slane %v499_v6, %v1169_v3 }
 0x573   :  { %v697_v9 = vpop.eup %696 }
 0x574   :  { %v521_v12 = vmul.f32 0.6931472, %v697_v9  ;;  %v699_v26 = vpop.eup %698 }
 0x575   :  { %v502_v14 = vpop.permute.xlu1 %501  ;;  %v556_v29 = vmul.f32 0.6931472, %v699_v26 }
 0x576   :  { %v510_v16 = vrot.slane %v502_v14, %v1169_v3  ;;  %v524_v20 = vsub.f32 %v521_v12, %v523_v8  ;;  %v701_v3 = vpop.eup %700 }
 0x577   :  { %v539_v30 = vmul.f32 0.6931472, %v701_v3  ;;  %v557_v33 = vmul.f32 %v556_v29, %v551_v28 }
 0x578   :  { %v511_v13 = vsel %vm266_vm1, %v510_v16, %v506_v15  ;;  %v525_v21 = vmul.f32 %v524_v20, %v514_v57 }
 0x579   :  { %513 = vst.msk [vmem:[#allocation17] sm:$0x3] %vm269_vm2, %v511_v13  ;;  %v534_v23 = vsel %vm1257_vm7, %v511_v13, 1.0  ;;  %v558_v36 = vsub.f32 0.0, %v557_v33 }
 0x57a   :  { %v526_v24 = vsel %vm1243_vm5, %v525_v21, 0.0  ;;  %702 = vlog2.f32 %v534_v23 }
 0x57b   :  { %v527_v25 = vsel %vm269_vm2, %v526_v24, 0.0  ;;  %v559_v22 = vsel %vm269_vm2, %v558_v36, 0.0 }
 0x57c   :  { %528 = vadd.xlane.f32.xlu1 %v527_v25 }
 0x584   :  { %v703_v31 = vpop.eup %702 }
 0x585   :  { %v537_v32 = vmul.f32 0.6931472, %v703_v31 }
 0x587   :  { %v540_v34 = vsub.f32 %v537_v32, %v539_v30 }
 0x589   :  { %v541_v35 = vmul.f32 %v540_v34, %v531_v63 }
 0x58b   :  { %v542_v19 = vsel %vm1257_vm7, %v541_v35, 0.0 }
 0x58c   :  { %v543_v37 = vsel %vm269_vm2, %v542_v19, 0.0 }
 0x58d   :  { %544 = vadd.xlane.f32.xlu0 %v543_v37 }
 0x591   :  { %560 = vadd.xlane.f32.xlu0 %v559_v22 }
 0x592   :  { %891 = shalt.err (!%p888_p12)
}
 0x593   :  { %s892_s3 = scalar_lea.hbm %s1333_s9, 32 }
 0x594   :  { %p893_p13 = scmp.ne.s32.totalorder %s1333_s9, %s892_s3  ;;  %p896_p0 = scmp.lt.u32.totalorder %s892_s3, %s1333_s9 }
 0x596   :  { %p898_p1 = pnand %p896_p0, %p893_p13 }
 0x598   :  { %901 = shalt.err (!%p898_p1)
}
 0x599   :  { %582 = dma.vmem_to_hbm [thread:$0]  %s580_s2, 32, %s1333_s9, [#allocation18]  }
 0x59a   :  { %s902_s4 = scalar_lea.vmem %s570_s13, 32  ;;  %p907_p3 = scmp.lt.s32.totalorder %s570_s13, %s570_s13 }
 0x59b   :  { %p903_p2 = scmp.ne.s32.totalorder %s570_s13, %s902_s4  ;;  %p908_p4 = scmp.lt.s32.totalorder %s902_s4, %s902_s4 }
 0x59d   :  { %p909_p5 = por %p908_p4, %p907_p3 }
 0x59f   :  { %p910_p6 = pnand %p909_p5, %p903_p2 }
 0x5a1   :  { %913 = shalt.err (!%p910_p6)
}
 0x5a2   :  { %s914_s27 = scalar_lea.hbm %s1332_s8, 32 }
 0x5a3   :  { %p915_p7 = scmp.ne.s32.totalorder %s1332_s8, %s914_s27  ;;  %p918_p8 = scmp.lt.u32.totalorder %s914_s27, %s1332_s8 }
 0x5a5   :  { %p920_p9 = pnand %p918_p8, %p915_p7 }
 0x5a7   :  { %923 = shalt.err (!%p920_p9)
}
 0x5a8   :  { %572 = dma.vmem_to_hbm [thread:$0]  %s570_s13, 32, %s1332_s8, [#allocation4]   ;;  %vm548_vm8 = vcmask 1024  }
 0x5a9   :  { %s998_s28 = smov [#allocation19]   ;;  %s999_s6 = smov [#allocation20]  }
 0x5aa   :  { %s589_s5 = sshll.u32 %s998_s28, 4  ;;  %s599_s25 = sshll.u32 %s999_s6, 4  ;;  %s590_s5 = int_to_ptr.vmem [resolvable:$true] %s589_s5  ;;  %s600_s25 = int_to_ptr.vmem [resolvable:$true] %s599_s25 }
 0x5ab   :  { %s924_s7 = scalar_lea.vmem %s590_s5, 32  ;;  %p929_p11 = scmp.lt.s32.totalorder %s590_s5, %s590_s5 }
 0x5ac   :  { %p925_p10 = scmp.ne.s32.totalorder %s590_s5, %s924_s7  ;;  %p930_p12 = scmp.lt.s32.totalorder %s924_s7, %s924_s7 }
 0x5ae   :  { %p931_p13 = por %p930_p12, %p929_p11 }
 0x5b0   :  { %p932_p0 = pnand %p931_p13, %p925_p10 }
 0x609   :  { %v529_v38 = vpop.xlane.xlu1 %528 }
 0x60a   :  { %v530_v39 = vsub.f32 0.0, %v529_v38 }
 0x61a   :  { %v545_v17 = vpop.xlane.xlu0 %544 }
 0x61b   :  { %v546_v40 = vsub.f32 0.0, %v545_v17 }
 0x61d   :  { %v547_v41 = vadd.f32 %v546_v40, %v530_v39 }
 0x61e   :  { %v561_v42 = vpop.xlane.xlu0 %560 }
 0x61f   :  { %549 = vst.msk [vmem:[#allocation19] sm:$0x3] %vm548_vm8, %v547_v41  ;;  %562 = vst.msk [vmem:[#allocation20] sm:$0x3] %vm548_vm8, %v561_v42 }
 0x620   :  { %935 = shalt.err (!%p932_p0)
}
 0x621   :  { %s936_s12 = scalar_lea.hbm %s1334_s10, 32 }
 0x622   :  { %p937_p1 = scmp.ne.s32.totalorder %s1334_s10, %s936_s12  ;;  %p940_p2 = scmp.lt.u32.totalorder %s936_s12, %s1334_s10 }
 0x624   :  { %p942_p3 = pnand %p940_p2, %p937_p1 }
 0x626   :  { %945 = shalt.err (!%p942_p3)
}
 0x627   :  { %592 = dma.vmem_to_hbm [thread:$0]  %s590_s5, 32, %s1334_s10, [#allocation18]  }
 0x628   :  { %s946_s19 = scalar_lea.vmem %s600_s25, 32  ;;  %p951_p5 = scmp.lt.s32.totalorder %s600_s25, %s600_s25 }
 0x629   :  { %p947_p4 = scmp.ne.s32.totalorder %s600_s25, %s946_s19  ;;  %p952_p6 = scmp.lt.s32.totalorder %s946_s19, %s946_s19 }
 0x62b   :  { %p953_p7 = por %p952_p6, %p951_p5 }
 0x62d   :  { %p954_p8 = pnand %p953_p7, %p947_p4 }
 0x62f   :  { %957 = shalt.err (!%p954_p8)
}
 0x630   :  { %s958_s0 = scalar_lea.hbm %s1335_s11, 32 }
 0x631   :  { %p959_p9 = scmp.ne.s32.totalorder %s1335_s11, %s958_s0  ;;  %p962_p10 = scmp.lt.u32.totalorder %s958_s0, %s1335_s11 }
 0x633   :  { %p964_p11 = pnand %p962_p10, %p959_p9 }
 0x635   :  { %967 = shalt.err (!%p964_p11)
}
 0x636   :  { %602 = dma.vmem_to_hbm [thread:$0]  %s600_s25, 32, %s1335_s11, [#allocation21]  }
 0x637   :  { %978 = dma.done.wait [#allocation4], 32  }
 0x638   :  { %979 = vsyncadd [#allocation4], 4294967264 }
 0x639   :  { %980 = dma.done.wait [#allocation18], 64  }
 0x63a   :  { %981 = vsyncadd [#allocation18], 4294967232 }
 0x63b   :  { %982 = dma.done.wait [#allocation21], 32  }
 0x63c   :  { %983 = vsyncadd [#allocation21], 4294967264 }
 0x63d   :  { %615 = vsyncpa [#allocation3], 1 }
 0x63e   :  { %616 = vsyncpa [#allocation6], 1 }
 0x63f   :  { %617 = vsyncpa [#allocation9], 1 }
 0x640   :  { %618 = vsyncpa [#allocation12], 1 }
 0x641   :  { %619 = vsyncpa [#allocation15], 1 }
 0x642   :  { %620 = vsyncpa [#allocation4], 1 }
 0x643   :  { %621 = vsyncpa [#allocation18], 1 }
 0x644   :  { %622 = vsyncpa [#allocation21], 1 }

// kernel: localization_forward.6
= control target key start
LH: loop header
LB: loop body
LE: loop exit
PB: predicated region body
PF: predicated region fallthrough
CT: control target
= control target key end

     0   :  { %s4229_s0 = inlined_call_operand.hbm [shape: f32[8,2,16], index: 0, kind: input, shape index: {}]   ;;  %s4230_s1 = inlined_call_operand.hbm [shape: f32[8,2,1], index: 1, kind: input, shape index: {}]   ;;  %s4231_s2 = inlined_call_operand.hbm [shape: bf16[2,16,48], index: 2, kind: input, shape index: {}]   ;;  %s4232_s3 = inlined_call_operand.hbm [shape: f32[2,1,48], index: 3, kind: input, shape index: {}]   ;;  %s4233_s4 = inlined_call_operand.hbm [shape: bf16[2,3,16,16], index: 4, kind: input, shape index: {}]   ;;  %s4234_s5 = inlined_call_operand.hbm [shape: f32[2,3,1,16], index: 5, kind: input, shape index: {}]   ;;  %s4235_s6 = inlined_call_operand.hbm [shape: f32[2,8,2,16], index: 6, kind: output, shape index: {}]  }
   0x1   :  { %4256 = sst [smem:[#allocation28_spill]] %s4230_s1 }
   0x2   :  { %4257 = sst [smem:[#allocation29_spill]] %s4232_s3 }
   0x3   :  { %11 = vsyncpa [#allocation5], 0 }
   0x4   :  { %13 = vsyncpa [#allocation5 + $0x1], 0 }
   0x5   :  { %14 = vsyncpa [#allocation8], 0 }
   0x6   :  { %16 = vsyncpa [#allocation8 + $0x1], 0 }
   0x7   :  { %17 = vsyncpa [#allocation11], 0 }
   0x8   :  { %19 = vsyncpa [#allocation11 + $0x1], 0 }
   0x9   :  { %20 = vsyncpa [#allocation14], 0 }
   0xa   :  { %22 = vsyncpa [#allocation14 + $0x1], 0 }
   0xb   :  { %23 = vsyncpa [#allocation6], 0 }
   0xc   :  { %25 = vsyncpa [#allocation6 + $0x1], 0  ;;  %s3513_s21 = smov 0   ;;  %s3515_s22 = smov 0  }
   0xd   :  { %s3517_s23 = smov 0   ;;  %s3519_s24 = smov 0  }
   0xe   :  { %s3521_s25 = smov 0   ;;  %s3523_s26 = smov 0  }
   0xf LB: > { %4258 = sst [smem:[#allocation22_spill]] %s3434_s21  ;;  %p4237_p0 = scmp.eq.s32.totalorder %s3454_s26, 0  ;;  %s3454_s26 = sphi %s3523_s26, %s31_s26   ;;  %s3450_s25 = sphi %s3521_s25, %s4301_s25   ;;  %s3446_s24 = sphi %s3519_s24, %s4300_s24   ;;  %s3442_s23 = sphi %s3517_s23, %s4296_s23   ;;  %s3438_s22 = sphi %s3515_s22, %s4299_s22   ;;  %s3434_s21 = sphi %s3513_s21, %s4298_s21  }
  0x10   : > { %4259 = sst [smem:[#allocation23_spill]] %s3442_s23  ;;  %p4236_p2 = scmp.lt.s32.totalorder %s3454_s26, 2 }
  0x11   : > { %4260 = sst [smem:[#allocation24_spill]] %s3454_s26  ;;  %s294_s27 = sand.u32 1, %s3454_s26  }
  0x12   : > { %p3551_p3 = pnand %p4236_p2, %p4237_p0  ;;  %s3456_s29 = smov [#allocation7]  }
  0x13   : > { %s309_s30 = sshll.u32 %s3456_s29, 4  ;;  %s3558_s7 = scalar_lea.sflag [#allocation8], %s294_s27  ;;  %s310_s30 = int_to_ptr.vmem [resolvable:$true] %s309_s30 }
  0x14   : > { %s4261_s28 = scalar_select %p3551_p3, 1, 0 }
  0x15   : > { %s4262_s1 = sld [smem:[#allocation28_spill]]  ;;  %p4243_p6 = pneg %p3551_p3 }
  0x1b   : > { %s3180_s10 = scalar_lea.hbm %s4262_s1, 256 }
  0x1c   : > { %p3181_p5 = scmp.ne.s32.totalorder %s4262_s1, %s3180_s10  ;;  %p3187_p9 = scmp.lt.u32.totalorder %s3180_s10, %s4262_s1 }
  0x1e   : > { %p3183_p7 = pnand %p4243_p6, %p3181_p5 }
  0x20   : > { %p3184_p8 = pneg %p3183_p7 }
  0x22   : > { %p3189_p10 = pnand %p3187_p9, %p3184_p8 }
  0x24   : > { %3192 = shalt.err (!%p3189_p10)
}
  0x25   : > { %s3193_s15 = scalar_lea.vmem %s310_s30, 256  ;;  %s3200_s16 = scalar_lea.vmem %s310_s30, 512 }
  0x26   : > { %p3194_p11 = scmp.ne.s32.totalorder %s310_s30, %s3193_s15  ;;  %p3201_p1 = scmp.lt.s32.totalorder %s310_s30, %s310_s30 }
  0x27   : > { %p3202_p2 = scmp.lt.s32.totalorder %s3200_s16, %s3193_s15 }
  0x28   : > { %p3196_p12 = pnand %p3194_p11, %p4243_p6 }
  0x29   : > { %p3203_p0 = por %p3202_p2, %p3201_p1 }
  0x2a   : > { %p3197_p13 = pneg %p3196_p12 }
  0x2c   : > { %p3204_p4 = pnand %p3203_p0, %p3197_p13 }
  0x2e   : > { %3207 = shalt.err (!%p3204_p4)
}
  0x2f   : > { %s4239_s17 = smov 32   ;;  %s4240_s18 = smov 2  }
  0x30   : > { %3003 = dma.hbm_to_vmem [thread:$0]  (!%p3551_p3), %s4262_s1, 256, %s310_s30, %s3558_s7, %s4239_s17, %s4239_s17, %s4240_s18  }
  0x31   : > { %p397_p0 = scmp.lt.s32.totalorder %s3454_s26, 3  ;;  %p4263_p1 = scmp.ge.s32.totalorder %s3454_s26, 1 }
  0x32   : > { %s3594_s8 = sadd.s32 4294967295, %s3454_s26   ;;  %s2629_s9 = sadd.s32 4294967294, %s3454_s26  }
  0x33   : > { %p3589_p2 = pnand %p4263_p1, %p397_p0  ;;  %s43_s10 = sadd.s32 1, %s3450_s25 }
  0x34   : > { %s118_s11 = sadd.s32 1, %s3442_s23  ;;  %p45_p4 = scmp.ge.s32.totalorder %s43_s10, 2 }
  0x35   : > { %s4264_s29 = scalar_select %p3589_p2, 1, 0 }
  0x36   : > { %p125_p5 = scmp.ne.s32.totalorder %s3442_s23, %s3438_s22  ;;  %p131_p7 = scmp.ne.s32.totalorder %s3438_s22, %s3434_s21 }
  0x37   : > { %p4238_p8 = scmp.eq.s32.totalorder %s3594_s8, 0  ;;  %s4303_s10 = smov (%p45_p4, %s43_s10), 0 }
  0x38   : > { %4265 = sst [smem:[#allocation25_spill]] %s4303_s10  ;;  %p4266_p9 = scmp.eq.s32.totalorder %s3454_s26, 0 }
  0x39   : > { %p3610_p11 = por %p4238_p8, %p131_p7  ;;  %s115_s12 = ssub.s32 %s3450_s25, %s4303_s10 }
  0x3a   : > { %p127_p10 = por %p4266_p9, %p125_p5  ;;  %p243_p12 = scmp.eq.s32.totalorder %s3594_s8, 1 }
  0x3b   : > { %s4267_s30 = scalar_select %p3610_p11, 1, 0 }
  0x3c   : > { %p116_p13 = scmp.eq.s32.totalorder %s115_s12, 0  ;;  %p249_p0 = scmp.eq.s32.totalorder %s2629_s9, 1 }
  0x3d   : > { %p3617_p1 = por %p243_p12, %p125_p5  ;;  %s3622_s14 = sand.u32 1, %s3442_s23  }
  0x3e   : > { %s3625_s15 = scalar_select %p116_p13, %s3442_s23, %s118_s11  }
  0x3f   : > { %s4268_s13 = scalar_select %p3617_p1, 1, 0 }
  0x40   : > { %4269 = sst [smem:[#allocation26_spill]] %s3625_s15  ;;  %p3627_p4 = por %p249_p0, %p131_p7 }
  0x41   : > { %p4272_p9 = scmp.lt.s32.totalorder %s3454_s26, 2  ;;  %s2637_s20 = sshll.u32 %s3450_s25, 4 }
  0x42   : > { %s4270_s16 = scalar_select %p3627_p4, 1, 0 }
  0x43   : > { %p3633_p8 = pnand %p4272_p9, %p127_p10  ;;  %s4274_s3 = sld [smem:[#allocation29_spill]] }
  0x44   : > { %4271 = sst [smem:[#allocation27_spill]] %s4270_s16  ;;  %s343_s11 = scalar_lea.vmem [#allocation10], %s3622_s14 }
  0x45   : > { %s4273_s19 = scalar_select %p3633_p8, 1, 0 }
  0x46   : > { %s350_s18 = sshll.u32 %s343_s11, 4  ;;  %s3648_s1 = scalar_lea.sflag [#allocation11], %s294_s27  ;;  %s3644_s18 = int_to_ptr.vmem [resolvable:$true] %s350_s18 }
  0x47   : > { %p3654_p7 = pneg %p3633_p8 }
  0x49   : > { %s3641_s17 = scalar_lea.hbm %s4274_s3, %s2637_s20  ;;  %s3213_s12 = scalar_lea.hbm %s4274_s3, 32 }
  0x4a   : > { %s3208_s10 = scalar_lea.hbm %s3641_s17, 16  ;;  %p3214_p13 = scmp.lt.u32.totalorder %s3641_s17, %s4274_s3 }
  0x4b   : > { %p3209_p5 = scmp.ne.s32.totalorder %s3641_s17, %s3208_s10  ;;  %p3215_p0 = scmp.lt.u32.totalorder %s3213_s12, %s3208_s10 }
  0x4c   : > { %s4275_s15 = scalar_select %p3654_p7, 1, 0 }
  0x4d   : > { %p3211_p10 = pnand %p3654_p7, %p3209_p5  ;;  %p3216_p9 = por %p3215_p0, %p3214_p13 }
  0x4e   : > { %p3217_p6 = scmp.lt.u32.totalorder %s3208_s10, %s3641_s17 }
  0x4f   : > { %p3212_p12 = pneg %p3211_p10 }
  0x50   : > { %p3218_p4 = por %p3217_p6, %p3216_p9 }
  0x52   : > { %p3219_p1 = pnand %p3218_p4, %p3212_p12 }
  0x54   : > { %3222 = shalt.err (!%p3219_p1)
}
  0x55   : > { %s3223_s27 = scalar_lea.vmem %s3644_s18, 16  ;;  %s3459_s20 = smov [#allocation10]  }
  0x56   : > { %p3224_p5 = scmp.ne.s32.totalorder %s3644_s18, %s3223_s27  ;;  %s3228_s9 = sshll.u32 %s3459_s20, 4  ;;  %s3229_s9 = int_to_ptr.vmem [resolvable:$false] %s3228_s9 }
  0x57   : > { %s3230_s23 = scalar_lea.vmem %s3229_s9, 32  ;;  %p3231_p2 = scmp.lt.s32.totalorder %s3644_s18, %s3229_s9 }
  0x58   : > { %p3226_p10 = pnand %p3224_p5, %p3654_p7  ;;  %p3232_p3 = scmp.lt.s32.totalorder %s3230_s23, %s3223_s27 }
  0x5a   : > { %p3227_p11 = pneg %p3226_p10  ;;  %p3233_p13 = por %p3232_p3, %p3231_p2 }
  0x5c   : > { %p3234_p0 = pnand %p3233_p13, %p3227_p11 }
  0x5e   : > { %3237 = shalt.err (!%p3234_p0)
}
  0x5f   : > { %3009 = dma.hbm_to_vmem [thread:$0]  (!%p3633_p8), %s3641_s17, 16, %s3644_s18, %s3648_s1  }
  0x60   : > { %s3460_s10 = smov [#allocation4]   ;;  %s2634_s11 = sshll.u32 %s3622_s14, 3 }
  0x61   : > { %s284_s12 = sshll.u32 %s3460_s10, 4  ;;  %s3238_s9 = scalar_lea.hbm %s4229_s0, 256  ;;  %s285_s12 = int_to_ptr.vmem [resolvable:$true] %s284_s12 }
  0x62   : > { %p3239_p3 = scmp.ne.s32.totalorder %s4229_s0, %s3238_s9  ;;  %p4276_p6 = scmp.ne.s32.totalorder %s4261_s28, 0 }
  0x63   : > { %p3245_p4 = scmp.lt.u32.totalorder %s3238_s9, %s4229_s0 }
  0x64   : > { %p4277_p2 = pneg %p4276_p6 }
  0x66   : > { %p3241_p11 = pnand %p3239_p3, %p4277_p2 }
  0x68   : > { %p3242_p1 = pneg %p3241_p11 }
  0x6a   : > { %p3247_p12 = pnand %p3245_p4, %p3242_p1 }
  0x6c   : > { %3250 = shalt.err (!%p3247_p12)
}
  0x6d   : > { %s3251_s17 = scalar_lea.vmem %s285_s12, 256  ;;  %p4278_p5 = pmov %p4277_p2 }
  0x6e   : > { %p3252_p9 = scmp.ne.s32.totalorder %s285_s12, %s3251_s17  ;;  %s3258_s3 = scalar_lea.vmem %s285_s12, 512 }
  0x6f   : > { %p3259_p0 = scmp.lt.s32.totalorder %s285_s12, %s285_s12  ;;  %p3260_p8 = scmp.lt.s32.totalorder %s3258_s3, %s3251_s17 }
  0x70   : > { %p3254_p10 = pnand %p3252_p9, %p4278_p5 }
  0x71   : > { %p3261_p7 = por %p3260_p8, %p3259_p0 }
  0x72   : > { %p3255_p13 = pneg %p3254_p10 }
  0x74   : > { %p3262_p2 = pnand %p3261_p7, %p3255_p13 }
  0x76   : > { %3265 = shalt.err (!%p3262_p2)
}
  0x77   : > { %s4279_s18 = smov 2   ;;  %s4280_s26 = smov 32  }
  0x78   : > { %3000 = dma.hbm_to_vmem [thread:$0]  (!%p4276_p6), %s4229_s0, 256, %s285_s12, [#allocation5], %s4280_s26, %s4280_s26, %s4279_s18  }
  0x79   : > { %s2771_s20 = sshll.u32 %s3450_s25, 7  ;;  %s323_s9 = scalar_lea.vmem [#allocation9], %s2634_s11 }
  0x7a   : > { %s330_s27 = sshll.u32 %s323_s9, 4  ;;  %s3706_s17 = scalar_lea.hbm %s4231_s2, %s2771_s20  ;;  %s3708_s27 = int_to_ptr.vmem [resolvable:$true] %s330_s27 }
  0x7b   : > { %s3266_s28 = scalar_lea.hbm %s3706_s17, 128  ;;  %p4281_p7 = scmp.ne.s32.totalorder %s4275_s15, 0 }
  0x7c   : > { %p3267_p8 = scmp.ne.s32.totalorder %s3706_s17, %s3266_s28  ;;  %s3271_s11 = scalar_lea.hbm %s4231_s2, 256 }
  0x7d   : > { %p3272_p6 = scmp.lt.u32.totalorder %s3706_s17, %s4231_s2  ;;  %p3273_p1 = scmp.lt.u32.totalorder %s3271_s11, %s3266_s28 }
  0x7e   : > { %p3269_p3 = pnand %p3267_p8, %p4281_p7  ;;  %p3275_p12 = scmp.lt.u32.totalorder %s3266_s28, %s3706_s17 }
  0x7f   : > { %p3274_p4 = por %p3273_p1, %p3272_p6 }
  0x80   : > { %p3270_p11 = pneg %p3269_p3 }
  0x81   : > { %p3276_p9 = por %p3275_p12, %p3274_p4 }
  0x83   : > { %p3277_p5 = pnand %p3276_p9, %p3270_p11 }
  0x85   : > { %3280 = shalt.err (!%p3277_p5)
}
  0x86   : > { %s3281_s21 = scalar_lea.vmem %s3708_s27, 128  ;;  %s3461_s16 = smov [#allocation9]  }
  0x87   : > { %p3282_p10 = scmp.ne.s32.totalorder %s3708_s27, %s3281_s21  ;;  %s3286_s10 = sshll.u32 %s3461_s16, 4  ;;  %s3287_s10 = int_to_ptr.vmem [resolvable:$false] %s3286_s10 }
  0x88   : > { %s3288_s20 = scalar_lea.vmem %s3287_s10, 256  ;;  %p3289_p2 = scmp.lt.s32.totalorder %s3708_s27, %s3287_s10 }
  0x89   : > { %p3284_p13 = pnand %p3282_p10, %p4281_p7  ;;  %p3290_p8 = scmp.lt.s32.totalorder %s3288_s20, %s3281_s21 }
  0x8b   : > { %p3285_p0 = pneg %p3284_p13  ;;  %p3291_p3 = por %p3290_p8, %p3289_p2 }
  0x8d   : > { %p3292_p6 = pnand %p3291_p3, %p3285_p0 }
  0x8f   : > { %3295 = shalt.err (!%p3292_p6)
}
  0x90   : > { %s3462_s9 = smov 64   ;;  %s3463_s23 = smov 4  }
  0x91   : > { %p4282_p11 = scmp.ne.s32.totalorder %s4273_s19, 0  ;;  %s2973_s28 = smul.u32 24, %s3622_s14 }
  0x92   : > { %s2974_s12 = smul.u32 384, %s3450_s25 }
  0x93   : > { %3006 = dma.hbm_to_vmem [thread:$0]  (!%p4282_p11), %s3706_s17, 128, %s3708_s27, %s3558_s7, %s3462_s9, %s3462_s9, %s3463_s23  }
  0x94   : > { %s2975_s3 = smul.u32 3, %s3622_s14  ;;  %s3741_s26 = scalar_lea.hbm %s4233_s4, %s2974_s12 }
  0x95   : > { %s361_s21 = scalar_lea.vmem [#allocation12], %s2973_s28  ;;  %s3296_s10 = scalar_lea.hbm %s3741_s26, 384 }
  0x96   : > { %s368_s16 = sshll.u32 %s361_s21, 4  ;;  %p3297_p1 = scmp.ne.s32.totalorder %s3741_s26, %s3296_s10  ;;  %s3743_s16 = int_to_ptr.vmem [resolvable:$true] %s368_s16 }
  0x97   : > { %s3301_s17 = scalar_lea.hbm %s4233_s4, 768  ;;  %p3302_p9 = scmp.lt.u32.totalorder %s3741_s26, %s4233_s4 }
  0x98   : > { %p3299_p4 = pnand %p3297_p1, %p4281_p7  ;;  %p3303_p5 = scmp.lt.u32.totalorder %s3301_s17, %s3296_s10 }
  0x99   : > { %p3305_p13 = scmp.lt.u32.totalorder %s3296_s10, %s3741_s26 }
  0x9a   : > { %p3300_p12 = pneg %p3299_p4  ;;  %p3304_p10 = por %p3303_p5, %p3302_p9 }
  0x9c   : > { %p3306_p0 = por %p3305_p13, %p3304_p10 }
  0x9e   : > { %p3307_p2 = pnand %p3306_p0, %p3300_p12 }
  0xa0   : > { %3310 = shalt.err (!%p3307_p2)
}
  0xa1   : > { %s3311_s28 = scalar_lea.vmem %s3743_s16, 384  ;;  %s3464_s11 = smov [#allocation12]  }
  0xa2   : > { %p3312_p8 = scmp.ne.s32.totalorder %s3743_s16, %s3311_s28  ;;  %s3316_s18 = sshll.u32 %s3464_s11, 4  ;;  %s3317_s18 = int_to_ptr.vmem [resolvable:$false] %s3316_s18 }
  0xa3   : > { %s3318_s21 = scalar_lea.vmem %s3317_s18, 768  ;;  %p3319_p1 = scmp.lt.s32.totalorder %s3743_s16, %s3317_s18 }
  0xa4   : > { %p3314_p3 = pnand %p3312_p8, %p4281_p7  ;;  %p3320_p4 = scmp.lt.s32.totalorder %s3318_s21, %s3311_s28 }
  0xa6   : > { %p3315_p6 = pneg %p3314_p3  ;;  %p3321_p9 = por %p3320_p4, %p3319_p1 }
  0xa8   : > { %p3322_p5 = pnand %p3321_p9, %p3315_p6 }
  0xaa   : > { %3325 = shalt.err (!%p3322_p5)
}
  0xab   : > { %3012 = dma.hbm_to_vmem [thread:$0]  (!%p4282_p11), %s3741_s26, 384, %s3743_s16, %s3648_s1, %s3462_s9, %s3462_s9, %s3463_s23  }
  0xac   : > { %s2976_s10 = smul.u32 48, %s3450_s25  ;;  %s382_s7 = scalar_lea.vmem [#allocation13], %s2975_s3 }
  0xad   : > { %s389_s27 = sshll.u32 %s382_s7, 4  ;;  %s379_s28 = scalar_lea.sflag [#allocation14], %s3622_s14  ;;  %s3773_s27 = int_to_ptr.vmem [resolvable:$true] %s389_s27 }
  0xae   : > { %s3778_s12 = scalar_lea.hbm %s4234_s5, %s2976_s10  ;;  %s3331_s23 = scalar_lea.hbm %s4234_s5, 96 }
  0xaf   : > { %s3326_s11 = scalar_lea.hbm %s3778_s12, 48  ;;  %p3332_p0 = scmp.lt.u32.totalorder %s3778_s12, %s4234_s5 }
  0xb0   : > { %p3327_p12 = scmp.ne.s32.totalorder %s3778_s12, %s3326_s11  ;;  %p3333_p2 = scmp.lt.u32.totalorder %s3331_s23, %s3326_s11 }
  0xb1   : > { %p3335_p3 = scmp.lt.u32.totalorder %s3326_s11, %s3778_s12 }
  0xb2   : > { %p3329_p10 = pnand %p3327_p12, %p4281_p7  ;;  %p3334_p8 = por %p3333_p2, %p3332_p0 }
  0xb4   : > { %p3330_p13 = pneg %p3329_p10  ;;  %p3336_p6 = por %p3335_p3, %p3334_p8 }
  0xb6   : > { %p3337_p1 = pnand %p3336_p6, %p3330_p13 }
  0xb8   : > { %3340 = shalt.err (!%p3337_p1)
}
  0xb9   : > { %s3341_s16 = scalar_lea.vmem %s3773_s27, 48  ;;  %s3465_s18 = smov [#allocation13]  }
  0xba   : > { %p3342_p4 = scmp.ne.s32.totalorder %s3773_s27, %s3341_s16  ;;  %s3346_s21 = sshll.u32 %s3465_s18, 4  ;;  %s3347_s21 = int_to_ptr.vmem [resolvable:$false] %s3346_s21 }
  0xbb   : > { %s3348_s10 = scalar_lea.vmem %s3347_s21, 96  ;;  %p3349_p12 = scmp.lt.s32.totalorder %s3773_s27, %s3347_s21 }
  0xbc   : > { %p3344_p9 = pnand %p3342_p4, %p4281_p7  ;;  %p3350_p10 = scmp.lt.s32.totalorder %s3348_s10, %s3341_s16 }
  0xbe   : > { %p3345_p5 = pneg %p3344_p9  ;;  %p3351_p0 = por %p3350_p10, %p3349_p12 }
  0xc0   : > { %p3352_p2 = pnand %p3351_p0, %p3345_p5 }
  0xc2   : > { %3355 = shalt.err (!%p3352_p2)
}
  0xc3   : > { %s3466_s7 = smov 16   ;;  %s3467_s17 = smov 1  }
  0xc4   : > { %3015 = dma.hbm_to_vmem [thread:$0]  (!%p4282_p11), %s3778_s12, 48, %s3773_s27, %s379_s28, %s3466_s7, %s3466_s7, %s3467_s17  }
  0xc5   : > { %p4283_p7 = scmp.ne.s32.totalorder %s4264_s29, 0 }
  0xc6   : > { %p4284_p13 = scmp.eq.s32.totalorder (!%p4283_p7), %s3594_s8, 0 }
  0xc7   : > { %401 = sbr.rel (%p4283_p7) target bundleno = 2577 (0xa11), region = 44 }
  0xce   : > { %3409 = dma.done.wait (%p4284_p13), [#allocation5], 256   ;;  %p4285_p8 = pmov %p4284_p13 }
  0xcf   : > { %s412_s15 = sand.u32 1, %s3594_s8  }
  0xd0   : > { %3411 = vsyncadd (%p4285_p8), [#allocation5], 4294967040  ;;  %s413_s20 = scalar_lea.sflag [#allocation8], %s412_s15  ;;  %p4286_p3 = pmov %p4285_p8 }
  0xd2   : > { %3413 = dma.done.wait (%p4286_p3), %s413_s20, 256   ;;  %p4287_p6 = pmov %p4286_p3 }
  0xd3   : > { %s3816_s14 = sand.u32 1, %s3438_s22   ;;  %p4288_p11 = scmp.ne.s32.totalorder %s4267_s30, 0 }
  0xd4   : > { %3415 = vsyncadd (%p4287_p6), %s413_s20, 4294967040  ;;  %s2643_s29 = sshll.u32 %s3816_s14, 3 }
  0xd5   : > { %s425_s19 = scalar_lea.vmem [#allocation9], %s2643_s29 }
  0xd6   : > { %3417 = dma.done.wait (%p4288_p11), %s413_s20, 128  }
  0xd7   : > { %3419 = vsyncadd (%p4288_p11), %s413_s20, 4294967168  ;;  %s431_s27 = scalar_lea.sflag [#allocation11], %s412_s15  ;;  %s433_s12 = scalar_lea.vmem [#allocation10], %s3816_s14 }
  0xd8   : > { %3421 = dma.done.wait (%p4288_p11), %s431_s27, 400  }
  0xd9   : > { %3423 = vsyncadd (%p4288_p11), %s431_s27, 4294966896  ;;  %s2977_s8 = smul.u32 24, %s3816_s14  ;;  %s448_s1 = scalar_lea.sflag [#allocation14], %s3816_s14 }
  0xda   : > { %s2978_s28 = smul.u32 3, %s3816_s14 }
  0xdb   : > { %s3830_s11 = scalar_lea.vmem [#allocation12], %s2977_s8 }
  0xdc   : > { %s3833_s9 = scalar_lea.vmem [#allocation13], %s2978_s28 }
  0xdd   : > { %3425 = dma.done.wait (%p4288_p11), %s448_s1, 48  }
  0xde   : > { %3427 = vsyncadd (%p4288_p11), %s448_s1, 4294967248  ;;  %v566_v0 = vlaneseq  ;;  %v3468_v1 = vmov 0.0   ;;  %vm3469_vm0 = vmmov 0   ;;  %v3470_v2 = vmov 1966171168   ;;  %v3093_v6 = vld [vmem:[%s425_s19] sm:$0xff]  }
  0xdf   : > { %2823 = vmatprep.subr.bf16.mxu0 %v3468_v1  ;;  %2825 = vmatprep.mubr.msk.bf16.mxu0 %vm3469_vm0, %v3468_v1  ;;  %v564_v3 = vunpack.c.l.s4 %v3470_v2  ;;  %vm524_vm1 = vcmask 123904   ;;  %v526_v8 = vld [vmem:[#allocation4] sm:$0x3]  ;;  %v527_v9 = vld [vmem:[#allocation4 + $0x2] sm:$0x3]  ;;  %v3849_v21 = vld [vmem:[%s3830_s11] sm:$0xff]  }
  0xe0   : > { %2829 = vmatprep.subr.bf16.mxu1 %v3468_v1  ;;  %2831 = vmatprep.mubr.msk.bf16.mxu1 %vm3469_vm0, %v3468_v1  ;;  %525 = vst.msk [vmem:[#allocation3] sm:$0x3] %vm524_vm1, %v3468_v1  ;;  %v567_v5 = vshrl.u32 %v566_v0, 7  ;;  %v528_v10 = vld [vmem:[#allocation4 + $0x4] sm:$0x3]  ;;  %v2646_v14 = vpack.c.bf16 %v527_v9, %v526_v8  ;;  %vm614_vm2 = vcmask 130048  }
  0xe1   : > { %v565_v4 = vunpack.c.0.s8 %v564_v3  ;;  %2824 = vmatpush3.bf16.msra.mxu0 %v3093_v6  ;;  %v529_v11 = vld [vmem:[#allocation4 + $0x6] sm:$0x3]  ;;  %v530_v12 = vld [vmem:[#allocation4 + $0x8] sm:$0x3]  ;;  %v531_v13 = vld [vmem:[#allocation4 + $0xa] sm:$0x3]  ;;  %2830 = vmatpush3.bf16.msra.mxu1 %v3849_v21 }
  0xe2   : > { %v532_v15 = vld [vmem:[#allocation4 + $0xc] sm:$0x3]  ;;  %v533_v16 = vld [vmem:[#allocation4 + $0xe] sm:$0x3]  ;;  %v2647_v17 = vpack.c.bf16 %v529_v11, %v528_v10  ;;  %v2648_v18 = vpack.c.bf16 %v531_v13, %v530_v12  ;;  %2835 = vmatprep.subr.bf16.mxu0 %v3468_v1  ;;  %v3857_v27 = vld [vmem:[%s3830_s11 + $0x10] sm:$0xff]   ;;  %2841 = vmatprep.subr.bf16.mxu1 %v3468_v1  ;;  %v3471_v34 = vmov 0  }
  0xe3   : > { %v568_v7 = vsub.s32 %v565_v4, %v567_v5  ;;  %v2649_v19 = vpack.c.bf16 %v533_v16, %v532_v15  ;;  %v3865_v32 = vld [vmem:[%s3830_s11 + $0x8] sm:$0xff]   ;;  %3091 = vset.pattern.permute.xlu0 %v3471_v34  ;;  %3092 = vset.pattern.permute.xlu1 %v3471_v34  ;;  %v3472_v35 = vmov 1983009808   ;;  %v2645_v38 = vld [vmem:[%s433_s12] ss:$0 sm:$0xff]  ;;  %s3473_s30 = smov 112  }
  0xe4   : > { %v663_v36 = vunpack.c.l.s4 %v3472_v35  ;;  %s3474_s23 = smov 96   ;;  %s3905_s3 = smul.u32 14, %s3446_s24 }
  0xe5   : > { %v569_v20 = vrot.slane %v2646_v14, %v568_v7  ;;  %v576_v23 = vrot.slane %v2647_v17, %v568_v7  ;;  %v583_v24 = vrot.slane %v2648_v18, %v568_v7  ;;  %v590_v26 = vrot.slane %v2649_v19, %v568_v7  ;;  %s3912_s26 = sshll.u32 %s3446_s24, 1  ;;  %s3920_s18 = smul.u32 4294967290, %s3446_s24 }
  0xe6   : > { %v664_v37 = vunpack.c.0.s8 %v663_v36  ;;  %s1031_s16 = scalar_lea.vmem [#allocation7], %s3905_s3  ;;  %s2462_s21 = scalar_lea.vmem [#allocation7], %s3912_s26 }
  0xe7   : > { %v3851_v22 = vld [vmem:[#allocation3] sm:$0x3]  ;;  %v591_v28 = vcombine.low %v569_v20, %v576_v23  ;;  %v592_v29 = vcombine.low %v583_v24, %v590_v26  ;;  %v2708_v10 = vld [vmem:[%s2462_s21 + $0x6] sm:$0x3]  ;;  %s2493_s10 = scalar_lea.vmem [#allocation7], %s3920_s18  ;;  %s3931_s7 = smul.u32 6, %s3446_s24 }
  0xe8   : > { %v845_v25 = vpack.c.bf16 %v3851_v22, %v3851_v22  ;;  %v667_v39 = vsub.s32 %v664_v37, %v567_v5  ;;  %v1032_v5 = vld [vmem:[%s1031_s16] sm:$0x3]  ;;  %vm1557_vm4 = vcmp.gt.f32.partialorder %v2708_v10, 0.0  ;;  %v2733_v12 = vld [vmem:[%s2493_s10 + $0xa] sm:$0x3]  ;;  %s1577_s17 = ssub.s32 4, %s3446_s24 }
  0xe9   : > { %v599_v30 = vrot.slane %v591_v28, %v568_v7  ;;  %v606_v31 = vrot.slane %v592_v29, %v568_v7  ;;  %vm1033_vm3 = vcmp.gt.f32.partialorder %v1032_v5, 0.0  ;;  %v1562_v13 = vsel %vm1557_vm4, 1, %v3471_v34  ;;  %s3935_s15 = smul.u32 4294967282, %s3446_s24  ;;  %s3937_s20 = sshll.u32 %s1577_s17, 1 }
  0xea   : > { %2832 = vmatmul.mubr.msk.bf16.vlgmr.msra.gmra.mrb[0].mxu1 %vm614_vm2, %v845_v25  ;;  %v1038_v11 = vsel %vm1033_vm3, 1, %v3471_v34  ;;  %vm1906_vm5 = vcmp.gt.f32.partialorder %v2733_v12, 0.0  ;;  %s2446_s29 = scalar_lea.vmem [#allocation7], %s3931_s7  ;;  %s1729_s27 = scalar_lea.vmem [#allocation7], %s3937_s20 }
  0xeb   : > { %2842 = vmatpush3.bf16.msra.mxu1 %v3857_v27  ;;  %2843 = vmatprep.mubr.msk.bf16.mxu1 %vm3469_vm0, %v3468_v1  ;;  %v607_v33 = vcombine.low %v599_v30, %v606_v31  ;;  %v1911_v14 = vsel %vm1906_vm5, 1, %v3471_v34  ;;  %v2693_v17 = vld [vmem:[%s2446_s29 + $0x4] sm:$0x3]  ;;  %s2533_s19 = scalar_lea.vmem [#allocation7], %s3935_s15  ;;  %v1730_v23 = vld [vmem:[%s1729_s27] sm:$0x3] }
  0xec   : > { %2853 = vmatprep.subr.bf16.mxu1 %v3468_v1  ;;  %v2763_v20 = vld [vmem:[%s2533_s19 + $0xe] sm:$0x3]  ;;  %s3946_s12 = smul.u32 10, %s3446_s24  ;;  %vm1383_vm8 = vcmp.gt.f32.partialorder %v2693_v17, 0.0  ;;  %vm1731_vm9 = vcmp.gt.f32.partialorder %v1730_v23, 0.0  ;;  %s2434_s10 = scalar_lea.vmem [#allocation2], %s3931_s7 }
  0xed   : > { %2826 = vmatmul.mubr.msk.bf16.vlgmr.msra.gmra.mrb[0].mxu0 %vm614_vm2, %v607_v33  ;;  %vm2256_vm6 = vcmp.gt.f32.partialorder %v2763_v20, 0.0  ;;  %s3950_s28 = smul.u32 4294967286, %s3446_s24  ;;  %v1388_v28 = vsel %vm1383_vm8, 1, %v3471_v34  ;;  %v1736_v30 = vsel %vm1731_vm9, 1, %v3471_v34  ;;  %p4289_p4 = scmp.ne.s32.totalorder %s4268_s13, 0 }
  0xee   : > { %2836 = vmatpush3.bf16.msra.mxu0 %v3865_v32  ;;  %2837 = vmatprep.mubr.msk.bf16.mxu0 %vm3469_vm0, %v3468_v1  ;;  %v2261_v24 = vsel %vm2256_vm6, 1, %v3471_v34  ;;  %s2426_s8 = scalar_lea.vmem [#allocation7], %s3946_s12 }
  0xef   : > { %2847 = vmatprep.subr.bf16.mxu0 %v3468_v1  ;;  %s2513_s1 = scalar_lea.vmem [#allocation7], %s3950_s28 }
  0xf0   : > { %v2748_v29 = vld [vmem:[%s2513_s1 + $0xc] sm:$0x3] }
  0xf1   : > { %vm2081_vm10 = vcmp.gt.f32.partialorder %v2748_v29, 0.0 }
  0xf2   : > { %2844 = vmatmul.mubr.msk.bf16.vlgmr.msra.gmra.mrb[4].mxu1 %vm614_vm2, %v845_v25  ;;  %v2086_v31 = vsel %vm2081_vm10, 1, %v3471_v34 }
  0xf3   : > { %2854 = vmatpush3.bf16.msra.mxu1 %v3865_v32  ;;  %2855 = vmatprep.mubr.msk.bf16.mxu1 %vm3469_vm0, %v3468_v1 }
  0xf4   : > { %2865 = vmatprep.subr.bf16.mxu1 %v3468_v1 }
  0xf5   : > { %2838 = vmatmul.mubr.msk.bf16.vlgmr.msra.gmra.mrb[4].mxu0 %vm614_vm2, %v845_v25  ;;  %v2678_v25 = vld [vmem:[%s2426_s8 + $0x2] sm:$0x3]  ;;  %s2772_s8 = sshll.u32 %s3446_s24, 8  ;;  %s2277_s24 = scalar_lea.sflag [#allocation6], %s3816_s14 }
  0xf6   : > { %2848 = vmatpush3.bf16.msra.mxu0 %v3849_v21  ;;  %2849 = vmatprep.mubr.msk.bf16.mxu0 %vm3469_vm0, %v3468_v1  ;;  %vm1208_vm7 = vcmp.gt.f32.partialorder %v2678_v25, 0.0 }
  0xf7   : > { %2859 = vmatprep.subr.bf16.mxu0 %v3468_v1  ;;  %v1213_v26 = vsel %vm1208_vm7, 1, %v3471_v34 }
 0x1bd   : > { %v3907_v0 = vpop.f32.mrb[0].mxu1 }
 0x1be   : > { %v2833_v2 = vpop.f32.mrb[1].mxu1 }
 0x1bf   : > { %v898_v3 = vpop.f32.mrb[2].mxu1 }
 0x1c0   : > { %v652_v40 = vpop.f32.mrb[0].mxu0  ;;  %v2834_v4 = vpop.f32.mrb[3].mxu1 }
 0x1c1   : > { %v653_v41 = vadd.f32 %v2645_v38, %v652_v40  ;;  %v2827_v42 = vpop.f32.mrb[1].mxu0 }
 0x1c2   : > { %v655_v43 = vpop.f32.mrb[2].mxu0 }
 0x1c3   : > { %v661_v44 = vcombine.high %v653_v41, %v653_v41  ;;  %v668_v45 = vrot.slane %v653_v41, %v667_v39  ;;  %v656_v46 = vadd.f32 %v2645_v38, %v655_v43  ;;  %v2828_v47 = vpop.f32.mrb[3].mxu0 }
 0x1c5   : > { %v675_v48 = vrot.slane %v661_v44, %v667_v39  ;;  %704 = vst.msk [vmem:[#allocation2] sm:$0x3] %vm524_vm1, %v668_v45  ;;  %v678_v49 = vcombine.high %v656_v46, %v656_v46  ;;  %v685_v50 = vrot.slane %v656_v46, %v667_v39  ;;  %v718_v51 = vrot.slane %v668_v45, %v667_v39  ;;  %v3939_v15 = vpop.f32.mrb[4].mxu1 }
 0x1c6   : > { %v676_v52 = vcombine.high %v668_v45, %v668_v45  ;;  %v2845_v16 = vpop.f32.mrb[5].mxu1 }
 0x1c7   : > { %706 = vst.msk [vmem:[#allocation2 + $0x4] sm:$0x3] %vm524_vm1, %v675_v48  ;;  %v692_v53 = vrot.slane %v678_v49, %v667_v39  ;;  %708 = vst.msk [vmem:[#allocation2 + $0x8] sm:$0x3] %vm524_vm1, %v685_v50  ;;  %768 = vrot.lane.b32.xlu0 %v718_v51, %s3473_s30  ;;  %v732_v54 = vrot.slane %v675_v48, %v667_v39  ;;  %v677_v55 = vcombine.high %v675_v48, %v675_v48  ;;  %v1002_v18 = vpop.f32.mrb[6].mxu1 }
 0x1c8   : > { %v746_v56 = vrot.slane %v685_v50, %v667_v39  ;;  %705 = vst.msk [vmem:[#allocation2 + $0x2] sm:$0x3] %vm524_vm1, %v676_v52  ;;  %v725_v57 = vrot.slane %v676_v52, %v667_v39  ;;  %v693_v58 = vcombine.high %v685_v50, %v685_v50  ;;  %v3916_v6 = vpop.f32.mrb[4].mxu0  ;;  %v2846_v19 = vpop.f32.mrb[7].mxu1  ;;  %v3974_v49 = vld [vmem:[%s3833_s9] ss:$0 sm:$0xff] }
 0x1c9   : > { %710 = vst.msk [vmem:[#allocation2 + $0xc] sm:$0x3] %vm524_vm1, %v692_v53  ;;  %772 = vrot.lane.b32.xlu1 %v732_v54, %s3473_s30  ;;  %v739_v59 = vrot.slane %v677_v55, %v667_v39  ;;  %707 = vst.msk [vmem:[#allocation2 + $0x6] sm:$0x3] %vm524_vm1, %v677_v55  ;;  %v760_v60 = vrot.slane %v692_v53, %v667_v39  ;;  %v694_v61 = vcombine.high %v692_v53, %v692_v53  ;;  %v2839_v7 = vpop.f32.mrb[5].mxu0 }
 0x1ca   : > { %v753_v62 = vrot.slane %v693_v58, %v667_v39  ;;  %709 = vst.msk [vmem:[#allocation2 + $0xa] sm:$0x3] %vm524_vm1, %v693_v58  ;;  %v950_v8 = vpop.f32.mrb[6].mxu0  ;;  %v896_v50 = vadd.f32 %v3974_v49, %v3907_v0 }
 0x1cb   : > { %801 = vrot.lane.b32.xlu0 %v718_v51, %s3474_s23  ;;  %v767_v63 = vrot.slane %v694_v61, %v667_v39  ;;  %711 = vst.msk [vmem:[#allocation2 + $0xe] sm:$0x3] %vm524_vm1, %v694_v61  ;;  %v2840_v9 = vpop.f32.mrb[7].mxu0  ;;  %v3979_v51 = vld [vmem:[%s3833_s9 + $0x1] ss:$0 sm:$0xff] }
 0x1cc   : > { %v948_v53 = vadd.f32 %v3979_v51, %v3916_v6 }
 0x1cd   : > { %803 = vrot.lane.b32.xlu1 %v725_v57, %s3474_s23 }
 0x1cf   : > { %770 = vrot.lane.b32.xlu0 %v725_v57, %s3473_s30 }
 0x1d1   : > { %774 = vrot.lane.b32.xlu1 %v739_v59, %s3473_s30 }
 0x1d3   : > { %776 = vrot.lane.b32.xlu0 %v746_v56, %s3473_s30 }
 0x1d5   : > { %778 = vrot.lane.b32.xlu1 %v753_v62, %s3473_s30 }
 0x1d7   : > { %805 = vrot.lane.b32.xlu0 %v732_v54, %s3474_s23 }
 0x1d9   : > { %807 = vrot.lane.b32.xlu1 %v739_v59, %s3474_s23 }
 0x1db   : > { %809 = vrot.lane.b32.xlu0 %v746_v56, %s3474_s23 }
 0x1dd   : > { %811 = vrot.lane.b32.xlu1 %v753_v62, %s3474_s23  ;;  %v3985_v62 = vld [vmem:[%s3833_s9 + $0x2] ss:$0 sm:$0xff] }
 0x1de   : > { %v1000_v0 = vadd.f32 %v3985_v62, %v3939_v15 }
 0x1df   : > { %780 = vrot.lane.b32.xlu0 %v760_v60, %s3473_s30 }
 0x1e1   : > { %782 = vrot.lane.b32.xlu1 %v767_v63, %s3473_s30  ;;  %s1006_s30 = scalar_lea.vmem [#allocation2], %s3905_s3 }
 0x1e3   : > { %813 = vrot.lane.b32.xlu0 %v760_v60, %s3474_s23 }
 0x1e5   : > { %815 = vrot.lane.b32.xlu1 %v767_v63, %s3474_s23  ;;  %s2644_s23 = sshll.u32 %s3816_s14, 4 }
 0x1e6   : > { %s3995_s9 = scalar_lea.vmem [#allocation15], %s2644_s23 }
 0x1e7   : > { %1040 = vperm.xlu0 %3091, %v1038_v11   ;;  %s1051_s16 = scalar_lea.vmem %s3995_s9, %s3905_s3 [#allocation15]  ;;  %s2414_s3 = scalar_lea.vmem [#allocation2], %s3946_s12 }
 0x1e8   : > { %s2430_s21 = scalar_lea.vmem %s3995_s9, %s3946_s12 [#allocation15]  ;;  %s2450_s17 = scalar_lea.vmem %s3995_s9, %s3931_s7 [#allocation15] }
 0x1e9   : > { %1215 = vperm.xlu1 %3092, %v1213_v26   ;;  %s2453_s7 = scalar_lea.vmem [#allocation2], %s3912_s26  ;;  %s2465_s29 = scalar_lea.vmem %s3995_s9, %s3912_s26 [#allocation15] }
 0x1ea   : > { %s1704_s26 = scalar_lea.vmem [#allocation2], %s3937_s20  ;;  %s1749_s19 = scalar_lea.vmem %s3995_s9, %s3937_s20 [#allocation15] }
 0x1eb   : > { %1564 = vperm.xlu0 %3091, %v1562_v13   ;;  %s2481_s20 = scalar_lea.vmem [#allocation2], %s3920_s18  ;;  %s2497_s27 = scalar_lea.vmem %s3995_s9, %s3920_s18 [#allocation15] }
 0x1ec   : > { %s2501_s18 = scalar_lea.vmem [#allocation2], %s3950_s28  ;;  %s2521_s12 = scalar_lea.vmem [#allocation2], %s3935_s15 }
 0x1ed   : > { %1390 = vperm.xlu1 %3092, %v1388_v28   ;;  %s2537_s1 = scalar_lea.vmem %s3995_s9, %s3935_s15 [#allocation15] }
 0x1ef   : > { %1913 = vperm.xlu0 %3091, %v1911_v14  }
 0x1f1   : > { %1738 = vperm.xlu1 %3092, %v1736_v30  }
 0x1f3   : > { %1047 = vperm.xlu0 %3091, %v1032_v5  }
 0x1f5   : > { %2088 = vperm.xlu1 %3092, %v2086_v31  }
 0x1f7   : > { %1397 = vperm.xlu0 %3091, %v2693_v17  }
 0x1f9   : > { %1222 = vperm.xlu1 %3092, %v2678_v25  }
 0x1fb   : > { %1745 = vperm.xlu0 %3091, %v1730_v23  }
 0x1fd   : > { %1571 = vperm.xlu1 %3092, %v2708_v10  }
 0x1ff   : > { %2263 = vperm.xlu0 %3091, %v2261_v24  }
 0x201   : > { %1920 = vperm.xlu1 %3092, %v2733_v12  }
 0x203   : > { %2270 = vperm.xlu0 %3091, %v2763_v20  }
 0x205   : > { %2095 = vperm.xlu1 %3092, %v2748_v29  }
 0x239   : > { %v769_v33 = vpop.permute.xlu0 %768 }
 0x23a   : > { %793 = vst.msk [vmem:[#allocation2 + $0x10] sm:$0x3] %vm524_vm1, %v769_v33 }
 0x23b   : > { %v773_v35 = vpop.permute.xlu1 %772 }
 0x23c   : > { %795 = vst.msk [vmem:[#allocation2 + $0x14] sm:$0x3] %vm524_vm1, %v773_v35 }
 0x23d   : > { %v802_v36 = vpop.permute.xlu0 %801 }
 0x23e   : > { %826 = vst.msk [vmem:[#allocation2 + $0x20] sm:$0x3] %vm524_vm1, %v802_v36 }
 0x23f   : > { %v804_v37 = vpop.permute.xlu1 %803 }
 0x240   : > { %827 = vst.msk [vmem:[#allocation2 + $0x22] sm:$0x3] %vm524_vm1, %v804_v37 }
 0x241   : > { %v771_v38 = vpop.permute.xlu0 %770 }
 0x242   : > { %794 = vst.msk [vmem:[#allocation2 + $0x12] sm:$0x3] %vm524_vm1, %v771_v38 }
 0x243   : > { %v775_v34 = vpop.permute.xlu1 %774 }
 0x244   : > { %796 = vst.msk [vmem:[#allocation2 + $0x16] sm:$0x3] %vm524_vm1, %v775_v34 }
 0x245   : > { %v777_v39 = vpop.permute.xlu0 %776 }
 0x246   : > { %797 = vst.msk [vmem:[#allocation2 + $0x18] sm:$0x3] %vm524_vm1, %v777_v39 }
 0x247   : > { %v779_v40 = vpop.permute.xlu1 %778 }
 0x248   : > { %798 = vst.msk [vmem:[#allocation2 + $0x1a] sm:$0x3] %vm524_vm1, %v779_v40 }
 0x249   : > { %v806_v41 = vpop.permute.xlu0 %805 }
 0x24a   : > { %828 = vst.msk [vmem:[#allocation2 + $0x24] sm:$0x3] %vm524_vm1, %v806_v41 }
 0x24b   : > { %v808_v42 = vpop.permute.xlu1 %807 }
 0x24c   : > { %829 = vst.msk [vmem:[#allocation2 + $0x26] sm:$0x3] %vm524_vm1, %v808_v42 }
 0x24d   : > { %v810_v43 = vpop.permute.xlu0 %809 }
 0x24e   : > { %830 = vst.msk [vmem:[#allocation2 + $0x28] sm:$0x3] %vm524_vm1, %v810_v43 }
 0x24f   : > { %v812_v44 = vpop.permute.xlu1 %811 }
 0x250   : > { %831 = vst.msk [vmem:[#allocation2 + $0x2a] sm:$0x3] %vm524_vm1, %v812_v44 }
 0x251   : > { %v781_v45 = vpop.permute.xlu0 %780 }
 0x252   : > { %799 = vst.msk [vmem:[#allocation2 + $0x1c] sm:$0x3] %vm524_vm1, %v781_v45 }
 0x253   : > { %v783_v46 = vpop.permute.xlu1 %782 }
 0x254   : > { %800 = vst.msk [vmem:[#allocation2 + $0x1e] sm:$0x3] %vm524_vm1, %v783_v46 }
 0x255   : > { %v814_v47 = vpop.permute.xlu0 %813 }
 0x256   : > { %832 = vst.msk [vmem:[#allocation2 + $0x2c] sm:$0x3] %vm524_vm1, %v814_v47 }
 0x257   : > { %v816_v48 = vpop.permute.xlu1 %815 }
 0x258   : > { %833 = vst.msk [vmem:[#allocation2 + $0x2e] sm:$0x3] %vm524_vm1, %v816_v48 }
 0x25f   : > { %v1007_v52 = vld [vmem:[%s1006_s30] sm:$0x3]  ;;  %v2663_v55 = vld [vmem:[%s1006_s30 + $0x10] sm:$0x3]  ;;  %v2670_v26 = vld [vmem:[%s2414_s3 + $0x2] sm:$0x3] }
 0x260   : > { %v1008_v54 = vadd.f32 %v1007_v52, %v896_v50  ;;  %v1018_v57 = vadd.f32 %v2663_v55, %v948_v53  ;;  %v2665_v5 = vld [vmem:[%s1006_s30 + $0x20] sm:$0x3]  ;;  %v2673_v37 = vld [vmem:[%s2414_s3 + $0x12] sm:$0x3]  ;;  %v2676_v53 = vld [vmem:[%s2414_s3 + $0x22] sm:$0x3] }
 0x262   : > { %v2662_v56 = vmul.f32 -1.442695, %v1008_v54  ;;  %v2664_v58 = vmul.f32 -1.442695, %v1018_v57 }
 0x264   : > { %3097 = vpow2.f32 %v2662_v56 }
 0x265   : > { %3099 = vpow2.f32 %v2664_v58 }
 0x266   : > { %v1041_v4 = vpop.permute.xlu0 %1040 }
 0x267   : > { %vm1042_vm11 = vcmp.eq.s32.totalorder %v1041_v4, 1 }
 0x268   : > { %v1216_v46 = vpop.permute.xlu1 %1215 }
 0x269   : > { %vm1217_vm12 = vcmp.eq.s32.totalorder %v1216_v46, 1 }
 0x26a   : > { %v3989_v7 = vpop.permute.xlu0 %1564 }
 0x26b   : > { %vm1566_vm14 = vcmp.eq.s32.totalorder %v3989_v7, 1 }
 0x26c   : > { %v4025_v54 = vpop.permute.xlu1 %1390 }
 0x26d   : > { %vm1392_vm13 = vcmp.eq.s32.totalorder %v4025_v54, 1 }
 0x26e   : > { %v3098_v59 = vpop.eup %3097  ;;  %v3992_v9 = vpop.permute.xlu0 %1913 }
 0x26f   : > { %v1012_v60 = vadd.f32 1.0, %v3098_v59  ;;  %v3100_v61 = vpop.eup %3099  ;;  %vm1915_vm3 = vcmp.eq.s32.totalorder %v3992_v9, 1  ;;  %v3178_v9 = vld [vmem:[%s3830_s11] sm:$0xff]  }
 0x270   : > { %v1022_v63 = vadd.f32 1.0, %v3100_v61  ;;  %v4027_v56 = vpop.permute.xlu1 %1738 }
 0x271   : > { %3101 = vrcp.f32 %v1012_v60  ;;  %vm1740_vm15 = vcmp.eq.s32.totalorder %v4027_v56, 1 }
 0x272   : > { %3103 = vrcp.f32 %v1022_v63  ;;  %v1048_v15 = vpop.permute.xlu0 %1047 }
 0x274   : > { %v4029_v58 = vpop.permute.xlu1 %2088 }
 0x275   : > { %vm2090_vm4 = vcmp.eq.s32.totalorder %v4029_v58, 1 }
 0x27b   : > { %v3102_v2 = vpop.eup %3101 }
 0x27c   : > { %v1028_v3 = vmul.f32 %v3102_v2, %v1000_v0  ;;  %v3104_v8 = vpop.eup %3103  ;;  %v1223_v2 = vpop.permute.xlu1 %1222 }
 0x27d   : > { %v1034_v10 = vsub.f32 1.0, %v3104_v8  ;;  %v1036_v13 = vmul.f32 %v3104_v8, %v3851_v22 }
 0x27e   : > { %v1029_v6 = vadd.f32 %v2665_v5, %v1028_v3 }
 0x280   : > { %3105 = vtanh.f32 %v1029_v6 }
 0x28a   : > { %v3106_v11 = vpop.eup %3105 }
 0x28b   : > { %v1035_v12 = vmul.f32 %v3106_v11, %v1034_v10 }
 0x28d   : > { %v1037_v14 = vadd.f32 %v1036_v13, %v1035_v12 }
 0x28f   : > { %v1043_v16 = vsel %vm1042_vm11, %v1037_v14, %v3851_v22 }
 0x290   : > { %1044 = vst.msk [vmem:[#allocation3] sm:$0x3] %vm524_vm1, %v1043_v16  ;;  %v1050_v17 = vmul.f32 %v1048_v15, %v1043_v16  ;;  %v2685_v15 = vld [vmem:[%s2434_s10 + $0x4] sm:$0x3]  ;;  %v2688_v16 = vld [vmem:[%s2434_s10 + $0x14] sm:$0x3] }
 0x292   : > { %1052 = vst.msk [vmem:[%s1051_s16] sm:$0x3] %vm524_vm1, %v1050_v17  ;;  %s4176_s16 = scalar_lea.hbm %s4235_s6, %s2772_s8 }
 0x297   : > { %v4002_v18 = vld [vmem:[#allocation3] sm:$0x3] }
 0x298   : > { %v1056_v19 = vpack.c.bf16 %v4002_v18, %v4002_v18 }
 0x29a   : > { %2850 = vmatmul.mubr.msk.bf16.vlgmr.msra.gmra.mrb[8].mxu0 %vm614_vm2, %v1056_v19  ;;  %2856 = vmatmul.mubr.msk.bf16.vlgmr.msra.gmra.mrb[8].mxu1 %vm614_vm2, %v1056_v19 }
 0x29b   : > { %2860 = vmatpush3.bf16.msra.mxu0 %v3857_v27  ;;  %2861 = vmatprep.mubr.msk.bf16.mxu0 %vm3469_vm0, %v3468_v1 }
 0x29c   : > { %2866 = vmatpush3.bf16.msra.mxu1 %v3849_v21  ;;  %2871 = vmatprep.subr.bf16.mxu0 %v3468_v1 }
 0x29d   : > { %2867 = vmatprep.mubr.msk.bf16.mxu1 %vm3469_vm0, %v3468_v1  ;;  %2877 = vmatprep.subr.bf16.mxu1 %v3468_v1 }
 0x2a2   : > { %2862 = vmatmul.mubr.msk.bf16.vlgmr.msra.gmra.mrb[12].mxu0 %vm614_vm2, %v1056_v19 }
 0x2a3   : > { %2872 = vmatpush3.bf16.msra.mxu0 %v3865_v32  ;;  %2873 = vmatprep.mubr.msk.bf16.mxu0 %vm3469_vm0, %v3468_v1 }
 0x2a4   : > { %2883 = vmatprep.subr.bf16.mxu0 %v3468_v1 }
 0x36d   : > { %v1094_v22 = vpop.f32.mrb[8].mxu0  ;;  %v1134_v20 = vpop.f32.mrb[8].mxu1 }
 0x36e   : > { %v1095_v23 = vadd.f32 %v3974_v49, %v1094_v22  ;;  %v2851_v24 = vpop.f32.mrb[9].mxu0  ;;  %v2857_v25 = vpop.f32.mrb[9].mxu1  ;;  %v1135_v28 = vadd.f32 %v3979_v51, %v1134_v20 }
 0x36f   : > { %v1097_v29 = vpop.f32.mrb[10].mxu0  ;;  %v1137_v30 = vpop.f32.mrb[10].mxu1 }
 0x370   : > { %v1183_v31 = vadd.f32 %v2670_v26, %v1095_v23  ;;  %v2852_v33 = vpop.f32.mrb[11].mxu0  ;;  %v2858_v35 = vpop.f32.mrb[11].mxu1  ;;  %v1193_v38 = vadd.f32 %v2673_v37, %v1135_v28 }
 0x372   : > { %v2671_v36 = vmul.f32 -1.442695, %v1183_v31  ;;  %v2674_v40 = vmul.f32 -1.442695, %v1193_v38 }
 0x374   : > { %3107 = vpow2.f32 %v2671_v36 }
 0x375   : > { %v1174_v34 = vpop.f32.mrb[12].mxu0  ;;  %3109 = vpow2.f32 %v2674_v40 }
 0x376   : > { %v2863_v39 = vpop.f32.mrb[13].mxu0  ;;  %v1175_v48 = vadd.f32 %v3985_v62, %v1174_v34 }
 0x377   : > { %v1177_v41 = vpop.f32.mrb[14].mxu0  ;;  %v2691_v39 = vld [vmem:[%s2434_s10 + $0x24] sm:$0x3] }
 0x378   : > { %v2864_v42 = vpop.f32.mrb[15].mxu0 }
 0x37e   : > { %v3108_v43 = vpop.eup %3107 }
 0x37f   : > { %v1187_v44 = vadd.f32 1.0, %v3108_v43  ;;  %v3110_v45 = vpop.eup %3109 }
 0x380   : > { %v1197_v47 = vadd.f32 1.0, %v3110_v45 }
 0x381   : > { %3111 = vrcp.f32 %v1187_v44 }
 0x382   : > { %3113 = vrcp.f32 %v1197_v47  ;;  %v1398_v47 = vpop.permute.xlu0 %1397 }
 0x38b   : > { %v3112_v50 = vpop.eup %3111 }
 0x38c   : > { %v1203_v52 = vmul.f32 %v3112_v50, %v1175_v48  ;;  %v3114_v57 = vpop.eup %3113 }
 0x38d   : > { %v1209_v59 = vsub.f32 1.0, %v3114_v57  ;;  %v1211_v63 = vmul.f32 %v3114_v57, %v4002_v18 }
 0x38e   : > { %v1204_v55 = vadd.f32 %v2676_v53, %v1203_v52 }
 0x390   : > { %3115 = vtanh.f32 %v1204_v55 }
 0x39a   : > { %v3116_v60 = vpop.eup %3115 }
 0x39b   : > { %v1210_v61 = vmul.f32 %v3116_v60, %v1209_v59 }
 0x39d   : > { %v1212_v0 = vadd.f32 %v1211_v63, %v1210_v61  ;;  %v2700_v63 = vld [vmem:[%s2453_s7 + $0x6] sm:$0x3] }
 0x39f   : > { %v1218_v3 = vsel %vm1217_vm12, %v1212_v0, %v4002_v18  ;;  %v2703_v0 = vld [vmem:[%s2453_s7 + $0x16] sm:$0x3] }
 0x3a0   : > { %1219 = vst.msk [vmem:[#allocation3] sm:$0x3] %vm524_vm1, %v1218_v3  ;;  %v1225_v4 = vmul.f32 %v1223_v2, %v1218_v3 }
 0x3a2   : > { %2680 = vst.msk [vmem:[%s2430_s21 + $0x2] sm:$0x3] %vm524_vm1, %v1225_v4 }
 0x3a7   : > { %v1230_v5 = vld [vmem:[#allocation3] sm:$0x3] }
 0x3a8   : > { %v1231_v6 = vpack.c.bf16 %v1230_v5, %v1230_v5 }
 0x3aa   : > { %2868 = vmatmul.mubr.msk.bf16.vlgmr.msra.gmra.mrb[12].mxu1 %vm614_vm2, %v1231_v6  ;;  %2874 = vmatmul.mubr.msk.bf16.vlgmr.msra.gmra.mrb[16].mxu0 %vm614_vm2, %v1231_v6 }
 0x3ab   : > { %2878 = vmatpush3.bf16.msra.mxu1 %v3857_v27  ;;  %2879 = vmatprep.mubr.msk.bf16.mxu1 %vm3469_vm0, %v3468_v1 }
 0x3ac   : > { %2884 = vmatpush3.bf16.msra.mxu0 %v3849_v21  ;;  %2889 = vmatprep.subr.bf16.mxu1 %v3468_v1 }
 0x3ad   : > { %2885 = vmatprep.mubr.msk.bf16.mxu0 %vm3469_vm0, %v3468_v1  ;;  %2895 = vmatprep.subr.bf16.mxu0 %v3468_v1 }
 0x3b2   : > { %2880 = vmatmul.mubr.msk.bf16.vlgmr.msra.gmra.mrb[16].mxu1 %vm614_vm2, %v1231_v6 }
 0x3b3   : > { %2890 = vmatpush3.bf16.msra.mxu1 %v3865_v32  ;;  %2891 = vmatprep.mubr.msk.bf16.mxu1 %vm3469_vm0, %v3468_v1 }
 0x3b4   : > { %2901 = vmatprep.subr.bf16.mxu1 %v3468_v1 }
 0x47d   : > { %v1269_v8 = vpop.f32.mrb[12].mxu1  ;;  %v1309_v10 = vpop.f32.mrb[16].mxu0 }
 0x47e   : > { %v1270_v11 = vadd.f32 %v3974_v49, %v1269_v8  ;;  %v1310_v12 = vadd.f32 %v3979_v51, %v1309_v10  ;;  %v2869_v13 = vpop.f32.mrb[13].mxu1  ;;  %v2875_v14 = vpop.f32.mrb[17].mxu0 }
 0x47f   : > { %v1272_v17 = vpop.f32.mrb[14].mxu1  ;;  %v1312_v18 = vpop.f32.mrb[18].mxu0 }
 0x480   : > { %v1358_v19 = vadd.f32 %v2685_v15, %v1270_v11  ;;  %v1368_v22 = vadd.f32 %v2688_v16, %v1310_v12  ;;  %v2870_v20 = vpop.f32.mrb[15].mxu1  ;;  %v2876_v23 = vpop.f32.mrb[19].mxu0 }
 0x482   : > { %v2686_v24 = vmul.f32 -1.442695, %v1358_v19  ;;  %v2689_v28 = vmul.f32 -1.442695, %v1368_v22 }
 0x484   : > { %3117 = vpow2.f32 %v2686_v24  ;;  %v2706_v24 = vld [vmem:[%s2453_s7 + $0x26] sm:$0x3] }
 0x485   : > { %v1349_v25 = vpop.f32.mrb[16].mxu1  ;;  %3119 = vpow2.f32 %v2689_v28 }
 0x486   : > { %v2881_v26 = vpop.f32.mrb[17].mxu1  ;;  %v1350_v37 = vadd.f32 %v3985_v62, %v1349_v25 }
 0x487   : > { %v1352_v29 = vpop.f32.mrb[18].mxu1 }
 0x488   : > { %v2882_v30 = vpop.f32.mrb[19].mxu1 }
 0x48e   : > { %v3118_v31 = vpop.eup %3117 }
 0x48f   : > { %v1362_v33 = vadd.f32 1.0, %v3118_v31  ;;  %v3120_v35 = vpop.eup %3119 }
 0x490   : > { %v1372_v36 = vadd.f32 1.0, %v3120_v35  ;;  %v1572_v35 = vpop.permute.xlu1 %1571 }
 0x491   : > { %3121 = vrcp.f32 %v1362_v33 }
 0x492   : > { %3123 = vrcp.f32 %v1372_v36 }
 0x49b   : > { %v3122_v38 = vpop.eup %3121 }
 0x49c   : > { %v1378_v34 = vmul.f32 %v3122_v38, %v1350_v37  ;;  %v3124_v41 = vpop.eup %3123 }
 0x49d   : > { %v1384_v42 = vsub.f32 1.0, %v3124_v41  ;;  %v1386_v44 = vmul.f32 %v3124_v41, %v1230_v5 }
 0x49e   : > { %v1379_v40 = vadd.f32 %v2691_v39, %v1378_v34 }
 0x4a0   : > { %3125 = vtanh.f32 %v1379_v40 }
 0x4aa   : > { %v3126_v43 = vpop.eup %3125 }
 0x4ab   : > { %v1385_v45 = vmul.f32 %v3126_v43, %v1384_v42 }
 0x4ad   : > { %v1387_v46 = vadd.f32 %v1386_v44, %v1385_v45  ;;  %v1705_v44 = vld [vmem:[%s1704_s26] sm:$0x3]  ;;  %v2717_v45 = vld [vmem:[%s1704_s26 + $0x10] sm:$0x3] }
 0x4af   : > { %v1393_v48 = vsel %vm1392_vm13, %v1387_v46, %v1230_v5 }
 0x4b0   : > { %1394 = vst.msk [vmem:[#allocation3] sm:$0x3] %vm524_vm1, %v1393_v48  ;;  %v1400_v50 = vmul.f32 %v1398_v47, %v1393_v48 }
 0x4b2   : > { %2695 = vst.msk [vmem:[%s2450_s17 + $0x4] sm:$0x3] %vm524_vm1, %v1400_v50 }
 0x4b7   : > { %v1404_v52 = vld [vmem:[#allocation3] sm:$0x3] }
 0x4b8   : > { %v1405_v53 = vpack.c.bf16 %v1404_v52, %v1404_v52 }
 0x4ba   : > { %2886 = vmatmul.mubr.msk.bf16.vlgmr.msra.gmra.mrb[20].mxu0 %vm614_vm2, %v1405_v53  ;;  %2892 = vmatmul.mubr.msk.bf16.vlgmr.msra.gmra.mrb[20].mxu1 %vm614_vm2, %v1405_v53 }
 0x4bb   : > { %2896 = vmatpush3.bf16.msra.mxu0 %v3857_v27  ;;  %2897 = vmatprep.mubr.msk.bf16.mxu0 %vm3469_vm0, %v3468_v1 }
 0x4bc   : > { %2902 = vmatpush3.bf16.msra.mxu1 %v3849_v21  ;;  %2907 = vmatprep.subr.bf16.mxu0 %v3468_v1 }
 0x4bd   : > { %2903 = vmatprep.mubr.msk.bf16.mxu1 %vm3469_vm0, %v3468_v1  ;;  %2913 = vmatprep.subr.bf16.mxu1 %v3468_v1 }
 0x4c2   : > { %2898 = vmatmul.mubr.msk.bf16.vlgmr.msra.gmra.mrb[24].mxu0 %vm614_vm2, %v1405_v53 }
 0x4c3   : > { %2908 = vmatpush3.bf16.msra.mxu0 %v3865_v32  ;;  %2909 = vmatprep.mubr.msk.bf16.mxu0 %vm3469_vm0, %v3468_v1 }
 0x4c4   : > { %2919 = vmatprep.subr.bf16.mxu0 %v3468_v1 }
 0x58d   : > { %v1443_v54 = vpop.f32.mrb[20].mxu0  ;;  %v1483_v55 = vpop.f32.mrb[20].mxu1 }
 0x58e   : > { %v1444_v57 = vadd.f32 %v3974_v49, %v1443_v54  ;;  %v1484_v59 = vadd.f32 %v3979_v51, %v1483_v55  ;;  %v2887_v60 = vpop.f32.mrb[21].mxu0  ;;  %v2893_v61 = vpop.f32.mrb[21].mxu1 }
 0x58f   : > { %v1446_v2 = vpop.f32.mrb[22].mxu0  ;;  %v1486_v3 = vpop.f32.mrb[22].mxu1 }
 0x590   : > { %v1532_v4 = vadd.f32 %v2700_v63, %v1444_v57  ;;  %v1542_v5 = vadd.f32 %v2703_v0, %v1484_v59  ;;  %v2888_v6 = vpop.f32.mrb[23].mxu0  ;;  %v2894_v8 = vpop.f32.mrb[23].mxu1 }
 0x591   : > { %v2720_v8 = vld [vmem:[%s1704_s26 + $0x20] sm:$0x3] }
 0x592   : > { %v2701_v10 = vmul.f32 -1.442695, %v1532_v4  ;;  %v2704_v13 = vmul.f32 -1.442695, %v1542_v5 }
 0x594   : > { %3127 = vpow2.f32 %v2701_v10 }
 0x595   : > { %v1523_v11 = vpop.f32.mrb[24].mxu0  ;;  %3129 = vpow2.f32 %v2704_v13 }
 0x596   : > { %v2899_v12 = vpop.f32.mrb[25].mxu0  ;;  %v1524_v22 = vadd.f32 %v3985_v62, %v1523_v11 }
 0x597   : > { %v1526_v14 = vpop.f32.mrb[26].mxu0 }
 0x598   : > { %v2900_v15 = vpop.f32.mrb[27].mxu0 }
 0x59e   : > { %v3128_v16 = vpop.eup %3127 }
 0x59f   : > { %v1536_v17 = vadd.f32 1.0, %v3128_v16  ;;  %v3130_v18 = vpop.eup %3129 }
 0x5a0   : > { %v1546_v19 = vadd.f32 1.0, %v3130_v18 }
 0x5a1   : > { %3131 = vrcp.f32 %v1536_v17  ;;  %v1746_v17 = vpop.permute.xlu0 %1745 }
 0x5a2   : > { %3133 = vrcp.f32 %v1546_v19 }
 0x5ab   : > { %v3132_v20 = vpop.eup %3131 }
 0x5ac   : > { %v1552_v23 = vmul.f32 %v3132_v20, %v1524_v22  ;;  %v3134_v26 = vpop.eup %3133 }
 0x5ad   : > { %v1558_v28 = vsub.f32 1.0, %v3134_v26  ;;  %v1560_v30 = vmul.f32 %v3134_v26, %v1404_v52  ;;  %v2725_v26 = vld [vmem:[%s2481_s20 + $0xa] sm:$0x3] }
 0x5ae   : > { %v1553_v25 = vadd.f32 %v2706_v24, %v1552_v23 }
 0x5b0   : > { %3135 = vtanh.f32 %v1553_v25 }
 0x5ba   : > { %v3136_v29 = vpop.eup %3135 }
 0x5bb   : > { %v1559_v31 = vmul.f32 %v3136_v29, %v1558_v28  ;;  %v2728_v28 = vld [vmem:[%s2481_s20 + $0x1a] sm:$0x3] }
 0x5bd   : > { %v1561_v33 = vadd.f32 %v1560_v30, %v1559_v31 }
 0x5bf   : > { %v1567_v36 = vsel %vm1566_vm14, %v1561_v33, %v1404_v52 }
 0x5c0   : > { %1568 = vst.msk [vmem:[#allocation3] sm:$0x3] %vm524_vm1, %v1567_v36  ;;  %v1574_v37 = vmul.f32 %v1572_v35, %v1567_v36 }
 0x5c2   : > { %2710 = vst.msk [vmem:[%s2465_s29 + $0x6] sm:$0x3] %vm524_vm1, %v1574_v37 }
 0x5c7   : > { %v1578_v38 = vld [vmem:[#allocation3] sm:$0x3] }
 0x5c8   : > { %v1579_v34 = vpack.c.bf16 %v1578_v38, %v1578_v38 }
 0x5ca   : > { %2904 = vmatmul.mubr.msk.bf16.vlgmr.msra.gmra.mrb[24].mxu1 %vm614_vm2, %v1579_v34  ;;  %2910 = vmatmul.mubr.msk.bf16.vlgmr.msra.gmra.mrb[28].mxu0 %vm614_vm2, %v1579_v34 }
 0x5cb   : > { %2914 = vmatpush3.bf16.msra.mxu1 %v3857_v27  ;;  %2915 = vmatprep.mubr.msk.bf16.mxu1 %vm3469_vm0, %v3468_v1 }
 0x5cc   : > { %2920 = vmatpush3.bf16.msra.mxu0 %v3849_v21  ;;  %2925 = vmatprep.subr.bf16.mxu1 %v3468_v1 }
 0x5cd   : > { %2921 = vmatprep.mubr.msk.bf16.mxu0 %vm3469_vm0, %v3468_v1  ;;  %2931 = vmatprep.subr.bf16.mxu0 %v3468_v1 }
 0x5d2   : > { %2916 = vmatmul.mubr.msk.bf16.vlgmr.msra.gmra.mrb[28].mxu1 %vm614_vm2, %v1579_v34 }
 0x5d3   : > { %2926 = vmatpush3.bf16.msra.mxu1 %v3865_v32  ;;  %2927 = vmatprep.mubr.msk.bf16.mxu1 %vm3469_vm0, %v3468_v1 }
 0x5d4   : > { %2937 = vmatprep.subr.bf16.mxu1 %v3468_v1 }
 0x69d   : > { %v1617_v7 = vpop.f32.mrb[24].mxu1  ;;  %v1657_v39 = vpop.f32.mrb[28].mxu0 }
 0x69e   : > { %v1618_v40 = vadd.f32 %v3974_v49, %v1617_v7  ;;  %v1658_v41 = vadd.f32 %v3979_v51, %v1657_v39  ;;  %v2905_v42 = vpop.f32.mrb[25].mxu1  ;;  %v2911_v43 = vpop.f32.mrb[29].mxu0 }
 0x69f   : > { %v1620_v46 = vpop.f32.mrb[26].mxu1  ;;  %v1660_v47 = vpop.f32.mrb[30].mxu0 }
 0x6a0   : > { %v1706_v48 = vadd.f32 %v1705_v44, %v1618_v40  ;;  %v1716_v50 = vadd.f32 %v2717_v45, %v1658_v41  ;;  %v2906_v52 = vpop.f32.mrb[27].mxu1  ;;  %v2912_v53 = vpop.f32.mrb[31].mxu0  ;;  %v2731_v47 = vld [vmem:[%s2481_s20 + $0x2a] sm:$0x3] }
 0x6a2   : > { %v2715_v54 = vmul.f32 -1.442695, %v1706_v48  ;;  %v2718_v59 = vmul.f32 -1.442695, %v1716_v50 }
 0x6a4   : > { %3137 = vpow2.f32 %v2715_v54 }
 0x6a5   : > { %v1697_v55 = vpop.f32.mrb[28].mxu1  ;;  %3139 = vpow2.f32 %v2718_v59  ;;  %v1921_v59 = vpop.permute.xlu1 %1920 }
 0x6a6   : > { %v2917_v57 = vpop.f32.mrb[29].mxu1  ;;  %v1698_v4 = vadd.f32 %v3985_v62, %v1697_v55 }
 0x6a7   : > { %v1700_v60 = vpop.f32.mrb[30].mxu1 }
 0x6a8   : > { %v2918_v61 = vpop.f32.mrb[31].mxu1 }
 0x6ae   : > { %v3138_v63 = vpop.eup %3137 }
 0x6af   : > { %v1710_v0 = vadd.f32 1.0, %v3138_v63  ;;  %v3140_v2 = vpop.eup %3139 }
 0x6b0   : > { %v1720_v3 = vadd.f32 1.0, %v3140_v2  ;;  %v4136_v2 = vld [vmem:[%s3830_s11 + $0x10] sm:$0xff]  }
 0x6b1   : > { %3141 = vrcp.f32 %v1710_v0 }
 0x6b2   : > { %3143 = vrcp.f32 %v1720_v3  ;;  %v3179_v3 = vld [vmem:[%s3830_s11 + $0x8] sm:$0xff]   ;;  %s2517_s11 = scalar_lea.vmem %s3995_s9, %s3950_s28 [#allocation15]  ;;  %s2296_s28 = sshll.u32 %s3995_s9, 4  ;;  %s4178_s28 = int_to_ptr.vmem [resolvable:$true] %s2296_s28 }
 0x6b3   : > { %s3356_s15 = scalar_lea.vmem %s4178_s28, 256  ;;  %s3475_s9 = smov [#allocation15]  }
 0x6b4   : > { %p3357_p1 = scmp.ne.s32.totalorder %s4178_s28, %s3356_s15  ;;  %s3360_s3 = sshll.u32 %s3475_s9, 4  ;;  %s3361_s3 = int_to_ptr.vmem [resolvable:$false] %s3360_s3 }
 0x6b5   : > { %s3362_s21 = scalar_lea.vmem %s3361_s3, 512  ;;  %p3363_p12 = scmp.lt.s32.totalorder %s4178_s28, %s3361_s3 }
 0x6b6   : > { %p3358_p9 = pnand %p3357_p1, %p4289_p4  ;;  %p3364_p10 = scmp.lt.s32.totalorder %s3362_s21, %s3356_s15 }
 0x6b8   : > { %p3359_p5 = pneg %p3358_p9  ;;  %p3365_p0 = por %p3364_p10, %p3363_p12 }
 0x6ba   : > { %p3366_p2 = pnand %p3365_p0, %p3359_p5 }
 0x6bb   : > { %v3142_v5 = vpop.eup %3141 }
 0x6bc   : > { %v1726_v6 = vmul.f32 %v3142_v5, %v1698_v4  ;;  %v3144_v11 = vpop.eup %3143 }
 0x6bd   : > { %v1732_v12 = vsub.f32 1.0, %v3144_v11  ;;  %v1734_v14 = vmul.f32 %v3144_v11, %v1578_v38  ;;  %v2740_v11 = vld [vmem:[%s2501_s18 + $0xc] sm:$0x3] }
 0x6be   : > { %v1727_v10 = vadd.f32 %v2720_v8, %v1726_v6 }
 0x6c0   : > { %3145 = vtanh.f32 %v1727_v10 }
 0x6ca   : > { %v3146_v13 = vpop.eup %3145 }
 0x6cb   : > { %v1733_v15 = vmul.f32 %v3146_v13, %v1732_v12 }
 0x6cd   : > { %v1735_v16 = vadd.f32 %v1734_v14, %v1733_v15 }
 0x6cf   : > { %v1741_v18 = vsel %vm1740_vm15, %v1735_v16, %v1578_v38 }
 0x6d0   : > { %1742 = vst.msk [vmem:[#allocation3] sm:$0x3] %vm524_vm1, %v1741_v18  ;;  %v1748_v19 = vmul.f32 %v1746_v17, %v1741_v18 }
 0x6d2   : > { %1750 = vst.msk [vmem:[%s1749_s19] sm:$0x3] %vm524_vm1, %v1748_v19  ;;  %v2743_v19 = vld [vmem:[%s2501_s18 + $0x1c] sm:$0x3] }
 0x6d7   : > { %v1753_v22 = vld [vmem:[#allocation3] sm:$0x3] }
 0x6d8   : > { %v1754_v20 = vpack.c.bf16 %v1753_v22, %v1753_v22 }
 0x6da   : > { %2922 = vmatmul.mubr.msk.bf16.vlgmr.msra.gmra.mrb[32].mxu0 %vm614_vm2, %v1754_v20  ;;  %2928 = vmatmul.mubr.msk.bf16.vlgmr.msra.gmra.mrb[32].mxu1 %vm614_vm2, %v1754_v20 }
 0x6db   : > { %2932 = vmatpush3.bf16.msra.mxu0 %v3857_v27  ;;  %2933 = vmatprep.mubr.msk.bf16.mxu0 %vm3469_vm0, %v3468_v1 }
 0x6dc   : > { %2938 = vmatpush3.bf16.msra.mxu1 %v3849_v21  ;;  %2943 = vmatprep.subr.bf16.mxu0 %v3468_v1 }
 0x6dd   : > { %2939 = vmatprep.mubr.msk.bf16.mxu1 %vm3469_vm0, %v3468_v1  ;;  %2949 = vmatprep.subr.bf16.mxu1 %v3468_v1 }
 0x6e2   : > { %2934 = vmatmul.mubr.msk.bf16.vlgmr.msra.gmra.mrb[36].mxu0 %vm614_vm2, %v1754_v20 }
 0x6e3   : > { %2944 = vmatpush3.bf16.msra.mxu0 %v3865_v32  ;;  %2945 = vmatprep.mubr.msk.bf16.mxu0 %vm3469_vm0, %v3468_v1 }
 0x6e4   : > { %2955 = vmatprep.subr.bf16.mxu0 %v3468_v1 }
 0x7ad   : > { %v1792_v27 = vpop.f32.mrb[32].mxu0  ;;  %v1832_v56 = vpop.f32.mrb[32].mxu1 }
 0x7ae   : > { %v1793_v21 = vadd.f32 %v3974_v49, %v1792_v27  ;;  %v1833_v23 = vadd.f32 %v3979_v51, %v1832_v56  ;;  %v2923_v24 = vpop.f32.mrb[33].mxu0  ;;  %v2929_v25 = vpop.f32.mrb[33].mxu1 }
 0x7af   : > { %v1795_v29 = vpop.f32.mrb[34].mxu0  ;;  %v1835_v30 = vpop.f32.mrb[34].mxu1 }
 0x7b0   : > { %v1881_v31 = vadd.f32 %v2725_v26, %v1793_v21  ;;  %v1891_v32 = vadd.f32 %v2728_v28, %v1833_v23  ;;  %v2924_v33 = vpop.f32.mrb[35].mxu0  ;;  %v2930_v35 = vpop.f32.mrb[35].mxu1 }
 0x7b2   : > { %v2726_v36 = vmul.f32 -1.442695, %v1881_v31  ;;  %v2729_v34 = vmul.f32 -1.442695, %v1891_v32  ;;  %v2746_v32 = vld [vmem:[%s2501_s18 + $0x2c] sm:$0x3] }
 0x7b4   : > { %3147 = vpow2.f32 %v2726_v36 }
 0x7b5   : > { %v1872_v37 = vpop.f32.mrb[36].mxu0  ;;  %3149 = vpow2.f32 %v2729_v34 }
 0x7b6   : > { %v2935_v38 = vpop.f32.mrb[37].mxu0  ;;  %v1873_v44 = vadd.f32 %v3985_v62, %v1872_v37 }
 0x7b7   : > { %v1875_v7 = vpop.f32.mrb[38].mxu0 }
 0x7b8   : > { %v2936_v39 = vpop.f32.mrb[39].mxu0 }
 0x7b9   : > { %v2096_v39 = vpop.permute.xlu1 %2095 }
 0x7be   : > { %v3148_v40 = vpop.eup %3147 }
 0x7bf   : > { %v1885_v41 = vadd.f32 1.0, %v3148_v40  ;;  %v3150_v42 = vpop.eup %3149 }
 0x7c0   : > { %v1895_v43 = vadd.f32 1.0, %v3150_v42 }
 0x7c1   : > { %3151 = vrcp.f32 %v1885_v41 }
 0x7c2   : > { %3153 = vrcp.f32 %v1895_v43 }
 0x7cb   : > { %v3152_v45 = vpop.eup %3151 }
 0x7cc   : > { %v1901_v46 = vmul.f32 %v3152_v45, %v1873_v44  ;;  %v3154_v50 = vpop.eup %3153 }
 0x7cd   : > { %v1907_v52 = vsub.f32 1.0, %v3154_v50  ;;  %v1909_v54 = vmul.f32 %v3154_v50, %v1753_v22  ;;  %v2755_v50 = vld [vmem:[%s2521_s12 + $0xe] sm:$0x3] }
 0x7ce   : > { %v1902_v48 = vadd.f32 %v2731_v47, %v1901_v46 }
 0x7d0   : > { %3155 = vtanh.f32 %v1902_v48 }
 0x7da   : > { %v3156_v53 = vpop.eup %3155 }
 0x7db   : > { %v1908_v55 = vmul.f32 %v3156_v53, %v1907_v52  ;;  %v2758_v52 = vld [vmem:[%s2521_s12 + $0x1e] sm:$0x3] }
 0x7dd   : > { %v1910_v57 = vadd.f32 %v1909_v54, %v1908_v55 }
 0x7df   : > { %v1916_v60 = vsel %vm1915_vm3, %v1910_v57, %v1753_v22 }
 0x7e0   : > { %1917 = vst.msk [vmem:[#allocation3] sm:$0x3] %vm524_vm1, %v1916_v60  ;;  %v1923_v61 = vmul.f32 %v1921_v59, %v1916_v60 }
 0x7e2   : > { %2735 = vst.msk [vmem:[%s2497_s27 + $0xa] sm:$0x3] %vm524_vm1, %v1923_v61 }
 0x7e7   : > { %v1928_v63 = vld [vmem:[#allocation3] sm:$0x3] }
 0x7e8   : > { %v1929_v0 = vpack.c.bf16 %v1928_v63, %v1928_v63 }
 0x7ea   : > { %2940 = vmatmul.mubr.msk.bf16.vlgmr.msra.gmra.mrb[36].mxu1 %vm614_vm2, %v1929_v0  ;;  %2946 = vmatmul.mubr.msk.bf16.vlgmr.msra.gmra.mrb[40].mxu0 %vm614_vm2, %v1929_v0 }
 0x7eb   : > { %2950 = vmatpush3.bf16.msra.mxu1 %v4136_v2  ;;  %2951 = vmatprep.mubr.msk.bf16.mxu1 %vm3469_vm0, %v3468_v1 }
 0x7ec   : > { %2956 = vmatpush3.bf16.msra.mxu0 %v3178_v9  ;;  %2961 = vmatprep.subr.bf16.mxu1 %v3468_v1 }
 0x7ed   : > { %2957 = vmatprep.mubr.msk.bf16.mxu0 %vm3469_vm0, %v3468_v1  ;;  %2967 = vmatprep.subr.bf16.mxu0 %v3468_v1 }
 0x7f2   : > { %2952 = vmatmul.mubr.msk.bf16.vlgmr.msra.gmra.mrb[40].mxu1 %vm614_vm2, %v1929_v0 }
 0x7f3   : > { %2962 = vmatpush3.bf16.msra.mxu1 %v3179_v3  ;;  %2963 = vmatprep.mubr.msk.bf16.mxu1 %vm3469_vm0, %v3468_v1 }
 0x8bd   : > { %v1967_v4 = vpop.f32.mrb[36].mxu1  ;;  %v2007_v5 = vpop.f32.mrb[40].mxu0 }
 0x8be   : > { %v1968_v6 = vadd.f32 %v3974_v49, %v1967_v4  ;;  %v2941_v8 = vpop.f32.mrb[37].mxu1  ;;  %v2947_v10 = vpop.f32.mrb[41].mxu0  ;;  %v2008_v12 = vadd.f32 %v3979_v51, %v2007_v5 }
 0x8bf   : > { %v1970_v13 = vpop.f32.mrb[38].mxu1  ;;  %v2010_v14 = vpop.f32.mrb[42].mxu0  ;;  %v2761_v10 = vld [vmem:[%s2521_s12 + $0x2e] sm:$0x3] }
 0x8c0   : > { %v2056_v15 = vadd.f32 %v2740_v11, %v1968_v6  ;;  %v2942_v16 = vpop.f32.mrb[39].mxu1  ;;  %v2948_v17 = vpop.f32.mrb[43].mxu0  ;;  %v2066_v22 = vadd.f32 %v2743_v19, %v2008_v12 }
 0x8c1   : > { %v2264_v13 = vpop.permute.xlu0 %2263 }
 0x8c2   : > { %v2741_v18 = vmul.f32 -1.442695, %v2056_v15  ;;  %v2744_v56 = vmul.f32 -1.442695, %v2066_v22 }
 0x8c4   : > { %3157 = vpow2.f32 %v2741_v18 }
 0x8c5   : > { %v2047_v20 = vpop.f32.mrb[40].mxu1  ;;  %3159 = vpow2.f32 %v2744_v56 }
 0x8c6   : > { %v2953_v27 = vpop.f32.mrb[41].mxu1  ;;  %v2048_v29 = vadd.f32 %v3985_v62, %v2047_v20 }
 0x8c7   : > { %v2050_v21 = vpop.f32.mrb[42].mxu1 }
 0x8c8   : > { %v2954_v23 = vpop.f32.mrb[43].mxu1 }
 0x8ce   : > { %v3158_v24 = vpop.eup %3157 }
 0x8cf   : > { %v2060_v25 = vadd.f32 1.0, %v3158_v24  ;;  %v3160_v26 = vpop.eup %3159 }
 0x8d0   : > { %v2070_v28 = vadd.f32 1.0, %v3160_v26 }
 0x8d1   : > { %3161 = vrcp.f32 %v2060_v25 }
 0x8d2   : > { %3163 = vrcp.f32 %v2070_v28 }
 0x8db   : > { %v3162_v30 = vpop.eup %3161 }
 0x8dc   : > { %v2076_v31 = vmul.f32 %v3162_v30, %v2048_v29  ;;  %v3164_v35 = vpop.eup %3163 }
 0x8dd   : > { %v2082_v36 = vsub.f32 1.0, %v3164_v35  ;;  %v2084_v38 = vmul.f32 %v3164_v35, %v1928_v63 }
 0x8de   : > { %v2077_v33 = vadd.f32 %v2746_v32, %v2076_v31 }
 0x8e0   : > { %3165 = vtanh.f32 %v2077_v33 }
 0x8ea   : > { %v3166_v37 = vpop.eup %3165 }
 0x8eb   : > { %v2083_v34 = vmul.f32 %v3166_v37, %v2082_v36 }
 0x8ed   : > { %v2085_v7 = vadd.f32 %v2084_v38, %v2083_v34 }
 0x8ef   : > { %v2091_v40 = vsel %vm2090_vm4, %v2085_v7, %v1928_v63 }
 0x8f0   : > { %v2098_v41 = vmul.f32 %v2096_v39, %v2091_v40  ;;  %2092 = vst.msk [vmem:[#allocation3] sm:$0x3] %vm524_vm1, %v2091_v40 }
 0x8f2   : > { %2750 = vst.msk [vmem:[%s2517_s11 + $0xc] sm:$0x3] %vm524_vm1, %v2098_v41 }
 0x8f7   : > { %v2103_v42 = vld [vmem:[#allocation3] sm:$0x3] }
 0x8f8   : > { %v2104_v43 = vpack.c.bf16 %v2103_v42, %v2103_v42 }
 0x8fa   : > { %2958 = vmatmul.mubr.msk.bf16.vlgmr.msra.gmra.mrb[44].mxu0 %vm614_vm2, %v2104_v43  ;;  %2964 = vmatmul.mubr.msk.bf16.vlgmr.msra.gmra.mrb[44].mxu1 %vm614_vm2, %v2104_v43 }
 0x8fb   : > { %2968 = vmatpush3.bf16.msra.mxu0 %v4136_v2  ;;  %2969 = vmatprep.mubr.msk.bf16.mxu0 %vm3469_vm0, %v3468_v1  ;;  %vm2265_vm0 = vcmp.eq.s32.totalorder %v2264_v13, 1 }
 0x902   : > { %2970 = vmatmul.mubr.msk.bf16.vlgmr.msra.gmra.mrb[48].mxu0 %vm614_vm2, %v2104_v43 }
 0x9cd   : > { %v2142_v58 = vpop.f32.mrb[44].mxu0  ;;  %v2182_v44 = vpop.f32.mrb[44].mxu1 }
 0x9ce   : > { %v2143_v45 = vadd.f32 %v3974_v49, %v2142_v58  ;;  %v2183_v46 = vadd.f32 %v3979_v51, %v2182_v44  ;;  %v2959_v47 = vpop.f32.mrb[45].mxu0  ;;  %v2965_v48 = vpop.f32.mrb[45].mxu1 }
 0x9cf   : > { %v2145_v53 = vpop.f32.mrb[46].mxu0  ;;  %v2185_v54 = vpop.f32.mrb[46].mxu1 }
 0x9d0   : > { %v2231_v55 = vadd.f32 %v2755_v50, %v2143_v45  ;;  %v2241_v57 = vadd.f32 %v2758_v52, %v2183_v46  ;;  %v2960_v59 = vpop.f32.mrb[47].mxu0  ;;  %v2966_v60 = vpop.f32.mrb[47].mxu1 }
 0x9d2   : > { %v2756_v1 = vmul.f32 -1.442695, %v2231_v55  ;;  %v2759_v0 = vmul.f32 -1.442695, %v2241_v57 }
 0x9d4   : > { %3167 = vpow2.f32 %v2756_v1 }
 0x9d5   : > { %v2222_v61 = vpop.f32.mrb[48].mxu0  ;;  %3169 = vpow2.f32 %v2759_v0 }
 0x9d6   : > { %v2971_v63 = vpop.f32.mrb[49].mxu0  ;;  %v2223_v5 = vadd.f32 %v3985_v62, %v2222_v61  ;;  %v2271_v62 = vpop.permute.xlu0 %2270 }
 0x9d7   : > { %v2225_v2 = vpop.f32.mrb[50].mxu0 }
 0x9d8   : > { %v2972_v49 = vpop.f32.mrb[51].mxu0 }
 0x9de   : > { %v3168_v51 = vpop.eup %3167 }
 0x9df   : > { %v2235_v9 = vadd.f32 1.0, %v3168_v51  ;;  %v3170_v3 = vpop.eup %3169 }
 0x9e0   : > { %v2245_v4 = vadd.f32 1.0, %v3170_v3 }
 0x9e1   : > { %3171 = vrcp.f32 %v2235_v9 }
 0x9e2   : > { %3173 = vrcp.f32 %v2245_v4 }
 0x9eb   : > { %v3172_v6 = vpop.eup %3171 }
 0x9ec   : > { %v2251_v8 = vmul.f32 %v3172_v6, %v2223_v5  ;;  %v3174_v12 = vpop.eup %3173 }
 0x9ed   : > { %v2257_v14 = vsub.f32 1.0, %v3174_v12  ;;  %v2259_v16 = vmul.f32 %v3174_v12, %v2103_v42 }
 0x9ee   : > { %v2252_v11 = vadd.f32 %v2761_v10, %v2251_v8 }
 0x9f0   : > { %3175 = vtanh.f32 %v2252_v11 }
 0x9fa   : > { %v3176_v15 = vpop.eup %3175 }
 0x9fb   : > { %v2258_v17 = vmul.f32 %v3176_v15, %v2257_v14 }
 0x9fd   : > { %v2260_v18 = vadd.f32 %v2259_v16, %v2258_v17 }
 0x9ff   : > { %v2266_v19 = vsel %vm2265_vm0, %v2260_v18, %v2103_v42 }
 0xa00   : > { %2267 = vst.msk [vmem:[#allocation3] sm:$0x3] %vm524_vm1, %v2266_v19  ;;  %v2273_v22 = vmul.f32 %v2271_v62, %v2266_v19 }
 0xa02   : > { %2765 = vst.msk [vmem:[%s2537_s1 + $0xe] sm:$0x3] %vm524_vm1, %v2273_v22 }
 0xa03   : > { %3369 = shalt.err (!%p3366_p2)
}
 0xa04   : > { %s3370_s10 = scalar_lea.hbm %s4176_s16, 256  ;;  %s3374_s29 = scalar_lea.hbm %s4235_s6, 512 }
 0xa05   : > { %p3371_p7 = scmp.ne.s32.totalorder %s4176_s16, %s3370_s10  ;;  %p3375_p3 = scmp.lt.u32.totalorder %s4176_s16, %s4235_s6 }
 0xa06   : > { %p3376_p6 = scmp.lt.u32.totalorder %s3374_s29, %s3370_s10  ;;  %p3378_p1 = scmp.lt.u32.totalorder %s3370_s10, %s4176_s16 }
 0xa07   : > { %p3372_p13 = pnand %p3371_p7, %p4289_p4 }
 0xa08   : > { %p3377_p11 = por %p3376_p6, %p3375_p3 }
 0xa09   : > { %p3373_p8 = pneg %p3372_p13 }
 0xa0a   : > { %p3379_p9 = por %p3378_p1, %p3377_p11 }
 0xa0c   : > { %p3380_p5 = pnand %p3379_p9, %p3373_p8 }
 0xa0e   : > { %3383 = shalt.err (!%p3380_p5)
}
 0xa0f   : > { %s3476_s20 = smov 32   ;;  %s3477_s27 = smov 2  }
 0xa10   : > { %2995 = dma.vmem_to_hbm [thread:$0]  (%p4289_p4), %s4178_s28, 256, %s4176_s16, %s2277_s24, %s3476_s20, %s3476_s20, %s3477_s27  }
 0xa11 PF: > { %s4290_s18 = sld [smem:[#allocation22_spill]]  ;;  %s4291_s11 = sld [smem:[#allocation27_spill]] }
 0xa12   : > { %s4292_s12 = sld [smem:[#allocation24_spill]] }
 0xa17   : > { %s2311_s8 = sand.u32 1, %s4290_s18   ;;  %p4293_p12 = scmp.ne.s32.totalorder %s4291_s11, 0 }
 0xa18   : > { %p4294_p10 = scmp.ge.s32.totalorder %s4292_s12, 2  ;;  %s2312_s1 = scalar_lea.sflag [#allocation6], %s2311_s8 }
 0xa1a   : > { %p3017_p0 = pnand %p4294_p10, %p4293_p12 }
 0xa1c   : > { %3429 = dma.done.wait (!%p3017_p0), %s2312_s1, 256  }
 0xa1d   : > { %3431 = vsyncadd (!%p3017_p0), %s2312_s1, 4294967040  ;;  %s31_s26 = sadd.s32 1, %s4292_s12   ;;  %s4295_s30 = sld [smem:[#allocation23_spill]] }
 0xa1e   : > { %p28_p2 = scmp.ge.s32.totalorder %s31_s26, 4   ;;  %s4296_s23 = sld [smem:[#allocation26_spill]] }
 0xa1f   : > { %s4297_s13 = sld [smem:[#allocation25_spill]]  ;;  %s4298_s21 = smov %s3438_s22 }
 0xa20   : > { %s4300_s24 = smov %s3450_s25  ;;  %30 = sbr.rel (!%p28_p2) target bundleno = 15 (0xf), region = 196 }
 0xa23   : > { %s4299_s22 = smov %s4295_s30 }
 0xa25   : > { %s4301_s25 = smov %s4297_s13 }
 0xa27   :  { %2317 = vsyncpa [#allocation5], 1 }
 0xa28   :  { %2319 = vsyncpa [#allocation5 + $0x1], 1 }
 0xa29   :  { %2320 = vsyncpa [#allocation8], 1 }
 0xa2a   :  { %2322 = vsyncpa [#allocation8 + $0x1], 1 }
 0xa2b   :  { %2323 = vsyncpa [#allocation11], 1 }
 0xa2c   :  { %2325 = vsyncpa [#allocation11 + $0x1], 1 }
 0xa2d   :  { %2326 = vsyncpa [#allocation14], 1 }
 0xa2e   :  { %2328 = vsyncpa [#allocation14 + $0x1], 1 }
 0xa2f   :  { %2329 = vsyncpa [#allocation6], 1 }
 0xa30   :  { %2331 = vsyncpa [#allocation6 + $0x1], 1 }

</bundles_post_ra>
